<compile_context>
chip_gen: v6e
topology: v6e:2x2x1
jax: 0.10.0
libtpu: 0.0.40
codegen_flags: <defaults>
</compile_context>

<pallas_src>
import jax
import jax.numpy as jnp
from jax import lax
from jax.experimental import pallas as pl
from jax.experimental.pallas import tpu as pltpu


def _head_kernel_batched(x_ref, w1t_ref, b1_ref, w2_ref, b2_ref, o_ref):
    # x_ref:   (Bb, C, S)  bf16   NCHW feature map, spatial flattened
    # w1t_ref: (K, C)      bf16   1x1 conv weight, (out_ch, in_ch)
    # b1_ref:  (K, 1)      f32
    # w2_ref:  (K, NCP)    f32    classifier weight, pre-scaled by 1/S, lane-padded
    # b2_ref:  (1, NCP)    f32
    # o_ref:   (Bb, NCP)   f32
    bb = x_ref.shape[0]
    k, c = w1t_ref.shape

    x = x_ref[...]                                          # (Bb, C, S)
    # Replicate the (K, C) weight across the batch block so the contraction is
    # a canonical batched matmul (batch dim leading on both operands,
    # per-sample (K,C) @ (C,S)), the form used by the batched flash kernels.
    w1t = jnp.broadcast_to(w1t_ref[...], (bb, k, c))        # (Bb, K, C)
    h = lax.dot_general(
        w1t, x,
        dimension_numbers=(((2,), (1,)), ((0,), (0,))),
        preferred_element_type=jnp.float32,
    )                                                        # (Bb, K, S) f32
    h = jnp.maximum(h + b1_ref[...], 0.0)                    # bias + ReLU, once
    # AdaptiveAvgPool2d((1,1)): spatial SUM here; the 1/S lives in w2.
    pooled = jnp.sum(h, axis=-1)                             # (Bb, K)
    out = jnp.dot(pooled, w2_ref[...],
                  preferred_element_type=jnp.float32) + b2_ref[...]
    o_ref[...] = out.astype(o_ref.dtype)                     # one dense store


def _head_kernel_looped(x_ref, w1t_ref, b1_ref, w2_ref, b2_ref, o_ref):
    # Fallback for jax/Mosaic versions without batched dot_general lowering:
    # per-sample 2D matmuls, values only (no VMEM scratch), dense row stores.
    bb = x_ref.shape[0]
    w1t = w1t_ref[...]
    b1 = b1_ref[...]
    w2 = w2_ref[...]
    b2 = b2_ref[...]
    for b in range(bb):
        hb = lax.dot_general(w1t, x_ref[b], (((1,), (0,)), ((), ())),
                             preferred_element_type=jnp.float32)   # (K, S)
        hb = jnp.maximum(hb + b1, 0.0)
        pooled = jnp.sum(hb, axis=1, keepdims=True)                 # (K, 1)
        row = lax.dot_general(pooled, w2, (((0,), (0,)), ((), ())),
                              preferred_element_type=jnp.float32)   # (1, NCP)
        o_ref[pl.ds(b, 1), :] = row + b2


def _build_call(kernel_fn, *, Bb, nb, C, S, K, NCP, B_pad):
    return pl.pallas_call(
        kernel_fn,
        out_shape=jax.ShapeDtypeStruct((B_pad, NCP), jnp.float32),
        grid_spec=pltpu.PrefetchScalarGridSpec(
            num_scalar_prefetch=0,
            grid=(nb,),
            in_specs=[
                pl.BlockSpec((Bb, C, S), lambda i: (i, 0, 0)),
                pl.BlockSpec((K, C), lambda i: (0, 0)),
                pl.BlockSpec((K, 1), lambda i: (0, 0)),
                pl.BlockSpec((K, NCP), lambda i: (0, 0)),
                pl.BlockSpec((1, NCP), lambda i: (0, 0)),
            ],
            out_specs=pl.BlockSpec((Bb, NCP), lambda i: (i, 0)),
        ),
        compiler_params=pltpu.CompilerParams(
            dimension_semantics=("parallel",),
        ),
    )


def simnet_head(x_nchw, w1, b1, w2, b2, *, block_b=32):
    """x_nchw: (B, 512, H, W) f32.  Returns (B, num_classes) f32.

    block_b (multiple of 8, clamped to the padded batch) sets the per-step
    tile.  VMEM per step (S lane-padded to 128):
      x double-buffer  ~ 2 * Bb * 512 * 128 * 2B   (8 MiB @ Bb=32, 16 MiB @ 64)
      + ~3 MiB of in-kernel values (replicated w1, f32 h intermediate).
    Guidance: v5e (16 MiB default scoped VMEM) -> block_b=32; v6e / v7x
    (32 MiB default) -> block_b=64, keeping nb >= 2 on v7x so the batch blocks
    split across its two TensorCores; block_b > 64 needs
    CompilerParams(vmem_limit_bytes=...).  If a profile still shows exposed x
    DMA, add pipeline_mode=pl.Buffered(3) on the x BlockSpec (v5e/v6e only).
    """
    assert block_b % 8 == 0
    B, C, H, W = x_nchw.shape
    S = H * W
    K = w1.shape[1]                        # 64
    NC = w2.shape[1]                       # num_classes
    NCP = ((NC + 127) // 128) * 128        # lane-pad classifier output

    Bb = min(block_b, ((B + 7) // 8) * 8)  # don't over-pad tiny batches
    B_pad = ((B + Bb - 1) // Bb) * Bb
    nb = B_pad // Bb

    # NCHW with spatial flattened -- pure reshape, no HBM transpose.
    x = x_nchw.reshape(B, C, S).astype(jnp.bfloat16)
    if B_pad != B:
        x = jnp.pad(x, ((0, B_pad - B), (0, 0), (0, 0)))

    w1t = jnp.transpose(w1).astype(jnp.bfloat16)        # (K, C), tiny
    b1c = b1.reshape(K, 1).astype(jnp.float32)          # broadcasts over (Bb,K,S)
    # Fold the 1/S pooling divisor into the classifier weight; pad to NCP lanes.
    # NOTE: exact only while ReLU stays *before* the pooling (as in the model).
    w2s = (w2 / S).astype(jnp.float32)
    w2p = jnp.zeros((K, NCP), jnp.float32).at[:, :NC].set(w2s)
    b2p = jnp.zeros((1, NCP), jnp.float32).at[:, :NC].set(
        b2.reshape(1, NC).astype(jnp.float32))

    args = (x, w1t, b1c, w2p, b2p)
    dims = dict(Bb=Bb, nb=nb, C=C, S=S, K=K, NCP=NCP, B_pad=B_pad)
    try:
        out = jax.block_until_ready(
            _build_call(_head_kernel_batched, **dims)(*args))
    except Exception:
        # Older Mosaic without batched dot_general support: per-sample 2D path.
        out = jax.block_until_ready(
            _build_call(_head_kernel_looped, **dims)(*args))

    return out[:B, :NC]


def reference_head(x_nchw, w1, b1, w2, b2):
    """Plain-JAX reference mirroring the PyTorch forward (same bf16 input cast)."""
    B, C, H, W = x_nchw.shape
    S = H * W
    xb = x_nchw.reshape(B, C, S).astype(jnp.bfloat16).astype(jnp.float32)
    w1b = w1.astype(jnp.bfloat16).astype(jnp.float32)
    h = jnp.einsum("bcs,ck->bsk", xb, w1b,
                   precision=lax.Precision.HIGHEST) + b1
    h = jnp.maximum(h, 0.0)
    pooled = jnp.mean(h, axis=1)                       # AdaptiveAvgPool2d((1,1))
    return jnp.dot(pooled, w2, precision=lax.Precision.HIGHEST) + b2


if __name__ == "__main__":
    num_classes = 10
    x1_inchannel = 64
    C_in = 512            # x4 from ResNet18 has 512 channels
    B, H, W = 2, 8, 8     # small synthetic feature-map shape (S = 64)

    key = jax.random.PRNGKey(0)
    k_x, k_w1, k_b1, k_w2, k_b2 = jax.random.split(key, 5)

    x4 = jax.random.normal(k_x, (B, C_in, H, W), dtype=jnp.float32)
    # conv1_up: Conv2d(512, 64, k=1) -> matmul form (512, 64)
    w1 = jax.random.normal(k_w1, (C_in, x1_inchannel), dtype=jnp.float32) * 0.02
    b1 = jax.random.normal(k_b1, (x1_inchannel,), dtype=jnp.float32) * 0.02
    # classifiers: Linear(64, num_classes) -> matmul form (64, num_classes)
    w2 = jax.random.normal(k_w2, (x1_inchannel, num_classes), dtype=jnp.float32) * 0.05
    b2 = jax.random.normal(k_b2, (num_classes,), dtype=jnp.float32) * 0.05

    out = simnet_head(x4, w1, b1, w2, b2)
    out = jax.block_until_ready(out)

    ref = reference_head(x4, w1, b1, w2, b2)
    assert out.shape == (B, num_classes)
    assert jnp.allclose(out, ref, atol=2e-3, rtol=2e-3), "mismatch vs reference"

    print("KERNEL_OK")
</pallas_src>

<mosaic_0001>
module attributes {stable_mosaic.version = 11 : i64} {
  func.func @_head_kernel_batched(%arg0: i32, %arg1: memref<8x512x64xbf16, #tpu.memory_space<vmem>>, %arg2: memref<64x512xbf16, #tpu.memory_space<vmem>>, %arg3: memref<64x1xf32, #tpu.memory_space<vmem>>, %arg4: memref<64x128xf32, #tpu.memory_space<vmem>>, %arg5: memref<1x128xf32, #tpu.memory_space<vmem>>, %arg6: memref<8x128xf32, #tpu.memory_space<vmem>>) attributes {dimension_semantics = [#tpu.dimension_semantics<parallel>], iteration_bounds = array<i64: 1>, scalar_prefetch = 0 : i64, scratch_operands = 0 : i64, tpu.core_type = #tpu.core_type<tc>, window_params = [{transform_indices = @transform_0, window_bounds = array<i64: 8, 512, 64>}, {pipeline_mode = #tpu.pipeline_mode<synchronous>, transform_indices = @transform_1, window_bounds = array<i64: 64, 512>}, {pipeline_mode = #tpu.pipeline_mode<synchronous>, transform_indices = @transform_2, window_bounds = array<i64: 64, 1>}, {pipeline_mode = #tpu.pipeline_mode<synchronous>, transform_indices = @transform_3, window_bounds = array<i64: 64, 128>}, {pipeline_mode = #tpu.pipeline_mode<synchronous>, transform_indices = @transform_4, window_bounds = array<i64: 1, 128>}, {transform_indices = @transform_5, window_bounds = array<i64: 8, 128>}]} {
    %c0 = arith.constant 0 : index
    %c0_0 = arith.constant 0 : index
    %c0_1 = arith.constant 0 : index
    %0 = vector.load %arg1[%c0, %c0_0, %c0_1] : memref<8x512x64xbf16, #tpu.memory_space<vmem>>, vector<8x512x64xbf16>
    %c0_2 = arith.constant 0 : index
    %c0_3 = arith.constant 0 : index
    %1 = vector.load %arg2[%c0_2, %c0_3] : memref<64x512xbf16, #tpu.memory_space<vmem>>, vector<64x512xbf16>
    %2 = vector.shape_cast %1 : vector<64x512xbf16> to vector<1x64x512xbf16>
    %3 = vector.broadcast %2 : vector<1x64x512xbf16> to vector<8x64x512xbf16>
    %cst = arith.constant dense<0.000000e+00> : vector<8x64x64xf32>
    %4 = tpu.matmul %3, %0, %cst {dimension_numbers = #tpu.dot_dimension_numbers<[2], [1], [1], [2], [0, 0, 0, 1, 1, 2], [0], [0]>} : vector<8x64x512xbf16>, vector<8x512x64xbf16>, vector<8x64x64xf32> -> vector<8x64x64xf32>
    %c0_4 = arith.constant 0 : index
    %c0_5 = arith.constant 0 : index
    %5 = vector.load %arg3[%c0_4, %c0_5] : memref<64x1xf32, #tpu.memory_space<vmem>>, vector<64x1xf32>
    %6 = vector.shape_cast %5 : vector<64x1xf32> to vector<1x64x1xf32>
    %7 = vector.broadcast %6 : vector<1x64x1xf32> to vector<8x64x64xf32>
    %8 = arith.addf %4, %7 : vector<8x64x64xf32>
    %cst_6 = arith.constant 0.000000e+00 : f32
    %9 = vector.broadcast %cst_6 : f32 to vector<8x64x64xf32>
    %10 = arith.maximumf %8, %9 : vector<8x64x64xf32>
    %cst_7 = arith.constant dense<0.000000e+00> : vector<8x64xf32>
    %11 = vector.multi_reduction <add>, %10, %cst_7 [2] : vector<8x64x64xf32> to vector<8x64xf32>
    %c0_8 = arith.constant 0 : index
    %c0_9 = arith.constant 0 : index
    %12 = vector.load %arg4[%c0_8, %c0_9] : memref<64x128xf32, #tpu.memory_space<vmem>>, vector<64x128xf32>
    %cst_10 = arith.constant dense<0.000000e+00> : vector<8x128xf32>
    %13 = tpu.matmul %11, %12, %cst_10 {dimension_numbers = #tpu.dot_dimension_numbers<[1], [0], [0], [1], [0, 0, 1, 1], [], []>} : vector<8x64xf32>, vector<64x128xf32>, vector<8x128xf32> -> vector<8x128xf32>
    %c0_11 = arith.constant 0 : index
    %c0_12 = arith.constant 0 : index
    %14 = vector.load %arg5[%c0_11, %c0_12] : memref<1x128xf32, #tpu.memory_space<vmem>>, vector<1x128xf32>
    %15 = vector.broadcast %14 : vector<1x128xf32> to vector<8x128xf32>
    %16 = arith.addf %13, %15 : vector<8x128xf32>
    %c0_13 = arith.constant 0 : index
    %c0_14 = arith.constant 0 : index
    %17 = vector.load %arg6[%c0_13, %c0_14] : memref<8x128xf32, #tpu.memory_space<vmem>>, vector<8x128xf32>
    tpu.vector_store %arg6[%c0_13, %c0_14], %16 {strides = array<i32>} : memref<8x128xf32, #tpu.memory_space<vmem>>, vector<8x128xf32>,
    return
  }
  func.func @transform_0(%arg0: i32) -> (i32, i32, i32) {
    %c0_i32 = arith.constant 0 : i32
    %c0_i32_0 = arith.constant 0 : i32
    %c0_i32_1 = arith.constant 0 : i32
    return %arg0, %c0_i32, %c0_i32_0 : i32, i32, i32
  }
  func.func @transform_1(%arg0: i32) -> (i32, i32) {
    %c0_i32 = arith.constant 0 : i32
    %c0_i32_0 = arith.constant 0 : i32
    %c0_i32_1 = arith.constant 0 : i32
    return %c0_i32, %c0_i32_0 : i32, i32
  }
  func.func @transform_2(%arg0: i32) -> (i32, i32) {
    %c0_i32 = arith.constant 0 : i32
    %c0_i32_0 = arith.constant 0 : i32
    %c0_i32_1 = arith.constant 0 : i32
    return %c0_i32, %c0_i32_0 : i32, i32
  }
  func.func @transform_3(%arg0: i32) -> (i32, i32) {
    %c0_i32 = arith.constant 0 : i32
    %c0_i32_0 = arith.constant 0 : i32
    %c0_i32_1 = arith.constant 0 : i32
    return %c0_i32, %c0_i32_0 : i32, i32
  }
  func.func @transform_4(%arg0: i32) -> (i32, i32) {
    %c0_i32 = arith.constant 0 : i32
    %c0_i32_0 = arith.constant 0 : i32
    %c0_i32_1 = arith.constant 0 : i32
    return %c0_i32, %c0_i32_0 : i32, i32
  }
  func.func @transform_5(%arg0: i32) -> (i32, i32) {
    %c0_i32 = arith.constant 0 : i32
    %c0_i32_0 = arith.constant 0 : i32
    return %arg0, %c0_i32 : i32, i32
  }
}

module attributes {stable_mosaic.version = 11 : i64} {
  func.func @_head_kernel_looped(%arg0: i32, %arg1: memref<8x512x64xbf16, #tpu.memory_space<vmem>>, %arg2: memref<64x512xbf16, #tpu.memory_space<vmem>>, %arg3: memref<64x1xf32, #tpu.memory_space<vmem>>, %arg4: memref<64x128xf32, #tpu.memory_space<vmem>>, %arg5: memref<1x128xf32, #tpu.memory_space<vmem>>, %arg6: memref<8x128xf32, #tpu.memory_space<vmem>>) attributes {dimension_semantics = [#tpu.dimension_semantics<parallel>], iteration_bounds = array<i64: 1>, scalar_prefetch = 0 : i64, scratch_operands = 0 : i64, tpu.core_type = #tpu.core_type<tc>, window_params = [{transform_indices = @transform_0, window_bounds = array<i64: 8, 512, 64>}, {pipeline_mode = #tpu.pipeline_mode<synchronous>, transform_indices = @transform_1, window_bounds = array<i64: 64, 512>}, {pipeline_mode = #tpu.pipeline_mode<synchronous>, transform_indices = @transform_2, window_bounds = array<i64: 64, 1>}, {pipeline_mode = #tpu.pipeline_mode<synchronous>, transform_indices = @transform_3, window_bounds = array<i64: 64, 128>}, {pipeline_mode = #tpu.pipeline_mode<synchronous>, transform_indices = @transform_4, window_bounds = array<i64: 1, 128>}, {transform_indices = @transform_5, window_bounds = array<i64: 8, 128>}]} {
    %c0 = arith.constant 0 : index
    %c0_0 = arith.constant 0 : index
    %0 = vector.load %arg2[%c0, %c0_0] : memref<64x512xbf16, #tpu.memory_space<vmem>>, vector<64x512xbf16>
    %c0_1 = arith.constant 0 : index
    %c0_2 = arith.constant 0 : index
    %1 = vector.load %arg3[%c0_1, %c0_2] : memref<64x1xf32, #tpu.memory_space<vmem>>, vector<64x1xf32>
    %c0_3 = arith.constant 0 : index
    %c0_4 = arith.constant 0 : index
    %2 = vector.load %arg4[%c0_3, %c0_4] : memref<64x128xf32, #tpu.memory_space<vmem>>, vector<64x128xf32>
    %c0_5 = arith.constant 0 : index
    %c0_6 = arith.constant 0 : index
    %3 = vector.load %arg5[%c0_5, %c0_6] : memref<1x128xf32, #tpu.memory_space<vmem>>, vector<1x128xf32>
    %c0_7 = arith.constant 0 : index
    %c0_8 = arith.constant 0 : index
    %c0_9 = arith.constant 0 : index
    %4 = vector.load %arg1[%c0_7, %c0_8, %c0_9] : memref<8x512x64xbf16, #tpu.memory_space<vmem>>, vector<1x512x64xbf16>
    %5 = vector.shape_cast %4 : vector<1x512x64xbf16> to vector<512x64xbf16>
    %cst = arith.constant dense<0.000000e+00> : vector<64x64xf32>
    %6 = tpu.matmul %0, %5, %cst {dimension_numbers = #tpu.dot_dimension_numbers<[1], [0], [0], [1], [0, 0, 1, 1], [], []>} : vector<64x512xbf16>, vector<512x64xbf16>, vector<64x64xf32> -> vector<64x64xf32>
    %7 = vector.broadcast %1 : vector<64x1xf32> to vector<64x64xf32>
    %8 = arith.addf %6, %7 : vector<64x64xf32>
    %cst_10 = arith.constant 0.000000e+00 : f32
    %9 = vector.broadcast %cst_10 : f32 to vector<64x64xf32>
    %10 = arith.maximumf %8, %9 : vector<64x64xf32>
    %cst_11 = arith.constant dense<0.000000e+00> : vector<64xf32>
    %11 = vector.multi_reduction <add>, %10, %cst_11 [1] : vector<64x64xf32> to vector<64xf32>
    %12 = vector.shape_cast %11 : vector<64xf32> to vector<64x1xf32>
    %cst_12 = arith.constant dense<0.000000e+00> : vector<1x128xf32>
    %13 = tpu.matmul %12, %2, %cst_12 {dimension_numbers = #tpu.dot_dimension_numbers<[0], [0], [1], [1], [0, 1, 1, 1], [], []>} : vector<64x1xf32>, vector<64x128xf32>, vector<1x128xf32> -> vector<1x128xf32>
    %14 = arith.addf %13, %3 : vector<1x128xf32>
    %c0_13 = arith.constant 0 : index
    %c0_14 = arith.constant 0 : index
    %15 = vector.load %arg6[%c0_13, %c0_14] : memref<8x128xf32, #tpu.memory_space<vmem>>, vector<1x128xf32>
    tpu.vector_store %arg6[%c0_13, %c0_14], %14 {strides = array<i32>} : memref<8x128xf32, #tpu.memory_space<vmem>>, vector<1x128xf32>,
    %c1 = arith.constant 1 : index
    %c0_15 = arith.constant 0 : index
    %c0_16 = arith.constant 0 : index
    %16 = vector.load %arg1[%c1, %c0_15, %c0_16] : memref<8x512x64xbf16, #tpu.memory_space<vmem>>, vector<1x512x64xbf16>
    %17 = vector.shape_cast %16 : vector<1x512x64xbf16> to vector<512x64xbf16>
    %cst_17 = arith.constant dense<0.000000e+00> : vector<64x64xf32>
    %18 = tpu.matmul %0, %17, %cst_17 {dimension_numbers = #tpu.dot_dimension_numbers<[1], [0], [0], [1], [0, 0, 1, 1], [], []>} : vector<64x512xbf16>, vector<512x64xbf16>, vector<64x64xf32> -> vector<64x64xf32>
    %19 = vector.broadcast %1 : vector<64x1xf32> to vector<64x64xf32>
    %20 = arith.addf %18, %19 : vector<64x64xf32>
    %cst_18 = arith.constant 0.000000e+00 : f32
    %21 = vector.broadcast %cst_18 : f32 to vector<64x64xf32>
    %22 = arith.maximumf %20, %21 : vector<64x64xf32>
    %cst_19 = arith.constant dense<0.000000e+00> : vector<64xf32>
    %23 = vector.multi_reduction <add>, %22, %cst_19 [1] : vector<64x64xf32> to vector<64xf32>
    %24 = vector.shape_cast %23 : vector<64xf32> to vector<64x1xf32>
    %cst_20 = arith.constant dense<0.000000e+00> : vector<1x128xf32>
    %25 = tpu.matmul %24, %2, %cst_20 {dimension_numbers = #tpu.dot_dimension_numbers<[0], [0], [1], [1], [0, 1, 1, 1], [], []>} : vector<64x1xf32>, vector<64x128xf32>, vector<1x128xf32> -> vector<1x128xf32>
    %26 = arith.addf %25, %3 : vector<1x128xf32>
    %c1_21 = arith.constant 1 : index
    %c0_22 = arith.constant 0 : index
    %27 = vector.load %arg6[%c1_21, %c0_22] : memref<8x128xf32, #tpu.memory_space<vmem>>, vector<1x128xf32>
    tpu.vector_store %arg6[%c1_21, %c0_22], %26 {strides = array<i32>} : memref<8x128xf32, #tpu.memory_space<vmem>>, vector<1x128xf32>,
    %c2 = arith.constant 2 : index
    %c0_23 = arith.constant 0 : index
    %c0_24 = arith.constant 0 : index
    %28 = vector.load %arg1[%c2, %c0_23, %c0_24] : memref<8x512x64xbf16, #tpu.memory_space<vmem>>, vector<1x512x64xbf16>
    %29 = vector.shape_cast %28 : vector<1x512x64xbf16> to vector<512x64xbf16>
    %cst_25 = arith.constant dense<0.000000e+00> : vector<64x64xf32>
    %30 = tpu.matmul %0, %29, %cst_25 {dimension_numbers = #tpu.dot_dimension_numbers<[1], [0], [0], [1], [0, 0, 1, 1], [], []>} : vector<64x512xbf16>, vector<512x64xbf16>, vector<64x64xf32> -> vector<64x64xf32>
    %31 = vector.broadcast %1 : vector<64x1xf32> to vector<64x64xf32>
    %32 = arith.addf %30, %31 : vector<64x64xf32>
    %cst_26 = arith.constant 0.000000e+00 : f32
    %33 = vector.broadcast %cst_26 : f32 to vector<64x64xf32>
    %34 = arith.maximumf %32, %33 : vector<64x64xf32>
    %cst_27 = arith.constant dense<0.000000e+00> : vector<64xf32>
    %35 = vector.multi_reduction <add>, %34, %cst_27 [1] : vector<64x64xf32> to vector<64xf32>
    %36 = vector.shape_cast %35 : vector<64xf32> to vector<64x1xf32>
    %cst_28 = arith.constant dense<0.000000e+00> : vector<1x128xf32>
    %37 = tpu.matmul %36, %2, %cst_28 {dimension_numbers = #tpu.dot_dimension_numbers<[0], [0], [1], [1], [0, 1, 1, 1], [], []>} : vector<64x1xf32>, vector<64x128xf32>, vector<1x128xf32> -> vector<1x128xf32>
    %38 = arith.addf %37, %3 : vector<1x128xf32>
    %c2_29 = arith.constant 2 : index
    %c0_30 = arith.constant 0 : index
    %39 = vector.load %arg6[%c2_29, %c0_30] : memref<8x128xf32, #tpu.memory_space<vmem>>, vector<1x128xf32>
    tpu.vector_store %arg6[%c2_29, %c0_30], %38 {strides = array<i32>} : memref<8x128xf32, #tpu.memory_space<vmem>>, vector<1x128xf32>,
    %c3 = arith.constant 3 : index
    %c0_31 = arith.constant 0 : index
    %c0_32 = arith.constant 0 : index
    %40 = vector.load %arg1[%c3, %c0_31, %c0_32] : memref<8x512x64xbf16, #tpu.memory_space<vmem>>, vector<1x512x64xbf16>
    %41 = vector.shape_cast %40 : vector<1x512x64xbf16> to vector<512x64xbf16>
    %cst_33 = arith.constant dense<0.000000e+00> : vector<64x64xf32>
    %42 = tpu.matmul %0, %41, %cst_33 {dimension_numbers = #tpu.dot_dimension_numbers<[1], [0], [0], [1], [0, 0, 1, 1], [], []>} : vector<64x512xbf16>, vector<512x64xbf16>, vector<64x64xf32> -> vector<64x64xf32>
    %43 = vector.broadcast %1 : vector<64x1xf32> to vector<64x64xf32>
    %44 = arith.addf %42, %43 : vector<64x64xf32>
    %cst_34 = arith.constant 0.000000e+00 : f32
    %45 = vector.broadcast %cst_34 : f32 to vector<64x64xf32>
    %46 = arith.maximumf %44, %45 : vector<64x64xf32>
    %cst_35 = arith.constant dense<0.000000e+00> : vector<64xf32>
    %47 = vector.multi_reduction <add>, %46, %cst_35 [1] : vector<64x64xf32> to vector<64xf32>
    %48 = vector.shape_cast %47 : vector<64xf32> to vector<64x1xf32>
    %cst_36 = arith.constant dense<0.000000e+00> : vector<1x128xf32>
    %49 = tpu.matmul %48, %2, %cst_36 {dimension_numbers = #tpu.dot_dimension_numbers<[0], [0], [1], [1], [0, 1, 1, 1], [], []>} : vector<64x1xf32>, vector<64x128xf32>, vector<1x128xf32> -> vector<1x128xf32>
    %50 = arith.addf %49, %3 : vector<1x128xf32>
    %c3_37 = arith.constant 3 : index
    %c0_38 = arith.constant 0 : index
    %51 = vector.load %arg6[%c3_37, %c0_38] : memref<8x128xf32, #tpu.memory_space<vmem>>, vector<1x128xf32>
    tpu.vector_store %arg6[%c3_37, %c0_38], %50 {strides = array<i32>} : memref<8x128xf32, #tpu.memory_space<vmem>>, vector<1x128xf32>,
    %c4 = arith.constant 4 : index
    %c0_39 = arith.constant 0 : index
    %c0_40 = arith.constant 0 : index
    %52 = vector.load %arg1[%c4, %c0_39, %c0_40] : memref<8x512x64xbf16, #tpu.memory_space<vmem>>, vector<1x512x64xbf16>
    %53 = vector.shape_cast %52 : vector<1x512x64xbf16> to vector<512x64xbf16>
    %cst_41 = arith.constant dense<0.000000e+00> : vector<64x64xf32>
    %54 = tpu.matmul %0, %53, %cst_41 {dimension_numbers = #tpu.dot_dimension_numbers<[1], [0], [0], [1], [0, 0, 1, 1], [], []>} : vector<64x512xbf16>, vector<512x64xbf16>, vector<64x64xf32> -> vector<64x64xf32>
    %55 = vector.broadcast %1 : vector<64x1xf32> to vector<64x64xf32>
    %56 = arith.addf %54, %55 : vector<64x64xf32>
    %cst_42 = arith.constant 0.000000e+00 : f32
    %57 = vector.broadcast %cst_42 : f32 to vector<64x64xf32>
    %58 = arith.maximumf %56, %57 : vector<64x64xf32>
    %cst_43 = arith.constant dense<0.000000e+00> : vector<64xf32>
    %59 = vector.multi_reduction <add>, %58, %cst_43 [1] : vector<64x64xf32> to vector<64xf32>
    %60 = vector.shape_cast %59 : vector<64xf32> to vector<64x1xf32>
    %cst_44 = arith.constant dense<0.000000e+00> : vector<1x128xf32>
    %61 = tpu.matmul %60, %2, %cst_44 {dimension_numbers = #tpu.dot_dimension_numbers<[0], [0], [1], [1], [0, 1, 1, 1], [], []>} : vector<64x1xf32>, vector<64x128xf32>, vector<1x128xf32> -> vector<1x128xf32>
    %62 = arith.addf %61, %3 : vector<1x128xf32>
    %c4_45 = arith.constant 4 : index
    %c0_46 = arith.constant 0 : index
    %63 = vector.load %arg6[%c4_45, %c0_46] : memref<8x128xf32, #tpu.memory_space<vmem>>, vector<1x128xf32>
    tpu.vector_store %arg6[%c4_45, %c0_46], %62 {strides = array<i32>} : memref<8x128xf32, #tpu.memory_space<vmem>>, vector<1x128xf32>,
    %c5 = arith.constant 5 : index
    %c0_47 = arith.constant 0 : index
    %c0_48 = arith.constant 0 : index
    %64 = vector.load %arg1[%c5, %c0_47, %c0_48] : memref<8x512x64xbf16, #tpu.memory_space<vmem>>, vector<1x512x64xbf16>
    %65 = vector.shape_cast %64 : vector<1x512x64xbf16> to vector<512x64xbf16>
    %cst_49 = arith.constant dense<0.000000e+00> : vector<64x64xf32>
    %66 = tpu.matmul %0, %65, %cst_49 {dimension_numbers = #tpu.dot_dimension_numbers<[1], [0], [0], [1], [0, 0, 1, 1], [], []>} : vector<64x512xbf16>, vector<512x64xbf16>, vector<64x64xf32> -> vector<64x64xf32>
    %67 = vector.broadcast %1 : vector<64x1xf32> to vector<64x64xf32>
    %68 = arith.addf %66, %67 : vector<64x64xf32>
    %cst_50 = arith.constant 0.000000e+00 : f32
    %69 = vector.broadcast %cst_50 : f32 to vector<64x64xf32>
    %70 = arith.maximumf %68, %69 : vector<64x64xf32>
    %cst_51 = arith.constant dense<0.000000e+00> : vector<64xf32>
    %71 = vector.multi_reduction <add>, %70, %cst_51 [1] : vector<64x64xf32> to vector<64xf32>
    %72 = vector.shape_cast %71 : vector<64xf32> to vector<64x1xf32>
    %cst_52 = arith.constant dense<0.000000e+00> : vector<1x128xf32>
    %73 = tpu.matmul %72, %2, %cst_52 {dimension_numbers = #tpu.dot_dimension_numbers<[0], [0], [1], [1], [0, 1, 1, 1], [], []>} : vector<64x1xf32>, vector<64x128xf32>, vector<1x128xf32> -> vector<1x128xf32>
    %74 = arith.addf %73, %3 : vector<1x128xf32>
    %c5_53 = arith.constant 5 : index
    %c0_54 = arith.constant 0 : index
    %75 = vector.load %arg6[%c5_53, %c0_54] : memref<8x128xf32, #tpu.memory_space<vmem>>, vector<1x128xf32>
    tpu.vector_store %arg6[%c5_53, %c0_54], %74 {strides = array<i32>} : memref<8x128xf32, #tpu.memory_space<vmem>>, vector<1x128xf32>,
    %c6 = arith.constant 6 : index
    %c0_55 = arith.constant 0 : index
    %c0_56 = arith.constant 0 : index
    %76 = vector.load %arg1[%c6, %c0_55, %c0_56] : memref<8x512x64xbf16, #tpu.memory_space<vmem>>, vector<1x512x64xbf16>
    %77 = vector.shape_cast %76 : vector<1x512x64xbf16> to vector<512x64xbf16>
    %cst_57 = arith.constant dense<0.000000e+00> : vector<64x64xf32>
    %78 = tpu.matmul %0, %77, %cst_57 {dimension_numbers = #tpu.dot_dimension_numbers<[1], [0], [0], [1], [0, 0, 1, 1], [], []>} : vector<64x512xbf16>, vector<512x64xbf16>, vector<64x64xf32> -> vector<64x64xf32>
    %79 = vector.broadcast %1 : vector<64x1xf32> to vector<64x64xf32>
    %80 = arith.addf %78, %79 : vector<64x64xf32>
    %cst_58 = arith.constant 0.000000e+00 : f32
    %81 = vector.broadcast %cst_58 : f32 to vector<64x64xf32>
    %82 = arith.maximumf %80, %81 : vector<64x64xf32>
    %cst_59 = arith.constant dense<0.000000e+00> : vector<64xf32>
    %83 = vector.multi_reduction <add>, %82, %cst_59 [1] : vector<64x64xf32> to vector<64xf32>
    %84 = vector.shape_cast %83 : vector<64xf32> to vector<64x1xf32>
    %cst_60 = arith.constant dense<0.000000e+00> : vector<1x128xf32>
    %85 = tpu.matmul %84, %2, %cst_60 {dimension_numbers = #tpu.dot_dimension_numbers<[0], [0], [1], [1], [0, 1, 1, 1], [], []>} : vector<64x1xf32>, vector<64x128xf32>, vector<1x128xf32> -> vector<1x128xf32>
    %86 = arith.addf %85, %3 : vector<1x128xf32>
    %c6_61 = arith.constant 6 : index
    %c0_62 = arith.constant 0 : index
    %87 = vector.load %arg6[%c6_61, %c0_62] : memref<8x128xf32, #tpu.memory_space<vmem>>, vector<1x128xf32>
    tpu.vector_store %arg6[%c6_61, %c0_62], %86 {strides = array<i32>} : memref<8x128xf32, #tpu.memory_space<vmem>>, vector<1x128xf32>,
    %c7 = arith.constant 7 : index
    %c0_63 = arith.constant 0 : index
    %c0_64 = arith.constant 0 : index
    %88 = vector.load %arg1[%c7, %c0_63, %c0_64] : memref<8x512x64xbf16, #tpu.memory_space<vmem>>, vector<1x512x64xbf16>
    %89 = vector.shape_cast %88 : vector<1x512x64xbf16> to vector<512x64xbf16>
    %cst_65 = arith.constant dense<0.000000e+00> : vector<64x64xf32>
    %90 = tpu.matmul %0, %89, %cst_65 {dimension_numbers = #tpu.dot_dimension_numbers<[1], [0], [0], [1], [0, 0, 1, 1], [], []>} : vector<64x512xbf16>, vector<512x64xbf16>, vector<64x64xf32> -> vector<64x64xf32>
    %91 = vector.broadcast %1 : vector<64x1xf32> to vector<64x64xf32>
    %92 = arith.addf %90, %91 : vector<64x64xf32>
    %cst_66 = arith.constant 0.000000e+00 : f32
    %93 = vector.broadcast %cst_66 : f32 to vector<64x64xf32>
    %94 = arith.maximumf %92, %93 : vector<64x64xf32>
    %cst_67 = arith.constant dense<0.000000e+00> : vector<64xf32>
    %95 = vector.multi_reduction <add>, %94, %cst_67 [1] : vector<64x64xf32> to vector<64xf32>
    %96 = vector.shape_cast %95 : vector<64xf32> to vector<64x1xf32>
    %cst_68 = arith.constant dense<0.000000e+00> : vector<1x128xf32>
    %97 = tpu.matmul %96, %2, %cst_68 {dimension_numbers = #tpu.dot_dimension_numbers<[0], [0], [1], [1], [0, 1, 1, 1], [], []>} : vector<64x1xf32>, vector<64x128xf32>, vector<1x128xf32> -> vector<1x128xf32>
    %98 = arith.addf %97, %3 : vector<1x128xf32>
    %c7_69 = arith.constant 7 : index
    %c0_70 = arith.constant 0 : index
    %99 = vector.load %arg6[%c7_69, %c0_70] : memref<8x128xf32, #tpu.memory_space<vmem>>, vector<1x128xf32>
    tpu.vector_store %arg6[%c7_69, %c0_70], %98 {strides = array<i32>} : memref<8x128xf32, #tpu.memory_space<vmem>>, vector<1x128xf32>,
    return
  }
  func.func @transform_0(%arg0: i32) -> (i32, i32, i32) {
    %c0_i32 = arith.constant 0 : i32
    %c0_i32_0 = arith.constant 0 : i32
    %c0_i32_1 = arith.constant 0 : i32
    return %arg0, %c0_i32, %c0_i32_0 : i32, i32, i32
  }
  func.func @transform_1(%arg0: i32) -> (i32, i32) {
    %c0_i32 = arith.constant 0 : i32
    %c0_i32_0 = arith.constant 0 : i32
    %c0_i32_1 = arith.constant 0 : i32
    return %c0_i32, %c0_i32_0 : i32, i32
  }
  func.func @transform_2(%arg0: i32) -> (i32, i32) {
    %c0_i32 = arith.constant 0 : i32
    %c0_i32_0 = arith.constant 0 : i32
    %c0_i32_1 = arith.constant 0 : i32
    return %c0_i32, %c0_i32_0 : i32, i32
  }
  func.func @transform_3(%arg0: i32) -> (i32, i32) {
    %c0_i32 = arith.constant 0 : i32
    %c0_i32_0 = arith.constant 0 : i32
    %c0_i32_1 = arith.constant 0 : i32
    return %c0_i32, %c0_i32_0 : i32, i32
  }
  func.func @transform_4(%arg0: i32) -> (i32, i32) {
    %c0_i32 = arith.constant 0 : i32
    %c0_i32_0 = arith.constant 0 : i32
    %c0_i32_1 = arith.constant 0 : i32
    return %c0_i32, %c0_i32_0 : i32, i32
  }
  func.func @transform_5(%arg0: i32) -> (i32, i32) {
    %c0_i32 = arith.constant 0 : i32
    %c0_i32_0 = arith.constant 0 : i32
    return %arg0, %c0_i32 : i32, i32
  }
}

</mosaic_0001>

<bundles_post_ra>
// kernel: tpu_custom_call.1
= control target key start
LH: loop header
LB: loop body
LE: loop exit
PB: predicated region body
PF: predicated region fallthrough
CT: control target
= control target key end

     0   :  { %v5290_v2 = vmov 0   ;;  %vm3318_vm0 = vcmask 523264   ;;  %s6782_s0 = inlined_call_operand.vmem [shape: bf16[8,512,64], index: 0, kind: input, shape index: {}]   ;;  %s6783_s1 = inlined_call_operand.vmem [shape: bf16[64,512], index: 1, kind: input, shape index: {}]   ;;  %s6784_s2 = inlined_call_operand.vmem [shape: f32[64,1], index: 2, kind: input, shape index: {}]   ;;  %s6785_s3 = inlined_call_operand.vmem [shape: f32[64,128], index: 3, kind: input, shape index: {}]   ;;  %s6786_s4 = inlined_call_operand.vmem [shape: f32[1,128], index: 4, kind: input, shape index: {}]   ;;  %s6787_s5 = inlined_call_operand.hbm [shape: f32[8,128], index: 5, kind: output, shape index: {}]  }
   0x1   :  { %v4967_v0 = vld [vmem:[%s6782_s0 + $0x78] sm:$0xff]   ;;  %4965 = vset.pattern.permute.xlu0 %v5290_v2  ;;  %4966 = vset.pattern.permute.xlu1 %v5290_v2  ;;  %v4971_v5 = vld [vmem:[%s6782_s0 + $0x70] sm:$0xff]   ;;  %v4975_v9 = vld [vmem:[%s6782_s0 + $0x68] sm:$0xff]  }
   0x2   :  { %v4968_v1 = vld [vmem:[%s6782_s0 + $0xf8] sm:$0xff]   ;;  %4293 = vmatprep.subr.bf16.mxu0 %v4967_v0  ;;  %v4972_v6 = vld [vmem:[%s6782_s0 + $0xf0] sm:$0xff]   ;;  %v4976_v10 = vld [vmem:[%s6782_s0 + $0xe8] sm:$0xff]  }
   0x3   :  { %v4969_v3 = vld [vmem:[%s6782_s0 + $0x38] sm:$0xff]   ;;  %4333 = vmatprep.subr.bf16.mxu1 %v4968_v1  ;;  %v4973_v7 = vld [vmem:[%s6782_s0 + $0x30] sm:$0xff]   ;;  %v4977_v11 = vld [vmem:[%s6782_s0 + $0x28] sm:$0xff]  }
   0x4   :  { %v4970_v4 = vld [vmem:[%s6782_s0 + $0xb8] sm:$0xff]   ;;  %4294 = vmatpush3.bf16.msra.mxu0 %v4969_v3  ;;  %v4974_v8 = vld [vmem:[%s6782_s0 + $0xb0] sm:$0xff]   ;;  %v4978_v12 = vld [vmem:[%s6782_s0 + $0xa8] sm:$0xff]  }
   0x5   :  { %4334 = vmatpush3.bf16.msra.mxu1 %v4970_v4  ;;  %4295 = vmatprep.subr.bf16.mxu0 %v4971_v5  ;;  %v4979_v13 = vld [vmem:[%s6782_s0 + $0x60] sm:$0xff]   ;;  %v4983_v17 = vld [vmem:[%s6782_s0 + $0x58] sm:$0xff]   ;;  %v4987_v21 = vld [vmem:[%s6782_s0 + $0x50] sm:$0xff]  }
   0x6   :  { %4335 = vmatprep.subr.bf16.mxu1 %v4972_v6  ;;  %v4980_v14 = vld [vmem:[%s6782_s0 + $0xe0] sm:$0xff]   ;;  %v4984_v18 = vld [vmem:[%s6782_s0 + $0xd8] sm:$0xff]   ;;  %v4988_v22 = vld [vmem:[%s6782_s0 + $0xd0] sm:$0xff]  }
   0x7   :  { %v4981_v15 = vld [vmem:[%s6782_s0 + $0x20] sm:$0xff]   ;;  %v4985_v19 = vld [vmem:[%s6782_s0 + $0x18] sm:$0xff]   ;;  %v4989_v23 = vld [vmem:[%s6782_s0 + $0x10] sm:$0xff]  }
   0x8   :  { %4296 = vmatpush3.bf16.msra.mxu0 %v4973_v7  ;;  %v4982_v16 = vld [vmem:[%s6782_s0 + $0xa0] sm:$0xff]   ;;  %v4986_v20 = vld [vmem:[%s6782_s0 + $0x98] sm:$0xff]   ;;  %v4990_v24 = vld [vmem:[%s6782_s0 + $0x90] sm:$0xff]  }
   0x9   :  { %4336 = vmatpush3.bf16.msra.mxu1 %v4974_v8  ;;  %4297 = vmatprep.subr.bf16.mxu0 %v4975_v9  ;;  %v4991_v25 = vld [vmem:[%s6782_s0 + $0x48] sm:$0xff]   ;;  %v4995_v29 = vld [vmem:[%s6782_s0 + $0x40] sm:$0xff]   ;;  %v5005_v37 = vld [vmem:[%s6782_s0 + $0x178] sm:$0xff]  }
   0xa   :  { %4337 = vmatprep.subr.bf16.mxu1 %v4976_v10  ;;  %v4992_v26 = vld [vmem:[%s6782_s0 + $0xc8] sm:$0xff]   ;;  %v4996_v30 = vld [vmem:[%s6782_s0 + $0xc0] sm:$0xff]   ;;  %v5006_v38 = vld [vmem:[%s6782_s0 + $0x1f8] sm:$0xff]  }
   0xb   :  { %v4993_v27 = vld [vmem:[%s6782_s0 + $0x8] sm:$0xff]   ;;  %v4997_v31 = vld [vmem:[%s6782_s0] sm:$0xff]   ;;  %v5007_v39 = vld [vmem:[%s6782_s0 + $0x138] sm:$0xff]  }
   0xc   :  { %4298 = vmatpush3.bf16.msra.mxu0 %v4977_v11  ;;  %v4994_v28 = vld [vmem:[%s6782_s0 + $0x88] sm:$0xff]   ;;  %v4998_v32 = vld [vmem:[%s6782_s0 + $0x80] sm:$0xff]   ;;  %v5008_v40 = vld [vmem:[%s6782_s0 + $0x1b8] sm:$0xff]  }
   0xd   :  { %4338 = vmatpush3.bf16.msra.mxu1 %v4978_v12  ;;  %4299 = vmatprep.subr.bf16.mxu0 %v4979_v13  ;;  %v5423_v33 = vld [vmem:[%s6783_s1 + $0x4] ss:$16 sps:$4 sm:$0xff]   ;;  %v5428_v34 = vld [vmem:[%s6783_s1 + $0xc] ss:$16 sps:$4 sm:$0xff]   ;;  %v5434_v35 = vld [vmem:[%s6783_s1] ss:$16 sps:$4 sm:$0xff]  }
   0xe   :  { %4339 = vmatprep.subr.bf16.mxu1 %v4980_v14  ;;  %902 = vmatprep.mubr.bf16.mxu0 %v5423_v33  ;;  %v5439_v36 = vld [vmem:[%s6783_s1 + $0x8] ss:$16 sps:$4 sm:$0xff]   ;;  %v5009_v41 = vld [vmem:[%s6782_s0 + $0x170] sm:$0xff]   ;;  %v5476_v46 = vld [vmem:[%s6783_s1 + $0x2c] ss:$16 sps:$4 sm:$0xff]  }
   0xf   :  { %967 = vmatprep.mubr.bf16.mxu1 %v5428_v34  ;;  %v5010_v42 = vld [vmem:[%s6782_s0 + $0x1f0] sm:$0xff]   ;;  %v5487_v48 = vld [vmem:[%s6783_s1 + $0x28] ss:$16 sps:$4 sm:$0xff]   ;;  %v5023_v53 = vld [vmem:[%s6782_s0 + $0x160] sm:$0xff]  }
  0x10   :  { %4300 = vmatpush3.bf16.msra.mxu0 %v4981_v15  ;;  %v5011_v43 = vld [vmem:[%s6782_s0 + $0x130] sm:$0xff]   ;;  %v5019_v49 = vld [vmem:[%s6782_s0 + $0x168] sm:$0xff]   ;;  %v5024_v54 = vld [vmem:[%s6782_s0 + $0x1e0] sm:$0xff]  }
  0x11   :  { %4340 = vmatpush3.bf16.msra.mxu1 %v4982_v16  ;;  %4301 = vmatprep.subr.bf16.mxu0 %v4983_v17  ;;  %v5012_v44 = vld [vmem:[%s6782_s0 + $0x1b0] sm:$0xff]   ;;  %v5020_v50 = vld [vmem:[%s6782_s0 + $0x1e8] sm:$0xff]   ;;  %v5025_v55 = vld [vmem:[%s6782_s0 + $0x120] sm:$0xff]  }
  0x12   :  { %4341 = vmatprep.subr.bf16.mxu1 %v4984_v18  ;;  %v5471_v45 = vld [vmem:[%s6783_s1 + $0x24] ss:$16 sps:$4 sm:$0xff]   ;;  %v5481_v47 = vld [vmem:[%s6783_s1 + $0x20] ss:$16 sps:$4 sm:$0xff]   ;;  %v5021_v51 = vld [vmem:[%s6782_s0 + $0x128] sm:$0xff]  }
  0x13   :  { %v5022_v52 = vld [vmem:[%s6782_s0 + $0x1a8] sm:$0xff]   ;;  %v5026_v56 = vld [vmem:[%s6782_s0 + $0x1a0] sm:$0xff]   ;;  %v5033_v61 = vld [vmem:[%s6782_s0 + $0x158] sm:$0xff]  }
  0x14   :  { %4302 = vmatpush3.bf16.msra.mxu0 %v4985_v19  ;;  %v5519_v57 = vld [vmem:[%s6783_s1 + $0x44] ss:$16 sps:$4 sm:$0xff]   ;;  %v5524_v58 = vld [vmem:[%s6783_s1 + $0x4c] ss:$16 sps:$4 sm:$0xff]   ;;  %v5529_v59 = vld [vmem:[%s6783_s1 + $0x40] ss:$16 sps:$4 sm:$0xff]  }
  0x15   :  { %4342 = vmatpush3.bf16.msra.mxu1 %v4986_v20  ;;  %4303 = vmatprep.subr.bf16.mxu0 %v4987_v21  ;;  %v5534_v60 = vld [vmem:[%s6783_s1 + $0x48] ss:$16 sps:$4 sm:$0xff]   ;;  %v5037_v1 = vld [vmem:[%s6782_s0 + $0x150] sm:$0xff]   ;;  %v5572_v6 = vld [vmem:[%s6783_s1 + $0x6c] ss:$16 sps:$4 sm:$0xff]  }
  0x16   :  { %4343 = vmatprep.subr.bf16.mxu1 %v4988_v22  ;;  %v5034_v62 = vld [vmem:[%s6782_s0 + $0x1d8] sm:$0xff]   ;;  %v5038_v2 = vld [vmem:[%s6782_s0 + $0x1d0] sm:$0xff]   ;;  %v5047_v9 = vld [vmem:[%s6782_s0 + $0x148] sm:$0xff]  }
  0x17   :  { %v5035_v63 = vld [vmem:[%s6782_s0 + $0x118] sm:$0xff]   ;;  %v5039_v3 = vld [vmem:[%s6782_s0 + $0x110] sm:$0xff]   ;;  %v5048_v10 = vld [vmem:[%s6782_s0 + $0x1c8] sm:$0xff]  }
  0x18   :  { %4304 = vmatpush3.bf16.msra.mxu0 %v4989_v23  ;;  %v5036_v0 = vld [vmem:[%s6782_s0 + $0x198] sm:$0xff]   ;;  %v5040_v4 = vld [vmem:[%s6782_s0 + $0x190] sm:$0xff]   ;;  %v5049_v11 = vld [vmem:[%s6782_s0 + $0x108] sm:$0xff]  }
  0x19   :  { %4344 = vmatpush3.bf16.msra.mxu1 %v4990_v24  ;;  %4305 = vmatprep.subr.bf16.mxu0 %v4991_v25  ;;  %v5567_v5 = vld [vmem:[%s6783_s1 + $0x64] ss:$16 sps:$4 sm:$0xff]   ;;  %v5578_v7 = vld [vmem:[%s6783_s1 + $0x60] ss:$16 sps:$4 sm:$0xff]   ;;  %v5583_v8 = vld [vmem:[%s6783_s1 + $0x68] ss:$16 sps:$4 sm:$0xff]  }
  0x1a   :  { %4345 = vmatprep.subr.bf16.mxu1 %v4992_v26  ;;  %v5050_v12 = vld [vmem:[%s6782_s0 + $0x188] sm:$0xff]   ;;  %v5051_v13 = vld [vmem:[%s6782_s0 + $0x140] sm:$0xff]   ;;  %v5055_v17 = vld [vmem:[%s6782_s0 + $0x278] sm:$0xff]  }
  0x1b   :  { %v5052_v14 = vld [vmem:[%s6782_s0 + $0x1c0] sm:$0xff]   ;;  %v5056_v18 = vld [vmem:[%s6782_s0 + $0x2f8] sm:$0xff]   ;;  %v5059_v21 = vld [vmem:[%s6782_s0 + $0x270] sm:$0xff]  }
  0x1c   :  { %4306 = vmatpush3.bf16.msra.mxu0 %v4993_v27  ;;  %v5053_v15 = vld [vmem:[%s6782_s0 + $0x100] sm:$0xff]   ;;  %v5057_v19 = vld [vmem:[%s6782_s0 + $0x238] sm:$0xff]   ;;  %v5060_v22 = vld [vmem:[%s6782_s0 + $0x2f0] sm:$0xff]  }
  0x1d   :  { %4346 = vmatpush3.bf16.msra.mxu1 %v4994_v28  ;;  %4307 = vmatprep.subr.bf16.mxu0 %v4995_v29  ;;  %v5054_v16 = vld [vmem:[%s6782_s0 + $0x180] sm:$0xff]   ;;  %v5058_v20 = vld [vmem:[%s6782_s0 + $0x2b8] sm:$0xff]   ;;  %v5061_v23 = vld [vmem:[%s6782_s0 + $0x230] sm:$0xff]  }
  0x1e   :  { %4347 = vmatprep.subr.bf16.mxu1 %v4996_v30  ;;  %v5062_v24 = vld [vmem:[%s6782_s0 + $0x2b0] sm:$0xff]   ;;  %v5063_v25 = vld [vmem:[%s6782_s0 + $0x268] sm:$0xff]   ;;  %v5067_v29 = vld [vmem:[%s6782_s0 + $0x260] sm:$0xff]  }
  0x1f   :  { %v5064_v26 = vld [vmem:[%s6782_s0 + $0x2e8] sm:$0xff]   ;;  %v5068_v30 = vld [vmem:[%s6782_s0 + $0x2e0] sm:$0xff]  }
  0x20   :  { %4308 = vmatpush3.bf16.msra.mxu0 %v4997_v31  ;;  %v5065_v27 = vld [vmem:[%s6782_s0 + $0x228] sm:$0xff]   ;;  %v5069_v31 = vld [vmem:[%s6782_s0 + $0x220] sm:$0xff]  }
  0x21   :  { %4348 = vmatpush3.bf16.msra.mxu1 %v4998_v32  ;;  %4373 = vmatprep.subr.bf16.mxu0 %v5005_v37  ;;  %v5066_v28 = vld [vmem:[%s6782_s0 + $0x2a8] sm:$0xff]   ;;  %v5070_v32 = vld [vmem:[%s6782_s0 + $0x2a0] sm:$0xff]   ;;  %v5071_v37 = vld [vmem:[%s6782_s0 + $0x258] sm:$0xff]  }
  0x22   :  { %4413 = vmatprep.subr.bf16.mxu1 %v5006_v38  ;;  %v5072_v38 = vld [vmem:[%s6782_s0 + $0x2d8] sm:$0xff]  }
  0x23   :  { %903 = vmatmul.mubr.bf16.vlgmr.msra.gmra.mxu0 %v5434_v35 }
  0x24   :  { %968 = vmatmul.mubr.bf16.vlgmr.msra.gmra.mxu1 %v5439_v36  ;;  %4374 = vmatpush3.bf16.msra.mxu0 %v5007_v39  ;;  %v5073_v39 = vld [vmem:[%s6782_s0 + $0x218] sm:$0xff]  }
  0x25   :  { %4414 = vmatpush3.bf16.msra.mxu1 %v5008_v40  ;;  %4375 = vmatprep.subr.bf16.mxu0 %v5009_v41  ;;  %v5074_v40 = vld [vmem:[%s6782_s0 + $0x298] sm:$0xff]   ;;  %v5075_v41 = vld [vmem:[%s6782_s0 + $0x250] sm:$0xff]  }
  0x26   :  { %4415 = vmatprep.subr.bf16.mxu1 %v5010_v42  ;;  %910 = vmatprep.mubr.bf16.mxu0 %v5471_v45  ;;  %v5076_v42 = vld [vmem:[%s6782_s0 + $0x2d0] sm:$0xff]  }
  0x27   :  { %975 = vmatprep.mubr.bf16.mxu1 %v5476_v46 }
  0x28   :  { %4376 = vmatpush3.bf16.msra.mxu0 %v5011_v43  ;;  %v5077_v43 = vld [vmem:[%s6782_s0 + $0x210] sm:$0xff]  }
  0x29   :  { %4416 = vmatpush3.bf16.msra.mxu1 %v5012_v44  ;;  %4377 = vmatprep.subr.bf16.mxu0 %v5019_v49  ;;  %v5078_v44 = vld [vmem:[%s6782_s0 + $0x290] sm:$0xff]   ;;  %v5079_v49 = vld [vmem:[%s6782_s0 + $0x248] sm:$0xff]  }
  0x2a   :  { %4417 = vmatprep.subr.bf16.mxu1 %v5020_v50  ;;  %v5080_v50 = vld [vmem:[%s6782_s0 + $0x2c8] sm:$0xff]  }
  0x2b   :  { %911 = vmatmul.mubr.bf16.gmra.mxu0 %v5481_v47 }
  0x2c   :  { %976 = vmatmul.mubr.bf16.gmra.mxu1 %v5487_v48  ;;  %4378 = vmatpush3.bf16.msra.mxu0 %v5021_v51  ;;  %v5081_v51 = vld [vmem:[%s6782_s0 + $0x208] sm:$0xff]  }
  0x2d   :  { %4418 = vmatpush3.bf16.msra.mxu1 %v5022_v52  ;;  %4379 = vmatprep.subr.bf16.mxu0 %v5023_v53  ;;  %v5082_v52 = vld [vmem:[%s6782_s0 + $0x288] sm:$0xff]   ;;  %v5083_v53 = vld [vmem:[%s6782_s0 + $0x240] sm:$0xff]  }
  0x2e   :  { %4419 = vmatprep.subr.bf16.mxu1 %v5024_v54  ;;  %918 = vmatprep.mubr.bf16.mxu0 %v5519_v57  ;;  %v5084_v54 = vld [vmem:[%s6782_s0 + $0x2c0] sm:$0xff]  }
  0x2f   :  { %983 = vmatprep.mubr.bf16.mxu1 %v5524_v58 }
  0x30   :  { %4380 = vmatpush3.bf16.msra.mxu0 %v5025_v55  ;;  %v5085_v55 = vld [vmem:[%s6782_s0 + $0x200] sm:$0xff]  }
  0x31   :  { %4420 = vmatpush3.bf16.msra.mxu1 %v5026_v56  ;;  %4381 = vmatprep.subr.bf16.mxu0 %v5033_v61  ;;  %v5086_v56 = vld [vmem:[%s6782_s0 + $0x280] sm:$0xff]   ;;  %v5087_v61 = vld [vmem:[%s6782_s0 + $0x378] sm:$0xff]  }
  0x32   :  { %4421 = vmatprep.subr.bf16.mxu1 %v5034_v62  ;;  %v5088_v62 = vld [vmem:[%s6782_s0 + $0x3f8] sm:$0xff]  }
  0x33   :  { %919 = vmatmul.mubr.bf16.gmra.mxu0 %v5529_v59 }
  0x34   :  { %984 = vmatmul.mubr.bf16.gmra.mxu1 %v5534_v60  ;;  %4382 = vmatpush3.bf16.msra.mxu0 %v5035_v63  ;;  %v5089_v63 = vld [vmem:[%s6782_s0 + $0x338] sm:$0xff]  }
  0x35   :  { %4422 = vmatpush3.bf16.msra.mxu1 %v5036_v0  ;;  %4383 = vmatprep.subr.bf16.mxu0 %v5037_v1  ;;  %v5090_v0 = vld [vmem:[%s6782_s0 + $0x3b8] sm:$0xff]   ;;  %v5091_v1 = vld [vmem:[%s6782_s0 + $0x370] sm:$0xff]  }
  0x36   :  { %4423 = vmatprep.subr.bf16.mxu1 %v5038_v2  ;;  %926 = vmatprep.mubr.bf16.mxu0 %v5567_v5  ;;  %v5092_v2 = vld [vmem:[%s6782_s0 + $0x3f0] sm:$0xff]  }
  0x37   :  { %991 = vmatprep.mubr.bf16.mxu1 %v5572_v6 }
  0x38   :  { %4384 = vmatpush3.bf16.msra.mxu0 %v5039_v3  ;;  %v5093_v3 = vld [vmem:[%s6782_s0 + $0x330] sm:$0xff]  }
  0x39   :  { %4424 = vmatpush3.bf16.msra.mxu1 %v5040_v4  ;;  %4385 = vmatprep.subr.bf16.mxu0 %v5047_v9  ;;  %v5094_v4 = vld [vmem:[%s6782_s0 + $0x3b0] sm:$0xff]   ;;  %v5095_v9 = vld [vmem:[%s6782_s0 + $0x368] sm:$0xff]  }
  0x3a   :  { %4425 = vmatprep.subr.bf16.mxu1 %v5048_v10  ;;  %v5096_v10 = vld [vmem:[%s6782_s0 + $0x3e8] sm:$0xff]  }
  0x3b   :  { %927 = vmatmul.mubr.bf16.gmra.mxu0 %v5578_v7 }
  0x3c   :  { %992 = vmatmul.mubr.bf16.gmra.mxu1 %v5583_v8  ;;  %1224 = vmatprep.mubr.bf16.mxu0 %v5423_v33 }
  0x3d   :  { %1289 = vmatprep.mubr.bf16.mxu1 %v5428_v34  ;;  %4386 = vmatpush3.bf16.msra.mxu0 %v5049_v11  ;;  %v550_v11 = vld [vmem:[%s6784_s2] sm:$0xff] }
  0x3e   :  { %4426 = vmatpush3.bf16.msra.mxu1 %v5050_v12  ;;  %4387 = vmatprep.subr.bf16.mxu0 %v5051_v13  ;;  %v5097_v12 = vld [vmem:[%s6782_s0 + $0x328] sm:$0xff]  }
  0x3f   :  { %4427 = vmatprep.subr.bf16.mxu1 %v5052_v14  ;;  %560 = vperm.xlu0 %4965, %v550_v11   ;;  %v5098_v13 = vld [vmem:[%s6782_s0 + $0x3a8] sm:$0xff]   ;;  %v5099_v14 = vld [vmem:[%s6782_s0 + $0x360] sm:$0xff]   ;;  %v5151_v11 = vld [vmem:[%s6782_s0 + $0x578] sm:$0xff]  }
  0x41   :  { %4388 = vmatpush3.bf16.msra.mxu0 %v5053_v15  ;;  %v5100_v15 = vld [vmem:[%s6782_s0 + $0x3e0] sm:$0xff]  }
  0x42   :  { %4428 = vmatpush3.bf16.msra.mxu1 %v5054_v16  ;;  %4453 = vmatprep.subr.bf16.mxu0 %v5055_v17  ;;  %v551_v16 = vld [vmem:[%s6784_s2 + $0x8] sm:$0xff]  ;;  %v5101_v17 = vld [vmem:[%s6782_s0 + $0x320] sm:$0xff]  }
  0x43   :  { %4493 = vmatprep.subr.bf16.mxu1 %v5056_v18  ;;  %565 = vperm.xlu0 %4965, %v551_v16   ;;  %v5102_v18 = vld [vmem:[%s6782_s0 + $0x3a0] sm:$0xff]   ;;  %v6005_v16 = vld [vmem:[%s6783_s1 + $0x8] ss:$16 sps:$4 sm:$0xff]  }
  0x44   :  { %1225 = vmatmul.mubr.bf16.vlgmr.msra.gmra.mxu0 %v5434_v35 }
  0x45   :  { %1290 = vmatmul.mubr.bf16.vlgmr.msra.gmra.mxu1 %v5439_v36  ;;  %4454 = vmatpush3.bf16.msra.mxu0 %v5057_v19  ;;  %v5103_v19 = vld [vmem:[%s6782_s0 + $0x358] sm:$0xff]  }
  0x46   :  { %4494 = vmatpush3.bf16.msra.mxu1 %v5058_v20  ;;  %1232 = vmatprep.mubr.bf16.mxu0 %v5471_v45  ;;  %v5104_v20 = vld [vmem:[%s6782_s0 + $0x3d8] sm:$0xff]  }
  0x47   :  { %4455 = vmatprep.subr.bf16.mxu0 %v5059_v21  ;;  %1297 = vmatprep.mubr.bf16.mxu1 %v5476_v46  ;;  %v552_v21 = vld [vmem:[%s6784_s2 + $0x10] sm:$0xff] }
  0x48   :  { %4495 = vmatprep.subr.bf16.mxu1 %v5060_v22  ;;  %v5105_v22 = vld [vmem:[%s6782_s0 + $0x318] sm:$0xff]   ;;  %570 = vperm.xlu1 %4966, %v552_v21  }
  0x49   :  { %4456 = vmatpush3.bf16.msra.mxu0 %v5061_v23  ;;  %v5106_v23 = vld [vmem:[%s6782_s0 + $0x398] sm:$0xff]  }
  0x4a   :  { %4496 = vmatpush3.bf16.msra.mxu1 %v5062_v24  ;;  %4457 = vmatprep.subr.bf16.mxu0 %v5063_v25  ;;  %v5107_v24 = vld [vmem:[%s6782_s0 + $0x350] sm:$0xff]   ;;  %v6026_v21 = vld [vmem:[%s6783_s1 + $0x2c] ss:$16 sps:$4 sm:$0xff]  }
  0x4b   :  { %4497 = vmatprep.subr.bf16.mxu1 %v5064_v26  ;;  %v5108_v25 = vld [vmem:[%s6782_s0 + $0x3d0] sm:$0xff]   ;;  %v553_v26 = vld [vmem:[%s6784_s2 + $0x18] sm:$0xff] }
  0x4c   :  { %1233 = vmatmul.mubr.bf16.gmra.mxu0 %v5481_v47  ;;  %575 = vperm.xlu1 %4966, %v553_v26   ;;  %v6044_v26 = vld [vmem:[%s6783_s1 + $0x20] ss:$16 sps:$4 sm:$0xff]  }
  0x4d   :  { %1298 = vmatmul.mubr.bf16.gmra.mxu1 %v5487_v48  ;;  %4458 = vmatpush3.bf16.msra.mxu0 %v5065_v27  ;;  %v5109_v27 = vld [vmem:[%s6782_s0 + $0x310] sm:$0xff]  }
  0x4e   :  { %4498 = vmatpush3.bf16.msra.mxu1 %v5066_v28  ;;  %1240 = vmatprep.mubr.bf16.mxu0 %v5519_v57  ;;  %v5110_v28 = vld [vmem:[%s6782_s0 + $0x390] sm:$0xff]  }
  0x4f   :  { %4459 = vmatprep.subr.bf16.mxu0 %v5067_v29  ;;  %1305 = vmatprep.mubr.bf16.mxu1 %v5524_v58  ;;  %v5111_v29 = vld [vmem:[%s6782_s0 + $0x348] sm:$0xff]  }
  0x50   :  { %4499 = vmatprep.subr.bf16.mxu1 %v5068_v30  ;;  %v5112_v30 = vld [vmem:[%s6782_s0 + $0x3c8] sm:$0xff]  }
  0x51   :  { %4460 = vmatpush3.bf16.msra.mxu0 %v5069_v31  ;;  %v554_v31 = vld [vmem:[%s6784_s2 + $0x20] sm:$0xff] }
  0x52   :  { %4500 = vmatpush3.bf16.msra.mxu1 %v5070_v32  ;;  %4461 = vmatprep.subr.bf16.mxu0 %v5071_v37  ;;  %v5113_v32 = vld [vmem:[%s6782_s0 + $0x308] sm:$0xff]  }
  0x53   :  { %4501 = vmatprep.subr.bf16.mxu1 %v5072_v38  ;;  %580 = vperm.xlu0 %4965, %v554_v31   ;;  %v5114_v37 = vld [vmem:[%s6782_s0 + $0x388] sm:$0xff]   ;;  %v5115_v38 = vld [vmem:[%s6782_s0 + $0x340] sm:$0xff]  }
  0x54   :  { %1241 = vmatmul.mubr.bf16.gmra.mxu0 %v5529_v59  ;;  %v6065_v31 = vld [vmem:[%s6783_s1 + $0x44] ss:$16 sps:$4 sm:$0xff]  }
  0x55   :  { %1306 = vmatmul.mubr.bf16.gmra.mxu1 %v5534_v60  ;;  %4462 = vmatpush3.bf16.msra.mxu0 %v5073_v39  ;;  %v5116_v39 = vld [vmem:[%s6782_s0 + $0x3c0] sm:$0xff]  }
  0x56   :  { %4502 = vmatpush3.bf16.msra.mxu1 %v5074_v40  ;;  %1248 = vmatprep.mubr.bf16.mxu0 %v5567_v5  ;;  %v555_v40 = vld [vmem:[%s6784_s2 + $0x28] sm:$0xff] }
  0x57   :  { %4463 = vmatprep.subr.bf16.mxu0 %v5075_v41  ;;  %1313 = vmatprep.mubr.bf16.mxu1 %v5572_v6  ;;  %v5119_v41 = vld [vmem:[%s6782_s0 + $0x478] sm:$0xff]  }
  0x58   :  { %4503 = vmatprep.subr.bf16.mxu1 %v5076_v42  ;;  %585 = vperm.xlu1 %4966, %v555_v40   ;;  %v5120_v42 = vld [vmem:[%s6782_s0 + $0x4f8] sm:$0xff]  }
  0x59   :  { %4464 = vmatpush3.bf16.msra.mxu0 %v5077_v43  ;;  %v556_v43 = vld [vmem:[%s6784_s2 + $0x30] sm:$0xff]  ;;  %v5168_v40 = vld [vmem:[%s6782_s0 + $0x5d8] sm:$0xff]  }
  0x5a   :  { %4504 = vmatpush3.bf16.msra.mxu1 %v5078_v44  ;;  %4465 = vmatprep.subr.bf16.mxu0 %v5079_v49  ;;  %v5121_v44 = vld [vmem:[%s6782_s0 + $0x438] sm:$0xff]  }
  0x5b   :  { %4505 = vmatprep.subr.bf16.mxu1 %v5080_v50  ;;  %590 = vperm.xlu0 %4965, %v556_v43   ;;  %v5122_v49 = vld [vmem:[%s6782_s0 + $0x4b8] sm:$0xff]   ;;  %v5123_v50 = vld [vmem:[%s6782_s0 + $0x470] sm:$0xff]  }
  0x5c   :  { %1249 = vmatmul.mubr.bf16.gmra.mxu0 %v5578_v7  ;;  %v5171_v43 = vld [vmem:[%s6782_s0 + $0x550] sm:$0xff]  }
  0x5d   :  { %1314 = vmatmul.mubr.bf16.gmra.mxu1 %v5583_v8  ;;  %4466 = vmatpush3.bf16.msra.mxu0 %v5081_v51  ;;  %v5124_v51 = vld [vmem:[%s6782_s0 + $0x4f0] sm:$0xff]  }
  0x5e   :  { %4506 = vmatpush3.bf16.msra.mxu1 %v5082_v52  ;;  %1546 = vmatprep.mubr.bf16.mxu0 %v5423_v33  ;;  %v5126_v52 = vld [vmem:[%s6782_s0 + $0x4b0] sm:$0xff]  }
  0x5f   :  { %4467 = vmatprep.subr.bf16.mxu0 %v5083_v53  ;;  %1611 = vmatprep.mubr.bf16.mxu1 %v5428_v34  ;;  %v5129_v53 = vld [vmem:[%s6782_s0 + $0x428] sm:$0xff]  }
  0x60   :  { %4507 = vmatprep.subr.bf16.mxu1 %v5084_v54  ;;  %v5130_v54 = vld [vmem:[%s6782_s0 + $0x4a8] sm:$0xff]  }
  0x61   :  { %4468 = vmatpush3.bf16.msra.mxu0 %v5085_v55  ;;  %v5131_v55 = vld [vmem:[%s6782_s0 + $0x460] sm:$0xff]  }
  0x62   :  { %4508 = vmatpush3.bf16.msra.mxu1 %v5086_v56  ;;  %4533 = vmatprep.subr.bf16.mxu0 %v5087_v61  ;;  %v5134_v56 = vld [vmem:[%s6782_s0 + $0x4a0] sm:$0xff]   ;;  %v5137_v61 = vld [vmem:[%s6782_s0 + $0x418] sm:$0xff]  }
  0x63   :  { %4573 = vmatprep.subr.bf16.mxu1 %v5088_v62  ;;  %v5138_v62 = vld [vmem:[%s6782_s0 + $0x498] sm:$0xff]  }
  0x64   :  { %1547 = vmatmul.mubr.bf16.vlgmr.msra.gmra.mxu0 %v5434_v35 }
  0x65   :  { %1612 = vmatmul.mubr.bf16.vlgmr.msra.gmra.mxu1 %v5439_v36  ;;  %4534 = vmatpush3.bf16.msra.mxu0 %v5089_v63  ;;  %v5139_v63 = vld [vmem:[%s6782_s0 + $0x450] sm:$0xff]  }
  0x66   :  { %4574 = vmatpush3.bf16.msra.mxu1 %v5090_v0  ;;  %1554 = vmatprep.mubr.bf16.mxu0 %v5471_v45  ;;  %v5142_v0 = vld [vmem:[%s6782_s0 + $0x490] sm:$0xff]  }
  0x67   :  { %4535 = vmatprep.subr.bf16.mxu0 %v5091_v1  ;;  %1619 = vmatprep.mubr.bf16.mxu1 %v5476_v46  ;;  %v5145_v1 = vld [vmem:[%s6782_s0 + $0x408] sm:$0xff]  }
  0x68   :  { %4575 = vmatprep.subr.bf16.mxu1 %v5092_v2  ;;  %v5146_v2 = vld [vmem:[%s6782_s0 + $0x488] sm:$0xff]  }
  0x69   :  { %4536 = vmatpush3.bf16.msra.mxu0 %v5093_v3  ;;  %v5147_v3 = vld [vmem:[%s6782_s0 + $0x440] sm:$0xff]  }
  0x6a   :  { %4576 = vmatpush3.bf16.msra.mxu1 %v5094_v4  ;;  %4537 = vmatprep.subr.bf16.mxu0 %v5095_v9  ;;  %v5975_v4 = vld [vmem:[%s6783_s1 + $0xc] ss:$16 sps:$4 sm:$0xff]   ;;  %v5149_v9 = vld [vmem:[%s6782_s0 + $0x400] sm:$0xff]  }
  0x6b   :  { %4577 = vmatprep.subr.bf16.mxu1 %v5096_v10  ;;  %v5150_v10 = vld [vmem:[%s6782_s0 + $0x480] sm:$0xff]  }
  0x6c   :  { %1555 = vmatmul.mubr.bf16.gmra.mxu0 %v5481_v47 }
  0x6d   :  { %1620 = vmatmul.mubr.bf16.gmra.mxu1 %v5487_v48  ;;  %4538 = vmatpush3.bf16.msra.mxu0 %v5097_v12  ;;  %v5152_v12 = vld [vmem:[%s6782_s0 + $0x5f8] sm:$0xff]  }
  0x6e   :  { %4578 = vmatpush3.bf16.msra.mxu1 %v5098_v13  ;;  %1562 = vmatprep.mubr.bf16.mxu0 %v5519_v57  ;;  %v5153_v13 = vld [vmem:[%s6782_s0 + $0x538] sm:$0xff]  }
  0x6f   :  { %4539 = vmatprep.subr.bf16.mxu0 %v5099_v14  ;;  %1627 = vmatprep.mubr.bf16.mxu1 %v5524_v58  ;;  %v5996_v14 = vld [vmem:[%s6783_s1] ss:$16 sps:$4 sm:$0xff]  }
  0x70   :  { %4579 = vmatprep.subr.bf16.mxu1 %v5100_v15  ;;  %v5154_v15 = vld [vmem:[%s6782_s0 + $0x5b8] sm:$0xff]  }
  0x71   :  { %4540 = vmatpush3.bf16.msra.mxu0 %v5101_v17  ;;  %v5155_v17 = vld [vmem:[%s6782_s0 + $0x570] sm:$0xff]  }
  0x72   :  { %4580 = vmatpush3.bf16.msra.mxu1 %v5102_v18  ;;  %4541 = vmatprep.subr.bf16.mxu0 %v5103_v19  ;;  %v5156_v18 = vld [vmem:[%s6782_s0 + $0x5f0] sm:$0xff]  }
  0x73   :  { %4581 = vmatprep.subr.bf16.mxu1 %v5104_v20  ;;  %v6017_v19 = vld [vmem:[%s6783_s1 + $0x24] ss:$16 sps:$4 sm:$0xff]  }
  0x74   :  { %1563 = vmatmul.mubr.bf16.gmra.mxu0 %v5529_v59  ;;  %v5157_v20 = vld [vmem:[%s6782_s0 + $0x530] sm:$0xff]  }
  0x75   :  { %1628 = vmatmul.mubr.bf16.gmra.mxu1 %v5534_v60  ;;  %4542 = vmatpush3.bf16.msra.mxu0 %v5105_v22  ;;  %v5158_v22 = vld [vmem:[%s6782_s0 + $0x5b0] sm:$0xff]  }
  0x76   :  { %4582 = vmatpush3.bf16.msra.mxu1 %v5106_v23  ;;  %1570 = vmatprep.mubr.bf16.mxu0 %v5567_v5  ;;  %v5159_v23 = vld [vmem:[%s6782_s0 + $0x568] sm:$0xff]  }
  0x77   :  { %4543 = vmatprep.subr.bf16.mxu0 %v5107_v24  ;;  %1635 = vmatprep.mubr.bf16.mxu1 %v5572_v6  ;;  %v5160_v24 = vld [vmem:[%s6782_s0 + $0x5e8] sm:$0xff]  }
  0x78   :  { %4583 = vmatprep.subr.bf16.mxu1 %v5108_v25  ;;  %v5161_v25 = vld [vmem:[%s6782_s0 + $0x528] sm:$0xff]  }
  0x79   :  { %4544 = vmatpush3.bf16.msra.mxu0 %v5109_v27  ;;  %v5162_v27 = vld [vmem:[%s6782_s0 + $0x5a8] sm:$0xff]  }
  0x7a   :  { %4584 = vmatpush3.bf16.msra.mxu1 %v5110_v28  ;;  %4545 = vmatprep.subr.bf16.mxu0 %v5111_v29  ;;  %v6053_v28 = vld [vmem:[%s6783_s1 + $0x28] ss:$16 sps:$4 sm:$0xff]   ;;  %v5163_v29 = vld [vmem:[%s6782_s0 + $0x560] sm:$0xff]  }
  0x7b   :  { %4585 = vmatprep.subr.bf16.mxu1 %v5112_v30  ;;  %v5164_v30 = vld [vmem:[%s6782_s0 + $0x5e0] sm:$0xff]  }
  0x7c   :  { %1571 = vmatmul.mubr.bf16.gmra.mxu0 %v5578_v7 }
  0x7d   :  { %1636 = vmatmul.mubr.bf16.gmra.mxu1 %v5583_v8  ;;  %1868 = vmatprep.mubr.bf16.mxu0 %v5423_v33  ;;  %v5117_v33 = vld [vmem:[%s6782_s0 + $0x300] sm:$0xff]  }
  0x7e   :  { %4546 = vmatpush3.bf16.msra.mxu0 %v5113_v32  ;;  %1933 = vmatprep.mubr.bf16.mxu1 %v5428_v34  ;;  %v5118_v34 = vld [vmem:[%s6782_s0 + $0x380] sm:$0xff]  }
  0x7f   :  { %4586 = vmatpush3.bf16.msra.mxu1 %v5114_v37  ;;  %4547 = vmatprep.subr.bf16.mxu0 %v5115_v38  ;;  %v5165_v32 = vld [vmem:[%s6782_s0 + $0x520] sm:$0xff]   ;;  %v6074_v37 = vld [vmem:[%s6783_s1 + $0x4c] ss:$16 sps:$4 sm:$0xff]  }
  0x80   :  { %4587 = vmatprep.subr.bf16.mxu1 %v5116_v39  ;;  %v5166_v38 = vld [vmem:[%s6782_s0 + $0x5a0] sm:$0xff]   ;;  %v5167_v39 = vld [vmem:[%s6782_s0 + $0x558] sm:$0xff]  }
  0x82   :  { %4548 = vmatpush3.bf16.msra.mxu0 %v5117_v33  ;;  %v5169_v33 = vld [vmem:[%s6782_s0 + $0x518] sm:$0xff]  }
  0x83   :  { %4588 = vmatpush3.bf16.msra.mxu1 %v5118_v34  ;;  %4613 = vmatprep.subr.bf16.mxu0 %v5119_v41  ;;  %v6092_v34 = vld [vmem:[%s6783_s1 + $0x40] ss:$16 sps:$4 sm:$0xff]   ;;  %v5170_v41 = vld [vmem:[%s6782_s0 + $0x598] sm:$0xff]  }
  0x84   :  { %4653 = vmatprep.subr.bf16.mxu1 %v5120_v42  ;;  %v6101_v42 = vld [vmem:[%s6783_s1 + $0x48] ss:$16 sps:$4 sm:$0xff]  }
  0x85   :  { %1869 = vmatmul.mubr.bf16.vlgmr.msra.gmra.mxu0 %v5434_v35  ;;  %v557_v35 = vld [vmem:[%s6784_s2 + $0x38] sm:$0xff] }
  0x86   :  { %1934 = vmatmul.mubr.bf16.vlgmr.msra.gmra.mxu1 %v5439_v36  ;;  %4614 = vmatpush3.bf16.msra.mxu0 %v5121_v44  ;;  %v5125_v36 = vld [vmem:[%s6782_s0 + $0x430] sm:$0xff]  }
  0x87   :  { %4654 = vmatpush3.bf16.msra.mxu1 %v5122_v49  ;;  %1876 = vmatprep.mubr.bf16.mxu0 %v5471_v45  ;;  %v5127_v45 = vld [vmem:[%s6782_s0 + $0x468] sm:$0xff]   ;;  %v5172_v44 = vld [vmem:[%s6782_s0 + $0x5d0] sm:$0xff]  }
  0x88   :  { %4615 = vmatprep.subr.bf16.mxu0 %v5123_v50  ;;  %1941 = vmatprep.mubr.bf16.mxu1 %v5476_v46  ;;  %v5128_v46 = vld [vmem:[%s6782_s0 + $0x4e8] sm:$0xff]   ;;  %v6113_v49 = vld [vmem:[%s6783_s1 + $0x64] ss:$16 sps:$4 sm:$0xff]  }
  0x89   :  { %4655 = vmatprep.subr.bf16.mxu1 %v5124_v51  ;;  %595 = vperm.xlu1 %4966, %v557_v35   ;;  %v5173_v50 = vld [vmem:[%s6782_s0 + $0x510] sm:$0xff]   ;;  %v6122_v51 = vld [vmem:[%s6783_s1 + $0x6c] ss:$16 sps:$4 sm:$0xff]  }
  0x8a   :  { %4616 = vmatpush3.bf16.msra.mxu0 %v5125_v36  ;;  %v5174_v35 = vld [vmem:[%s6782_s0 + $0x590] sm:$0xff]   ;;  %v5175_v36 = vld [vmem:[%s6782_s0 + $0x548] sm:$0xff]  }
  0x8b   :  { %4656 = vmatpush3.bf16.msra.mxu1 %v5126_v52  ;;  %4617 = vmatprep.subr.bf16.mxu0 %v5127_v45  ;;  %v5176_v52 = vld [vmem:[%s6782_s0 + $0x5c8] sm:$0xff]  }
  0x8c   :  { %4657 = vmatprep.subr.bf16.mxu1 %v5128_v46  ;;  %v5177_v45 = vld [vmem:[%s6782_s0 + $0x508] sm:$0xff]   ;;  %v6140_v46 = vld [vmem:[%s6783_s1 + $0x60] ss:$16 sps:$4 sm:$0xff]  }
  0x8d   :  { %1877 = vmatmul.mubr.bf16.gmra.mxu0 %v5481_v47  ;;  %v5132_v47 = vld [vmem:[%s6782_s0 + $0x4e0] sm:$0xff]  }
  0x8e   :  { %1942 = vmatmul.mubr.bf16.gmra.mxu1 %v5487_v48  ;;  %4618 = vmatpush3.bf16.msra.mxu0 %v5129_v53  ;;  %v5133_v48 = vld [vmem:[%s6782_s0 + $0x420] sm:$0xff]   ;;  %v5178_v53 = vld [vmem:[%s6782_s0 + $0x588] sm:$0xff]  }
  0x8f   :  { %1884 = vmatprep.mubr.bf16.mxu0 %v5519_v57  ;;  %4658 = vmatpush3.bf16.msra.mxu1 %v5130_v54  ;;  %v5135_v57 = vld [vmem:[%s6782_s0 + $0x458] sm:$0xff]  }
  0x90   :  { %1949 = vmatprep.mubr.bf16.mxu1 %v5524_v58  ;;  %4619 = vmatprep.subr.bf16.mxu0 %v5131_v55  ;;  %v5136_v58 = vld [vmem:[%s6782_s0 + $0x4d8] sm:$0xff]   ;;  %v5179_v55 = vld [vmem:[%s6782_s0 + $0x540] sm:$0xff]  }
  0x91   :  { %4659 = vmatprep.subr.bf16.mxu1 %v5132_v47  ;;  %v6149_v54 = vld [vmem:[%s6783_s1 + $0x68] ss:$16 sps:$4 sm:$0xff]   ;;  %v5180_v47 = vld [vmem:[%s6782_s0 + $0x5c0] sm:$0xff]  }
  0x92   :  { %4620 = vmatpush3.bf16.msra.mxu0 %v5133_v48  ;;  %v5181_v48 = vld [vmem:[%s6782_s0 + $0x500] sm:$0xff]  }
  0x93   :  { %4660 = vmatpush3.bf16.msra.mxu1 %v5134_v56  ;;  %4621 = vmatprep.subr.bf16.mxu0 %v5135_v57  ;;  %v5182_v56 = vld [vmem:[%s6782_s0 + $0x580] sm:$0xff]   ;;  %v5183_v57 = vld [vmem:[%s6782_s0 + $0x678] sm:$0xff]  }
  0x94   :  { %4661 = vmatprep.subr.bf16.mxu1 %v5136_v58  ;;  %v5184_v58 = vld [vmem:[%s6782_s0 + $0x6f8] sm:$0xff]  }
  0x95   :  { %1885 = vmatmul.mubr.bf16.gmra.mxu0 %v5529_v59  ;;  %v5140_v59 = vld [vmem:[%s6782_s0 + $0x4d0] sm:$0xff]  }
  0x96   :  { %1950 = vmatmul.mubr.bf16.gmra.mxu1 %v5534_v60  ;;  %4622 = vmatpush3.bf16.msra.mxu0 %v5137_v61  ;;  %v5141_v60 = vld [vmem:[%s6782_s0 + $0x410] sm:$0xff]   ;;  %v5185_v61 = vld [vmem:[%s6782_s0 + $0x638] sm:$0xff]  }
  0x97   :  { %1892 = vmatprep.mubr.bf16.mxu0 %v5567_v5  ;;  %4662 = vmatpush3.bf16.msra.mxu1 %v5138_v62  ;;  %v5143_v5 = vld [vmem:[%s6782_s0 + $0x448] sm:$0xff]   ;;  %v5186_v62 = vld [vmem:[%s6782_s0 + $0x6b8] sm:$0xff]  }
  0x98   :  { %1957 = vmatprep.mubr.bf16.mxu1 %v5572_v6  ;;  %4623 = vmatprep.subr.bf16.mxu0 %v5139_v63  ;;  %v5144_v6 = vld [vmem:[%s6782_s0 + $0x4c8] sm:$0xff]   ;;  %v5187_v63 = vld [vmem:[%s6782_s0 + $0x670] sm:$0xff]  }
  0x99   :  { %4663 = vmatprep.subr.bf16.mxu1 %v5140_v59  ;;  %v5188_v59 = vld [vmem:[%s6782_s0 + $0x6f0] sm:$0xff]  }
  0x9a   :  { %4624 = vmatpush3.bf16.msra.mxu0 %v5141_v60  ;;  %v5189_v60 = vld [vmem:[%s6782_s0 + $0x630] sm:$0xff]  }
  0x9b   :  { %4664 = vmatpush3.bf16.msra.mxu1 %v5142_v0  ;;  %4625 = vmatprep.subr.bf16.mxu0 %v5143_v5  ;;  %v5190_v0 = vld [vmem:[%s6782_s0 + $0x6b0] sm:$0xff]   ;;  %v5191_v5 = vld [vmem:[%s6782_s0 + $0x668] sm:$0xff]  }
  0x9c   :  { %4665 = vmatprep.subr.bf16.mxu1 %v5144_v6  ;;  %v5192_v6 = vld [vmem:[%s6782_s0 + $0x6e8] sm:$0xff]  }
  0x9d   :  { %1893 = vmatmul.mubr.bf16.gmra.mxu0 %v5578_v7  ;;  %v5966_v7 = vld [vmem:[%s6783_s1 + $0x4] ss:$16 sps:$4 sm:$0xff]  }
  0x9e   :  { %1958 = vmatmul.mubr.bf16.gmra.mxu1 %v5583_v8  ;;  %4626 = vmatpush3.bf16.msra.mxu0 %v5145_v1  ;;  %v5148_v8 = vld [vmem:[%s6782_s0 + $0x4c0] sm:$0xff]   ;;  %v5193_v1 = vld [vmem:[%s6782_s0 + $0x628] sm:$0xff]  }
  0x9f   :  { %2190 = vmatprep.mubr.bf16.mxu0 %v5966_v7  ;;  %4666 = vmatpush3.bf16.msra.mxu1 %v5146_v2  ;;  %v5194_v2 = vld [vmem:[%s6782_s0 + $0x6a8] sm:$0xff]  }
  0xa0   :  { %2255 = vmatprep.mubr.bf16.mxu1 %v5975_v4  ;;  %4627 = vmatprep.subr.bf16.mxu0 %v5147_v3  ;;  %v5195_v3 = vld [vmem:[%s6782_s0 + $0x660] sm:$0xff]  }
  0xa1   :  { %4667 = vmatprep.subr.bf16.mxu1 %v5148_v8  ;;  %v5196_v8 = vld [vmem:[%s6782_s0 + $0x6e0] sm:$0xff]  }
  0xa2   :  { %4628 = vmatpush3.bf16.msra.mxu0 %v5149_v9  ;;  %v5197_v9 = vld [vmem:[%s6782_s0 + $0x620] sm:$0xff]  }
  0xa3   :  { %4668 = vmatpush3.bf16.msra.mxu1 %v5150_v10  ;;  %4693 = vmatprep.subr.bf16.mxu0 %v5151_v11  ;;  %v5198_v10 = vld [vmem:[%s6782_s0 + $0x6a0] sm:$0xff]   ;;  %v5199_v11 = vld [vmem:[%s6782_s0 + $0x658] sm:$0xff]  }
  0xa4   :  { %4733 = vmatprep.subr.bf16.mxu1 %v5152_v12  ;;  %v5200_v12 = vld [vmem:[%s6782_s0 + $0x6d8] sm:$0xff]  }
  0xa5   :  { %2191 = vmatmul.mubr.bf16.vlgmr.msra.gmra.mxu0 %v5996_v14 }
  0xa6   :  { %2256 = vmatmul.mubr.bf16.vlgmr.msra.gmra.mxu1 %v6005_v16  ;;  %4694 = vmatpush3.bf16.msra.mxu0 %v5153_v13  ;;  %v5201_v13 = vld [vmem:[%s6782_s0 + $0x618] sm:$0xff]  }
  0xa7   :  { %4734 = vmatpush3.bf16.msra.mxu1 %v5154_v15  ;;  %2198 = vmatprep.mubr.bf16.mxu0 %v6017_v19  ;;  %v5202_v15 = vld [vmem:[%s6782_s0 + $0x698] sm:$0xff]  }
  0xa8   :  { %4695 = vmatprep.subr.bf16.mxu0 %v5155_v17  ;;  %2263 = vmatprep.mubr.bf16.mxu1 %v6026_v21  ;;  %v5203_v17 = vld [vmem:[%s6782_s0 + $0x650] sm:$0xff]  }
  0xa9   :  { %4735 = vmatprep.subr.bf16.mxu1 %v5156_v18  ;;  %v5204_v18 = vld [vmem:[%s6782_s0 + $0x6d0] sm:$0xff]  }
  0xaa   :  { %4696 = vmatpush3.bf16.msra.mxu0 %v5157_v20  ;;  %v5205_v20 = vld [vmem:[%s6782_s0 + $0x610] sm:$0xff]  }
  0xab   :  { %4736 = vmatpush3.bf16.msra.mxu1 %v5158_v22  ;;  %4697 = vmatprep.subr.bf16.mxu0 %v5159_v23 }
  0xac   :  { %4737 = vmatprep.subr.bf16.mxu1 %v5160_v24  ;;  %v5206_v24 = vld [vmem:[%s6782_s0 + $0x690] sm:$0xff]  }
  0xad   :  { %2199 = vmatmul.mubr.bf16.gmra.mxu0 %v6044_v26 }
  0xae   :  { %2264 = vmatmul.mubr.bf16.gmra.mxu1 %v6053_v28  ;;  %4698 = vmatpush3.bf16.msra.mxu0 %v5161_v25  ;;  %v5207_v25 = vld [vmem:[%s6782_s0 + $0x648] sm:$0xff]  }
  0xaf   :  { %4738 = vmatpush3.bf16.msra.mxu1 %v5162_v27  ;;  %2206 = vmatprep.mubr.bf16.mxu0 %v6065_v31 }
  0xb0   :  { %4699 = vmatprep.subr.bf16.mxu0 %v5163_v29  ;;  %2271 = vmatprep.mubr.bf16.mxu1 %v6074_v37 }
  0xb1   :  { %4739 = vmatprep.subr.bf16.mxu1 %v5164_v30  ;;  %v5208_v30 = vld [vmem:[%s6782_s0 + $0x6c8] sm:$0xff]  }
  0xb2   :  { %4700 = vmatpush3.bf16.msra.mxu0 %v5165_v32  ;;  %v5209_v32 = vld [vmem:[%s6782_s0 + $0x608] sm:$0xff]  }
  0xb3   :  { %4740 = vmatpush3.bf16.msra.mxu1 %v5166_v38  ;;  %4701 = vmatprep.subr.bf16.mxu0 %v5167_v39 }
  0xb4   :  { %4741 = vmatprep.subr.bf16.mxu1 %v5168_v40  ;;  %v5210_v40 = vld [vmem:[%s6782_s0 + $0x688] sm:$0xff]  }
  0xb5   :  { %2207 = vmatmul.mubr.bf16.gmra.mxu0 %v6092_v34 }
  0xb6   :  { %2272 = vmatmul.mubr.bf16.gmra.mxu1 %v6101_v42  ;;  %4702 = vmatpush3.bf16.msra.mxu0 %v5169_v33  ;;  %v5211_v33 = vld [vmem:[%s6782_s0 + $0x640] sm:$0xff]  }
  0xb7   :  { %4742 = vmatpush3.bf16.msra.mxu1 %v5170_v41  ;;  %2214 = vmatprep.mubr.bf16.mxu0 %v6113_v49 }
  0xb8   :  { %4703 = vmatprep.subr.bf16.mxu0 %v5171_v43  ;;  %2279 = vmatprep.mubr.bf16.mxu1 %v6122_v51  ;;  %v5212_v43 = vld [vmem:[%s6782_s0 + $0x6c0] sm:$0xff]  }
  0xb9   :  { %4743 = vmatprep.subr.bf16.mxu1 %v5172_v44 }
  0xba   :  { %4704 = vmatpush3.bf16.msra.mxu0 %v5173_v50  ;;  %v5213_v50 = vld [vmem:[%s6782_s0 + $0x600] sm:$0xff]  }
  0xbb   :  { %4744 = vmatpush3.bf16.msra.mxu1 %v5174_v35  ;;  %4705 = vmatprep.subr.bf16.mxu0 %v5175_v36  ;;  %v5214_v35 = vld [vmem:[%s6782_s0 + $0x680] sm:$0xff]  }
  0xbc   :  { %4745 = vmatprep.subr.bf16.mxu1 %v5176_v52  ;;  %v5215_v52 = vld [vmem:[%s6782_s0 + $0x778] sm:$0xff]  }
  0xbd   :  { %2215 = vmatmul.mubr.bf16.gmra.mxu0 %v6140_v46 }
  0xbe   :  { %2280 = vmatmul.mubr.bf16.gmra.mxu1 %v6149_v54  ;;  %4706 = vmatpush3.bf16.msra.mxu0 %v5177_v45  ;;  %v5216_v45 = vld [vmem:[%s6782_s0 + $0x7f8] sm:$0xff]  }
  0xbf   :  { %4746 = vmatpush3.bf16.msra.mxu1 %v5178_v53  ;;  %2512 = vmatprep.mubr.bf16.mxu0 %v5966_v7 }
  0xc0   :  { %4707 = vmatprep.subr.bf16.mxu0 %v5179_v55  ;;  %2577 = vmatprep.mubr.bf16.mxu1 %v5975_v4  ;;  %v6287_v55 = vpop.permute.xlu0 %560 }
  0xc1   :  { %4747 = vmatprep.subr.bf16.mxu1 %v5180_v47 }
  0xc2   :  { %4708 = vmatpush3.bf16.msra.mxu0 %v5181_v48  ;;  %v5218_v48 = vld [vmem:[%s6782_s0 + $0x7b8] sm:$0xff]  }
  0xc3   :  { %4748 = vmatpush3.bf16.msra.mxu1 %v5182_v56  ;;  %4773 = vmatprep.subr.bf16.mxu0 %v5183_v57 }
  0xc4   :  { %4813 = vmatprep.subr.bf16.mxu1 %v5184_v58 }
  0xc5   :  { %2513 = vmatmul.mubr.bf16.vlgmr.msra.gmra.mxu0 %v5996_v14 }
  0xc6   :  { %2578 = vmatmul.mubr.bf16.vlgmr.msra.gmra.mxu1 %v6005_v16  ;;  %4774 = vmatpush3.bf16.msra.mxu0 %v5185_v61  ;;  %v5219_v61 = vld [vmem:[%s6782_s0 + $0x770] sm:$0xff]  }
  0xc7   :  { %4814 = vmatpush3.bf16.msra.mxu1 %v5186_v62  ;;  %2520 = vmatprep.mubr.bf16.mxu0 %v6017_v19 }
  0xc8   :  { %4775 = vmatprep.subr.bf16.mxu0 %v5187_v63  ;;  %2585 = vmatprep.mubr.bf16.mxu1 %v6026_v21 }
  0xc9   :  { %4815 = vmatprep.subr.bf16.mxu1 %v5188_v59 }
  0xca   :  { %4776 = vmatpush3.bf16.msra.mxu0 %v5189_v60 }
  0xcb   :  { %4816 = vmatpush3.bf16.msra.mxu1 %v5190_v0  ;;  %4777 = vmatprep.subr.bf16.mxu0 %v5191_v5  ;;  %v5222_v0 = vld [vmem:[%s6782_s0 + $0x7b0] sm:$0xff]   ;;  %v6309_v5 = vpop.permute.xlu0 %565 }
  0xcc   :  { %4817 = vmatprep.subr.bf16.mxu1 %v5192_v6 }
  0xcd   :  { %2521 = vmatmul.mubr.bf16.gmra.mxu0 %v6044_v26 }
  0xce   :  { %2586 = vmatmul.mubr.bf16.gmra.mxu1 %v6053_v28  ;;  %4778 = vmatpush3.bf16.msra.mxu0 %v5193_v1 }
  0xcf   :  { %4818 = vmatpush3.bf16.msra.mxu1 %v5194_v2  ;;  %2528 = vmatprep.mubr.bf16.mxu0 %v6065_v31  ;;  %v5223_v2 = vld [vmem:[%s6782_s0 + $0x768] sm:$0xff]  }
  0xd0   :  { %4779 = vmatprep.subr.bf16.mxu0 %v5195_v3  ;;  %2593 = vmatprep.mubr.bf16.mxu1 %v6074_v37 }
  0xd1   :  { %4819 = vmatprep.subr.bf16.mxu1 %v5196_v8 }
  0xd2   :  { %4780 = vmatpush3.bf16.msra.mxu0 %v5197_v9  ;;  %v5224_v9 = vld [vmem:[%s6782_s0 + $0x7e8] sm:$0xff]  }
  0xd3   :  { %4820 = vmatpush3.bf16.msra.mxu1 %v5198_v10  ;;  %4781 = vmatprep.subr.bf16.mxu0 %v5199_v11  ;;  %v5225_v11 = vld [vmem:[%s6782_s0 + $0x728] sm:$0xff]  }
  0xd4   :  { %4821 = vmatprep.subr.bf16.mxu1 %v5200_v12 }
  0xd5   :  { %2529 = vmatmul.mubr.bf16.gmra.mxu0 %v6092_v34 }
  0xd6   :  { %2594 = vmatmul.mubr.bf16.gmra.mxu1 %v6101_v42  ;;  %4782 = vmatpush3.bf16.msra.mxu0 %v5201_v13 }
  0xd7   :  { %4822 = vmatpush3.bf16.msra.mxu1 %v5202_v15  ;;  %2536 = vmatprep.mubr.bf16.mxu0 %v6113_v49  ;;  %v5226_v15 = vld [vmem:[%s6782_s0 + $0x7a8] sm:$0xff]  }
  0xd8   :  { %4783 = vmatprep.subr.bf16.mxu0 %v5203_v17  ;;  %2601 = vmatprep.mubr.bf16.mxu1 %v6122_v51 }
  0xd9   :  { %4823 = vmatprep.subr.bf16.mxu1 %v5204_v18  ;;  %v5227_v18 = vld [vmem:[%s6782_s0 + $0x760] sm:$0xff]  }
  0xda   :  { %4784 = vmatpush3.bf16.msra.mxu0 %v5205_v20 }
  0xdb   :  { %4824 = vmatpush3.bf16.msra.mxu1 %v5206_v24  ;;  %4785 = vmatprep.subr.bf16.mxu0 %v5207_v25  ;;  %v5228_v24 = vld [vmem:[%s6782_s0 + $0x7e0] sm:$0xff]  }
  0xdc   :  { %4825 = vmatprep.subr.bf16.mxu1 %v5208_v30 }
  0xdd   :  { %2537 = vmatmul.mubr.bf16.gmra.mxu0 %v6140_v46 }
  0xde   :  { %2602 = vmatmul.mubr.bf16.gmra.mxu1 %v6149_v54  ;;  %4786 = vmatpush3.bf16.msra.mxu0 %v5209_v32 }
  0xdf   :  { %4826 = vmatpush3.bf16.msra.mxu1 %v5210_v40  ;;  %2834 = vmatprep.mubr.bf16.mxu0 %v5966_v7  ;;  %v5230_v40 = vld [vmem:[%s6782_s0 + $0x7a0] sm:$0xff]  }
  0xe0   :  { %4787 = vmatprep.subr.bf16.mxu0 %v5211_v33  ;;  %2899 = vmatprep.mubr.bf16.mxu1 %v5975_v4  ;;  %v5217_v4 = vld [vmem:[%s6782_s0 + $0x738] sm:$0xff]  }
  0xe1   :  { %4827 = vmatprep.subr.bf16.mxu1 %v5212_v43 }
  0xe2   :  { %4788 = vmatpush3.bf16.msra.mxu0 %v5213_v50 }
  0xe3   :  { %v4309_v22 = vpop.f32.mrf.mxu0  ;;  %4828 = vmatpush3.bf16.msra.mxu1 %v5214_v35  ;;  %4853 = vmatprep.subr.bf16.mxu0 %v5215_v52  ;;  %v5232_v35 = vld [vmem:[%s6782_s0 + $0x7d8] sm:$0xff]  }
  0xe4   :  { %v4349_v23 = vpop.f32.mrf.mxu1  ;;  %4893 = vmatprep.subr.bf16.mxu1 %v5216_v45  ;;  %v5233_v52 = vld [vmem:[%s6782_s0 + $0x718] sm:$0xff]  }
  0xe5   :  { %v4310_v27 = vpop.f32.mrf.mxu0  ;;  %2835 = vmatmul.mubr.bf16.vlgmr.msra.gmra.mxu0 %v5996_v14  ;;  %v5220_v14 = vld [vmem:[%s6782_s0 + $0x7f0] sm:$0xff]  }
  0xe6   :  { %v4350_v29 = vpop.f32.mrf.mxu1  ;;  %v4311_v36 = vadd.f32 %v4310_v27, %v4309_v22  ;;  %2900 = vmatmul.mubr.bf16.vlgmr.msra.gmra.mxu1 %v6005_v16  ;;  %4854 = vmatpush3.bf16.msra.mxu0 %v5217_v4  ;;  %v5221_v16 = vld [vmem:[%s6782_s0 + $0x730] sm:$0xff]  }
  0xe7   :  { %v4312_v38 = vpop.f32.mrf.mxu0  ;;  %v4351_v56 = vadd.f32 %v4350_v29, %v4349_v23  ;;  %4894 = vmatpush3.bf16.msra.mxu1 %v5218_v48  ;;  %2842 = vmatprep.mubr.bf16.mxu0 %v6017_v19  ;;  %v6330_v23 = vpop.permute.xlu1 %570  ;;  %v5229_v29 = vld [vmem:[%s6782_s0 + $0x720] sm:$0xff]   ;;  %v5234_v48 = vld [vmem:[%s6782_s0 + $0x798] sm:$0xff]  }
  0xe8   :  { %v4352_v39 = vpop.f32.mrf.mxu1  ;;  %v905_v58 = vadd.f32 %v4311_v36, %v6287_v55  ;;  %4855 = vmatprep.subr.bf16.mxu0 %v5219_v61  ;;  %2907 = vmatprep.mubr.bf16.mxu1 %v6026_v21  ;;  %v6366_v61 = vpop.permute.xlu0 %580 }
  0xe9   :  { %v4313_v41 = vpop.f32.mrf.mxu0  ;;  %4895 = vmatprep.subr.bf16.mxu1 %v5220_v14 }
  0xea   :  { %v4353_v44 = vpop.f32.mrf.mxu1  ;;  %v4314_v62 = vadd.f32 %v4313_v41, %v4312_v38  ;;  %v970_v60 = vadd.f32 %v4351_v56, %v905_v58  ;;  %4856 = vmatpush3.bf16.msra.mxu0 %v5221_v16  ;;  %v5231_v41 = vld [vmem:[%s6782_s0 + $0x758] sm:$0xff]   ;;  %v5235_v56 = vld [vmem:[%s6782_s0 + $0x750] sm:$0xff]  }
  0xeb   :  { %v4315_v7 = vpop.f32.mrf.mxu0  ;;  %v4354_v19 = vadd.f32 %v4353_v44, %v4352_v39  ;;  %4896 = vmatpush3.bf16.msra.mxu1 %v5222_v0  ;;  %4857 = vmatprep.subr.bf16.mxu0 %v5223_v2  ;;  %v6348_v50 = vpop.permute.xlu1 %575  ;;  %v5239_v2 = vld [vmem:[%s6782_s0 + $0x748] sm:$0xff]  }
  0xec   :  { %v4355_v53 = vpop.f32.mrf.mxu1  ;;  %v3254_v6 = vmax.f32 %v970_v60, 0.0  ;;  %v908_v8 = vadd.f32 %v4314_v62, %v6309_v5  ;;  %4897 = vmatprep.subr.bf16.mxu1 %v5224_v9  ;;  %v5236_v62 = vld [vmem:[%s6782_s0 + $0x7d0] sm:$0xff]  }
  0xed   :  { %v4316_v47 = vpop.f32.mrf.mxu0  ;;  %2843 = vmatmul.mubr.bf16.gmra.mxu0 %v6044_v26 }
  0xee   :  { %v4356_v57 = vpop.f32.mrf.mxu1  ;;  %v3319_v10 = vsel %vm3318_vm0, %v3254_v6, 0.0  ;;  %v4317_v12 = vadd.f32 %v4316_v47, %v4315_v7  ;;  %v973_v13 = vadd.f32 %v4354_v19, %v908_v8  ;;  %2908 = vmatmul.mubr.bf16.gmra.mxu1 %v6053_v28  ;;  %4858 = vmatpush3.bf16.msra.mxu0 %v5225_v11  ;;  %v5240_v11 = vld [vmem:[%s6782_s0 + $0x7c8] sm:$0xff]  }
  0xef   :  { %v4318_v63 = vpop.f32.mrf.mxu0  ;;  %3320 = vadd.xlane.f32.xlu0 %v3319_v10  ;;  %4898 = vmatpush3.bf16.msra.mxu1 %v5226_v15  ;;  %v4357_v27 = vadd.f32 %v4356_v57, %v4355_v53  ;;  %v6380_v19 = vpop.permute.xlu1 %585 }
  0xf0   :  { %v4358_v59 = vpop.f32.mrf.mxu1  ;;  %v3255_v22 = vmax.f32 %v973_v13, 0.0  ;;  %2850 = vmatprep.mubr.bf16.mxu0 %v6065_v31  ;;  %4859 = vmatprep.subr.bf16.mxu0 %v5227_v18  ;;  %v913_v39 = vadd.f32 %v4317_v12, %v6330_v23 }
  0xf1   :  { %v4319_v1 = vpop.f32.mrf.mxu0  ;;  %2915 = vmatprep.mubr.bf16.mxu1 %v6074_v37  ;;  %4899 = vmatprep.subr.bf16.mxu1 %v5228_v24 }
  0xf2   :  { %v4359_v3 = vpop.f32.mrf.mxu1  ;;  %v4320_v30 = vadd.f32 %v4319_v1, %v4318_v63  ;;  %v3322_v32 = vsel %vm3318_vm0, %v3255_v22, 0.0  ;;  %4860 = vmatpush3.bf16.msra.mxu0 %v5229_v29  ;;  %v978_v44 = vadd.f32 %v4357_v27, %v913_v39  ;;  %v5238_v1 = vld [vmem:[%s6782_s0 + $0x790] sm:$0xff]   ;;  %v5242_v22 = vld [vmem:[%s6782_s0 + $0x788] sm:$0xff]   ;;  %v6398_v27 = vpop.permute.xlu0 %590  ;;  %v5243_v29 = vld [vmem:[%s6782_s0 + $0x740] sm:$0xff]  }
  0xf3   :  { %v4321_v17 = vpop.f32.mrf.mxu0  ;;  %3323 = vadd.xlane.f32.xlu1 %v3322_v32  ;;  %4900 = vmatpush3.bf16.msra.mxu1 %v5230_v40  ;;  %v4360_v36 = vadd.f32 %v4359_v3, %v4358_v59  ;;  %v5237_v59 = vld [vmem:[%s6782_s0 + $0x710] sm:$0xff]   ;;  %v5244_v39 = vld [vmem:[%s6782_s0 + $0x7c0] sm:$0xff]  }
  0xf4   :  { %v4361_v20 = vpop.f32.mrf.mxu1  ;;  %4861 = vmatprep.subr.bf16.mxu0 %v5231_v41  ;;  %v3256_v45 = vmax.f32 %v978_v44, 0.0  ;;  %v916_v47 = vadd.f32 %v4320_v30, %v6348_v50  ;;  %4901 = vmatprep.subr.bf16.mxu1 %v5232_v35  ;;  %v5263_v35 = vld [vmem:[%s6783_s1 + $0x4] ss:$16 sps:$4 sm:$0xff]  }
  0xf5   :  { %v4322_v25 = vpop.f32.mrf.mxu0  ;;  %2851 = vmatmul.mubr.bf16.gmra.mxu0 %v6092_v34 }
  0xf6   :  { %v4362_v38 = vpop.f32.mrf.mxu1  ;;  %v4323_v7 = vadd.f32 %v4322_v25, %v4321_v17  ;;  %2916 = vmatmul.mubr.bf16.gmra.mxu1 %v6101_v42  ;;  %4862 = vmatpush3.bf16.msra.mxu0 %v5233_v52  ;;  %v3325_v57 = vsel %vm3318_vm0, %v3256_v45, 0.0  ;;  %v981_v58 = vadd.f32 %v4360_v36, %v916_v47  ;;  %v5241_v17 = vld [vmem:[%s6782_s0 + $0x708] sm:$0xff]   ;;  %v5246_v36 = vld [vmem:[%s6782_s0 + $0x780] sm:$0xff]  }
  0xf7   :  { %v4324_v33 = vpop.f32.mrf.mxu0  ;;  %4902 = vmatpush3.bf16.msra.mxu1 %v5234_v48  ;;  %3326 = vadd.xlane.f32.xlu1 %v3325_v57  ;;  %v4363_v14 = vadd.f32 %v4362_v38, %v4361_v20  ;;  %v5264_v52 = vld [vmem:[%s6783_s1 + $0xc] ss:$16 sps:$4 sm:$0xff]  }
  0xf8   :  { %v4364_v43 = vpop.f32.mrf.mxu1  ;;  %4863 = vmatprep.subr.bf16.mxu0 %v5235_v56  ;;  %2858 = vmatprep.mubr.bf16.mxu0 %v6113_v49  ;;  %v3257_v0 = vmax.f32 %v981_v58, 0.0  ;;  %v921_v6 = vadd.f32 %v4323_v7, %v6366_v61 }
  0xf9   :  { %v4325_v53 = vpop.f32.mrf.mxu0  ;;  %4903 = vmatprep.subr.bf16.mxu1 %v5236_v62  ;;  %2923 = vmatprep.mubr.bf16.mxu1 %v6122_v51 }
  0xfa   :  { %v4365_v4 = vpop.f32.mrf.mxu1  ;;  %v4326_v63 = vadd.f32 %v4325_v53, %v4324_v33  ;;  %4864 = vmatpush3.bf16.msra.mxu0 %v5237_v59  ;;  %v3328_v3 = vsel %vm3318_vm0, %v3257_v0, 0.0  ;;  %v986_v9 = vadd.f32 %v4363_v14, %v921_v6 }
  0xfb   :  { %v4327_v60 = vpop.f32.mrf.mxu0  ;;  %4904 = vmatpush3.bf16.msra.mxu1 %v5238_v1  ;;  %v4366_v10 = vadd.f32 %v4365_v4, %v4364_v43  ;;  %3329 = vadd.xlane.f32.xlu1 %v3328_v3  ;;  %v5245_v43 = vld [vmem:[%s6782_s0 + $0x700] sm:$0xff]  }
  0xfc   :  { %v4367_v16 = vpop.f32.mrf.mxu1  ;;  %v924_v15 = vadd.f32 %v4326_v63, %v6380_v19  ;;  %4865 = vmatprep.subr.bf16.mxu0 %v5239_v2  ;;  %v3258_v20 = vmax.f32 %v986_v9, 0.0  ;;  %4905 = vmatprep.subr.bf16.mxu1 %v5240_v11 }
  0xfd   :  { %v4328_v8 = vpop.f32.mrf.mxu0  ;;  %2859 = vmatmul.mubr.bf16.gmra.mxu0 %v6140_v46 }
  0xfe   :  { %v4329_v12 = vadd.f32 %v4328_v8, %v4327_v60  ;;  %v4368_v13 = vpop.f32.mrf.mxu1  ;;  %v989_v25 = vadd.f32 %v4366_v10, %v924_v15  ;;  %2924 = vmatmul.mubr.bf16.gmra.mxu1 %v6149_v54  ;;  %4866 = vmatpush3.bf16.msra.mxu0 %v5241_v17  ;;  %v3331_v30 = vsel %vm3318_vm0, %v3258_v20, 0.0 }
  0xff   :  { %v4330_v18 = vpop.f32.mrf.mxu0  ;;  %4906 = vmatpush3.bf16.msra.mxu1 %v5242_v22  ;;  %v4369_v38 = vadd.f32 %v4368_v13, %v4367_v16  ;;  %3332 = vadd.xlane.f32.xlu0 %v3331_v30 }
 0x100   :  { %v4370_v24 = vpop.f32.mrf.mxu1  ;;  %v3259_v33 = vmax.f32 %v989_v25, 0.0  ;;  %v929_v41 = vadd.f32 %v4329_v12, %v6398_v27  ;;  %4867 = vmatprep.subr.bf16.mxu0 %v5243_v29  ;;  %3156 = vmatprep.mubr.bf16.mxu0 %v5263_v35 }
 0x101   :  { %v4331_v32 = vpop.f32.mrf.mxu0  ;;  %4907 = vmatprep.subr.bf16.mxu1 %v5244_v39  ;;  %3221 = vmatprep.mubr.bf16.mxu1 %v5264_v52 }
 0x102   :  { %v4371_v40 = vpop.f32.mrf.mxu1  ;;  %v4332_v44 = vadd.f32 %v4331_v32, %v4330_v18  ;;  %v3334_v7 = vsel %vm3318_vm0, %v3259_v33, 0.0  ;;  %v994_v45 = vadd.f32 %v4369_v38, %v929_v41 }
 0x103   :  { %10 = vsyncpa [#allocation3], 0  ;;  %4868 = vmatpush3.bf16.msra.mxu0 %v5245_v43  ;;  %4908 = vmatpush3.bf16.msra.mxu1 %v5246_v36  ;;  %v4372_v56 = vadd.f32 %v4371_v40, %v4370_v24  ;;  %v5265_v62 = vld [vmem:[%s6783_s1] ss:$16 sps:$4 sm:$0xff]   ;;  %v5266_v60 = vld [vmem:[%s6783_s1 + $0x8] ss:$16 sps:$4 sm:$0xff]  }
 0x104   :  { %v4389_v53 = vpop.f32.mrf.mxu0  ;;  %v6421_v4 = vpop.permute.xlu1 %595  ;;  %3335 = vadd.xlane.f32.xlu0 %v3334_v7  ;;  %v3260_v48 = vmax.f32 %v994_v45, 0.0  ;;  %v5267_v3 = vld [vmem:[%s6783_s1 + $0x24] ss:$16 sps:$4 sm:$0xff]   ;;  %vm3601_vm1 = vcmask 130112   ;;  %vm3608_vm2 = vcmask 195712   ;;  %vm3615_vm3 = vcmask 261312  }
 0x105   :  { %v4429_v47 = vpop.f32.mrf.mxu1  ;;  %v932_v58 = vadd.f32 %v4332_v44, %v6421_v4  ;;  %vm3622_vm4 = vcmask 326912   ;;  %vm3629_vm5 = vcmask 392512   ;;  %vm3636_vm6 = vcmask 458112   ;;  %s5293_s23 = smov [#allocation2]  }
 0x106   :  { %v4390_v57 = vpop.f32.mrf.mxu0  ;;  %3157 = vmatmul.mubr.bf16.vlgmr.msra.gmra.mxu0 %v5265_v62  ;;  %v3337_v59 = vsel %vm3318_vm0, %v3260_v48, 0.0  ;;  %3222 = vmatmul.mubr.bf16.vlgmr.msra.gmra.mxu1 %v5266_v60  ;;  %vm3643_vm7 = vcmask 523712   ;;  %vm3918_vm8 = vcmask 1041409   ;;  %vm3920_vm9 = vcmask 1042434   ;;  %s4011_s24 = sshll.u32 %s5293_s23, 4  ;;  %s4012_s24 = int_to_ptr.vmem [resolvable:$true] %s4011_s24 }
 0x107   :  { %v4391_v63 = vadd.f32 %v4390_v57, %v4389_v53  ;;  %v4430_v14 = vpop.f32.mrf.mxu1  ;;  %3338 = vadd.xlane.f32.xlu1 %v3337_v59  ;;  %v997_v0 = vadd.f32 %v4372_v56, %v932_v58  ;;  %3164 = vmatprep.mubr.bf16.mxu0 %v5267_v3  ;;  %vm3922_vm10 = vcmask 1043459   ;;  %vm5292_vm11 = vmmov 0   ;;  %s5268_s25 = scalar_lea.vmem %s4012_s24, 128  ;;  %p5273_p1 = scmp.lt.s32.totalorder %s4012_s24, %s4012_s24 }
 0x108   :  { %v4392_v16 = vpop.f32.mrf.mxu0  ;;  %v4431_v1 = vadd.f32 %v4430_v14, %v4429_v47  ;;  %3229 = vmatprep.mubr.bf16.mxu1 %v6026_v21  ;;  %vm3924_vm12 = vcmask 1044484   ;;  %vm3926_vm13 = vcmask 1045509   ;;  %vm3928_vm14 = vcmask 1046534   ;;  %p5269_p0 = scmp.ne.s32.totalorder %s4012_s24, %s5268_s25  ;;  %p5274_p2 = scmp.lt.s32.totalorder %s5268_s25, %s5268_s25 }
 0x109   :  { %v1227_v6 = vadd.f32 %v4391_v63, %v6287_v55  ;;  %v4432_v2 = vpop.f32.mrf.mxu1  ;;  %v3261_v9 = vmax.f32 %v997_v0, 0.0  ;;  %vm3930_vm15 = vcmask 1047559  }
 0x10a   :  { %v4393_v8 = vpop.f32.mrf.mxu0  ;;  %p5275_p3 = por %p5274_p2, %p5273_p1 }
 0x10b   :  { %v1292_v10 = vadd.f32 %v4431_v1, %v1227_v6  ;;  %v4394_v11 = vadd.f32 %v4393_v8, %v4392_v16  ;;  %v4433_v12 = vpop.f32.mrf.mxu1  ;;  %v3340_v15 = vsel %vm3318_vm0, %v3261_v9, 0.0 }
 0x10c   :  { %v4395_v13 = vpop.f32.mrf.mxu0  ;;  %v4434_v18 = vadd.f32 %v4433_v12, %v4432_v2  ;;  %3341 = vadd.xlane.f32.xlu1 %v3340_v15  ;;  %p5276_p4 = pnand %p5275_p3, %p5269_p0 }
 0x10d   :  { %v1230_v17 = vadd.f32 %v4394_v11, %v6309_v5  ;;  %v4435_v20 = vpop.f32.mrf.mxu1  ;;  %v3262_v22 = vmax.f32 %v1292_v10, 0.0 }
 0x10e   :  { %v4396_v24 = vpop.f32.mrf.mxu0  ;;  %3165 = vmatmul.mubr.bf16.gmra.mxu0 %v6044_v26  ;;  %3230 = vmatmul.mubr.bf16.gmra.mxu1 %v6053_v28 }
 0x10f   :  { %v1295_v25 = vadd.f32 %v4434_v18, %v1230_v17  ;;  %v4397_v29 = vadd.f32 %v4396_v24, %v4395_v13  ;;  %v4436_v21 = vpop.f32.mrf.mxu1  ;;  %v3343_v30 = vsel %vm3318_vm0, %v3262_v22, 0.0  ;;  %3172 = vmatprep.mubr.bf16.mxu0 %v6065_v31  ;;  %3237 = vmatprep.mubr.bf16.mxu1 %v6074_v37 }
 0x110   :  { %v4398_v32 = vpop.f32.mrf.mxu0  ;;  %3344 = vadd.xlane.f32.xlu0 %v3343_v30  ;;  %v4437_v39 = vadd.f32 %v4436_v21, %v4435_v20 }
 0x111   :  { %v1235_v38 = vadd.f32 %v4397_v29, %v6330_v23  ;;  %v4438_v40 = vpop.f32.mrf.mxu1  ;;  %v3263_v33 = vmax.f32 %v1295_v25, 0.0 }
 0x112   :  { %v4399_v41 = vpop.f32.mrf.mxu0 }
 0x113   :  { %v1300_v43 = vadd.f32 %v4437_v39, %v1235_v38  ;;  %v4400_v26 = vadd.f32 %v4399_v41, %v4398_v32  ;;  %v4439_v44 = vpop.f32.mrf.mxu1  ;;  %v3346_v35 = vsel %vm3318_vm0, %v3263_v33, 0.0 }
 0x114   :  { %v4401_v36 = vpop.f32.mrf.mxu0  ;;  %3347 = vadd.xlane.f32.xlu0 %v3346_v35  ;;  %v4440_v52 = vadd.f32 %v4439_v44, %v4438_v40 }
 0x115   :  { %v1238_v28 = vadd.f32 %v4400_v26, %v6348_v50  ;;  %v4441_v7 = vpop.f32.mrf.mxu1  ;;  %v3264_v45 = vmax.f32 %v1300_v43, 0.0 }
 0x116   :  { %v4402_v53 = vpop.f32.mrf.mxu0  ;;  %3173 = vmatmul.mubr.bf16.gmra.mxu0 %v6092_v34  ;;  %3238 = vmatmul.mubr.bf16.gmra.mxu1 %v6101_v42 }
 0x117   :  { %v1303_v47 = vadd.f32 %v4440_v52, %v1238_v28  ;;  %v4403_v31 = vadd.f32 %v4402_v53, %v4401_v36  ;;  %v4442_v37 = vpop.f32.mrf.mxu1  ;;  %v3349_v48 = vsel %vm3318_vm0, %v3264_v45, 0.0  ;;  %3180 = vmatprep.mubr.bf16.mxu0 %v6113_v49  ;;  %3245 = vmatprep.mubr.bf16.mxu1 %v6122_v51 }
 0x118   :  { %v4404_v56 = vpop.f32.mrf.mxu0  ;;  %3350 = vadd.xlane.f32.xlu0 %v3349_v48  ;;  %v4443_v58 = vadd.f32 %v4442_v37, %v4441_v7 }
 0x119   :  { %v1243_v57 = vadd.f32 %v4403_v31, %v6366_v61  ;;  %v4444_v62 = vpop.f32.mrf.mxu1  ;;  %v3265_v63 = vmax.f32 %v1303_v47, 0.0 }
 0x11a   :  { %v4405_v14 = vpop.f32.mrf.mxu0 }
 0x11b   :  { %v1308_v59 = vadd.f32 %v4443_v58, %v1243_v57  ;;  %v4406_v34 = vadd.f32 %v4405_v14, %v4404_v56  ;;  %v4445_v60 = vpop.f32.mrf.mxu1  ;;  %v3352_v16 = vsel %vm3318_vm0, %v3265_v63, 0.0 }
 0x11c   :  { %v4407_v0 = vpop.f32.mrf.mxu0  ;;  %3353 = vadd.xlane.f32.xlu0 %v3352_v16  ;;  %v4446_v6 = vadd.f32 %v4445_v60, %v4444_v62 }
 0x11d   :  { %v1246_v42 = vadd.f32 %v4406_v34, %v6380_v19  ;;  %v4447_v1 = vpop.f32.mrf.mxu1  ;;  %v3266_v2 = vmax.f32 %v1308_v59, 0.0 }
 0x11e   :  { %v4408_v3 = vpop.f32.mrf.mxu0  ;;  %3181 = vmatmul.mubr.bf16.gmra.mxu0 %v6140_v46  ;;  %3246 = vmatmul.mubr.bf16.gmra.mxu1 %v6149_v54 }
 0x11f   :  { %v1311_v8 = vadd.f32 %v4446_v6, %v1246_v42  ;;  %v4409_v49 = vadd.f32 %v4408_v3, %v4407_v0  ;;  %v4448_v51 = vpop.f32.mrf.mxu1  ;;  %v3355_v9 = vsel %vm3318_vm0, %v3266_v2, 0.0 }
 0x120   :  { %v4410_v10 = vpop.f32.mrf.mxu0  ;;  %3356 = vadd.xlane.f32.xlu1 %v3355_v9  ;;  %v4449_v12 = vadd.f32 %v4448_v51, %v4447_v1 }
 0x121   :  { %v1251_v11 = vadd.f32 %v4409_v49, %v6398_v27  ;;  %v4450_v13 = vpop.f32.mrf.mxu1  ;;  %v3267_v15 = vmax.f32 %v1311_v8, 0.0 }
 0x122   :  { %v4411_v17 = vpop.f32.mrf.mxu0 }
 0x123   :  { %v1316_v18 = vadd.f32 %v4449_v12, %v1251_v11  ;;  %v4412_v20 = vadd.f32 %v4411_v17, %v4410_v10  ;;  %v4451_v22 = vpop.f32.mrf.mxu1  ;;  %v3358_v24 = vsel %vm3318_vm0, %v3267_v15, 0.0 }
 0x124   :  { %v4469_v46 = vpop.f32.mrf.mxu0  ;;  %3359 = vadd.xlane.f32.xlu1 %v3358_v24  ;;  %v4452_v29 = vadd.f32 %v4451_v22, %v4450_v13 }
 0x125   :  { %v1254_v25 = vadd.f32 %v4412_v20, %v6421_v4  ;;  %v4509_v21 = vpop.f32.mrf.mxu1  ;;  %v3268_v54 = vmax.f32 %v1316_v18, 0.0 }
 0x126   :  { %v4470_v30 = vpop.f32.mrf.mxu0 }
 0x127   :  { %v1319_v32 = vadd.f32 %v4452_v29, %v1254_v25  ;;  %v4471_v38 = vadd.f32 %v4470_v30, %v4469_v46  ;;  %v4510_v39 = vpop.f32.mrf.mxu1  ;;  %v3361_v40 = vsel %vm3318_vm0, %v3268_v54, 0.0 }
 0x128   :  { %v4472_v33 = vpop.f32.mrf.mxu0  ;;  %3362 = vadd.xlane.f32.xlu0 %v3361_v40  ;;  %v4511_v43 = vadd.f32 %v4510_v39, %v4509_v21 }
 0x129   :  { %v1549_v41 = vadd.f32 %v4471_v38, %v6287_v55  ;;  %v4512_v26 = vpop.f32.mrf.mxu1  ;;  %v3269_v44 = vmax.f32 %v1319_v32, 0.0 }
 0x12a   :  { %v4473_v35 = vpop.f32.mrf.mxu0 }
 0x12b   :  { %v1614_v36 = vadd.f32 %v4511_v43, %v1549_v41  ;;  %v4474_v28 = vadd.f32 %v4473_v35, %v4472_v33  ;;  %v4513_v52 = vpop.f32.mrf.mxu1  ;;  %v3364_v7 = vsel %vm3318_vm0, %v3269_v44, 0.0 }
 0x12c   :  { %v4475_v45 = vpop.f32.mrf.mxu0  ;;  %3365 = vadd.xlane.f32.xlu0 %v3364_v7  ;;  %v4514_v47 = vadd.f32 %v4513_v52, %v4512_v26 }
 0x12d   :  { %v1552_v53 = vadd.f32 %v4474_v28, %v6309_v5  ;;  %v4515_v31 = vpop.f32.mrf.mxu1  ;;  %v3270_v37 = vmax.f32 %v1614_v36, 0.0 }
 0x12e   :  { %v4476_v48 = vpop.f32.mrf.mxu0 }
 0x12f   :  { %v1617_v56 = vadd.f32 %v4514_v47, %v1552_v53  ;;  %v4477_v57 = vadd.f32 %v4476_v48, %v4475_v45  ;;  %v4516_v58 = vpop.f32.mrf.mxu1  ;;  %v3367_v62 = vsel %vm3318_vm0, %v3270_v37, 0.0 }
 0x130   :  { %v4478_v63 = vpop.f32.mrf.mxu0  ;;  %3368 = vadd.xlane.f32.xlu1 %v3367_v62  ;;  %v4517_v59 = vadd.f32 %v4516_v58, %v4515_v31 }
 0x131   :  { %v1557_v14 = vadd.f32 %v4477_v57, %v6330_v23  ;;  %v4518_v34 = vpop.f32.mrf.mxu1  ;;  %v3271_v60 = vmax.f32 %v1617_v56, 0.0 }
 0x132   :  { %v4479_v16 = vpop.f32.mrf.mxu0 }
 0x133   :  { %v1622_v0 = vadd.f32 %v4517_v59, %v1557_v14  ;;  %v4480_v42 = vadd.f32 %v4479_v16, %v4478_v63  ;;  %v4519_v6 = vpop.f32.mrf.mxu1  ;;  %v3370_v1 = vsel %vm3318_vm0, %v3271_v60, 0.0 }
 0x134   :  { %v4481_v2 = vpop.f32.mrf.mxu0  ;;  %3371 = vadd.xlane.f32.xlu0 %v3370_v1  ;;  %v4520_v8 = vadd.f32 %v4519_v6, %v4518_v34 }
 0x135   :  { %v1560_v3 = vadd.f32 %v4480_v42, %v6348_v50  ;;  %v4521_v49 = vpop.f32.mrf.mxu1  ;;  %v3272_v51 = vmax.f32 %v1622_v0, 0.0 }
 0x136   :  { %v4482_v9 = vpop.f32.mrf.mxu0 }
 0x137   :  { %v1625_v10 = vadd.f32 %v4520_v8, %v1560_v3  ;;  %v4483_v11 = vadd.f32 %v4482_v9, %v4481_v2  ;;  %v4522_v12 = vpop.f32.mrf.mxu1  ;;  %v3373_v13 = vsel %vm3318_vm0, %v3272_v51, 0.0 }
 0x138   :  { %v4484_v15 = vpop.f32.mrf.mxu0  ;;  %3374 = vadd.xlane.f32.xlu1 %v3373_v13  ;;  %v4523_v18 = vadd.f32 %v4522_v12, %v4521_v49 }
 0x139   :  { %v1565_v17 = vadd.f32 %v4483_v11, %v6366_v61  ;;  %v4524_v20 = vpop.f32.mrf.mxu1  ;;  %v3273_v22 = vmax.f32 %v1625_v10, 0.0 }
 0x13a   :  { %v4485_v24 = vpop.f32.mrf.mxu0 }
 0x13b   :  { %v1630_v46 = vadd.f32 %v4523_v18, %v1565_v17  ;;  %v4486_v25 = vadd.f32 %v4485_v24, %v4484_v15  ;;  %v4525_v29 = vpop.f32.mrf.mxu1  ;;  %v3376_v21 = vsel %vm3318_vm0, %v3273_v22, 0.0 }
 0x13c   :  { %v4487_v54 = vpop.f32.mrf.mxu0  ;;  %3377 = vadd.xlane.f32.xlu0 %v3376_v21  ;;  %v4526_v32 = vadd.f32 %v4525_v29, %v4524_v20 }
 0x13d   :  { %v1568_v30 = vadd.f32 %v4486_v25, %v6380_v19  ;;  %v4527_v38 = vpop.f32.mrf.mxu1  ;;  %v3274_v39 = vmax.f32 %v1630_v46, 0.0 }
 0x13e   :  { %v4488_v40 = vpop.f32.mrf.mxu0 }
 0x13f   :  { %v1633_v33 = vadd.f32 %v4526_v32, %v1568_v30  ;;  %v4489_v41 = vadd.f32 %v4488_v40, %v4487_v54  ;;  %v4528_v43 = vpop.f32.mrf.mxu1  ;;  %v3379_v26 = vsel %vm3318_vm0, %v3274_v39, 0.0 }
 0x140   :  { %v4490_v44 = vpop.f32.mrf.mxu0  ;;  %3380 = vadd.xlane.f32.xlu0 %v3379_v26  ;;  %v4529_v36 = vadd.f32 %v4528_v43, %v4527_v38 }
 0x141   :  { %v1573_v35 = vadd.f32 %v4489_v41, %v6398_v27  ;;  %v4530_v28 = vpop.f32.mrf.mxu1  ;;  %v3275_v52 = vmax.f32 %v1633_v33, 0.0 }
 0x142   :  { %v4491_v7 = vpop.f32.mrf.mxu0 }
 0x143   :  { %v1638_v45 = vadd.f32 %v4529_v36, %v1573_v35  ;;  %v4492_v53 = vadd.f32 %v4491_v7, %v4490_v44  ;;  %v4531_v47 = vpop.f32.mrf.mxu1  ;;  %v3382_v31 = vsel %vm3318_vm0, %v3275_v52, 0.0 }
 0x144   :  { %3383 = vadd.xlane.f32.xlu1 %v3382_v31  ;;  %v4532_v48 = vadd.f32 %v4531_v47, %v4530_v28 }
 0x145   :  { %v1576_v37 = vadd.f32 %v4492_v53, %v6421_v4  ;;  %v3276_v56 = vmax.f32 %v1638_v45, 0.0  ;;  %v4549_v57 = vpop.f32.mrf.mxu0 }
 0x146   :  { %v4589_v62 = vpop.f32.mrf.mxu1 }
 0x147   :  { %v1641_v58 = vadd.f32 %v4532_v48, %v1576_v37  ;;  %v3385_v63 = vsel %vm3318_vm0, %v3276_v56, 0.0  ;;  %v4550_v14 = vpop.f32.mrf.mxu0 }
 0x148   :  { %3386 = vadd.xlane.f32.xlu1 %v3385_v63  ;;  %v4551_v59 = vadd.f32 %v4550_v14, %v4549_v57  ;;  %v4590_v34 = vpop.f32.mrf.mxu1 }
 0x149   :  { %v3277_v60 = vmax.f32 %v1641_v58, 0.0  ;;  %v4552_v16 = vpop.f32.mrf.mxu0  ;;  %v4591_v42 = vadd.f32 %v4590_v34, %v4589_v62 }
 0x14a   :  { %v1871_v0 = vadd.f32 %v4551_v59, %v6287_v55  ;;  %v4592_v6 = vpop.f32.mrf.mxu1 }
 0x14b   :  { %v3388_v1 = vsel %vm3318_vm0, %v3277_v60, 0.0  ;;  %v4553_v2 = vpop.f32.mrf.mxu0 }
 0x14c   :  { %3389 = vadd.xlane.f32.xlu0 %v3388_v1  ;;  %v1936_v3 = vadd.f32 %v4591_v42, %v1871_v0  ;;  %v4554_v8 = vadd.f32 %v4553_v2, %v4552_v16  ;;  %v4593_v49 = vpop.f32.mrf.mxu1 }
 0x14d   :  { %v4555_v51 = vpop.f32.mrf.mxu0  ;;  %v4594_v10 = vadd.f32 %v4593_v49, %v4592_v6 }
 0x14e   :  { %v1874_v9 = vadd.f32 %v4554_v8, %v6309_v5  ;;  %v4595_v11 = vpop.f32.mrf.mxu1  ;;  %v3278_v12 = vmax.f32 %v1936_v3, 0.0 }
 0x14f   :  { %v4556_v13 = vpop.f32.mrf.mxu0 }
 0x150   :  { %v1939_v15 = vadd.f32 %v4594_v10, %v1874_v9  ;;  %v4557_v17 = vadd.f32 %v4556_v13, %v4555_v51  ;;  %v4596_v18 = vpop.f32.mrf.mxu1  ;;  %v3391_v20 = vsel %vm3318_vm0, %v3278_v12, 0.0 }
 0x151   :  { %v4558_v22 = vpop.f32.mrf.mxu0  ;;  %3392 = vadd.xlane.f32.xlu0 %v3391_v20  ;;  %v4597_v46 = vadd.f32 %v4596_v18, %v4595_v11 }
 0x152   :  { %v1879_v24 = vadd.f32 %v4557_v17, %v6330_v23  ;;  %v4598_v25 = vpop.f32.mrf.mxu1  ;;  %v3279_v29 = vmax.f32 %v1939_v15, 0.0 }
 0x153   :  { %v4559_v21 = vpop.f32.mrf.mxu0 }
 0x154   :  { %v1944_v54 = vadd.f32 %v4597_v46, %v1879_v24  ;;  %v4560_v30 = vadd.f32 %v4559_v21, %v4558_v22  ;;  %v4599_v32 = vpop.f32.mrf.mxu1  ;;  %v3394_v38 = vsel %vm3318_vm0, %v3279_v29, 0.0 }
 0x155   :  { %v4561_v39 = vpop.f32.mrf.mxu0  ;;  %3395 = vadd.xlane.f32.xlu1 %v3394_v38  ;;  %v4600_v33 = vadd.f32 %v4599_v32, %v4598_v25 }
 0x156   :  { %v1882_v40 = vadd.f32 %v4560_v30, %v6348_v50  ;;  %v4601_v41 = vpop.f32.mrf.mxu1  ;;  %v3280_v43 = vmax.f32 %v1944_v54, 0.0 }
 0x157   :  { %v4562_v26 = vpop.f32.mrf.mxu0 }
 0x158   :  { %v1947_v44 = vadd.f32 %v4600_v33, %v1882_v40  ;;  %v4563_v35 = vadd.f32 %v4562_v26, %v4561_v39  ;;  %v4602_v36 = vpop.f32.mrf.mxu1  ;;  %v3397_v28 = vsel %vm3318_vm0, %v3280_v43, 0.0  ;;  %v3590_v26 = vlaneseq }
 0x159   :  { %v4564_v52 = vpop.f32.mrf.mxu0  ;;  %3398 = vadd.xlane.f32.xlu1 %v3397_v28  ;;  %v4603_v45 = vadd.f32 %v4602_v36, %v4601_v41 }
 0x15a   :  { %v1887_v7 = vadd.f32 %v4563_v35, %v6366_v61  ;;  %v4604_v53 = vpop.f32.mrf.mxu1  ;;  %v3281_v47 = vmax.f32 %v1947_v44, 0.0 }
 0x15b   :  { %v4565_v31 = vpop.f32.mrf.mxu0 }
 0x15c   :  { %v1952_v37 = vadd.f32 %v4603_v45, %v1887_v7  ;;  %v4566_v48 = vadd.f32 %v4565_v31, %v4564_v52  ;;  %v4605_v56 = vpop.f32.mrf.mxu1  ;;  %v3400_v57 = vsel %vm3318_vm0, %v3281_v47, 0.0 }
 0x15d   :  { %v4567_v58 = vpop.f32.mrf.mxu0  ;;  %3401 = vadd.xlane.f32.xlu1 %v3400_v57  ;;  %v4606_v63 = vadd.f32 %v4605_v56, %v4604_v53 }
 0x15e   :  { %v1890_v62 = vadd.f32 %v4566_v48, %v6380_v19  ;;  %v4607_v14 = vpop.f32.mrf.mxu1  ;;  %v3282_v59 = vmax.f32 %v1952_v37, 0.0  ;;  %v6497_v37 = vand.u32 127, %v3590_v26 }
 0x15f   :  { %v4568_v34 = vpop.f32.mrf.mxu0 }
 0x160   :  { %v1955_v60 = vadd.f32 %v4606_v63, %v1890_v62  ;;  %v4569_v16 = vadd.f32 %v4568_v34, %v4567_v58  ;;  %v4608_v0 = vpop.f32.mrf.mxu1  ;;  %v3403_v42 = vsel %vm3318_vm0, %v3282_v59, 0.0  ;;  %v6500_v63 = vshrl.u32 %v3590_v26, 7 }
 0x161   :  { %v4570_v6 = vpop.f32.mrf.mxu0  ;;  %3404 = vadd.xlane.f32.xlu0 %v3403_v42  ;;  %v4609_v2 = vadd.f32 %v4608_v0, %v4607_v14  ;;  %v3596_v14 = vadd.s32 4294967288, %v6497_v37 }
 0x162   :  { %v1895_v1 = vadd.f32 %v4569_v16, %v6398_v27  ;;  %v4610_v3 = vpop.f32.mrf.mxu1  ;;  %v3283_v8 = vmax.f32 %v1955_v60, 0.0 }
 0x163   :  { %v4571_v49 = vpop.f32.mrf.mxu0 }
 0x164   :  { %v1960_v51 = vadd.f32 %v4609_v2, %v1895_v1  ;;  %v4572_v9 = vadd.f32 %v4571_v49, %v4570_v6  ;;  %v4611_v10 = vpop.f32.mrf.mxu1  ;;  %v3406_v11 = vsel %vm3318_vm0, %v3283_v8, 0.0  ;;  %v6507_v8 = vsub.s32 %v6497_v37, %v6500_v63 }
 0x165   :  { %3407 = vadd.xlane.f32.xlu0 %v3406_v11  ;;  %v4612_v13 = vadd.f32 %v4611_v10, %v4610_v3  ;;  %v4629_v15 = vpop.f32.mrf.mxu0  ;;  %v6510_v49 = vsub.s32 %v3596_v14, %v6500_v63 }
 0x166   :  { %v1898_v12 = vadd.f32 %v4572_v9, %v6421_v4  ;;  %v3284_v17 = vmax.f32 %v1960_v51, 0.0  ;;  %v4669_v18 = vpop.f32.mrf.mxu1 }
 0x167   :  { %v4630_v22 = vpop.f32.mrf.mxu0 }
 0x168   :  { %v1963_v20 = vadd.f32 %v4612_v13, %v1898_v12  ;;  %v3409_v24 = vsel %vm3318_vm0, %v3284_v17, 0.0  ;;  %v4631_v46 = vadd.f32 %v4630_v22, %v4629_v15  ;;  %v4670_v25 = vpop.f32.mrf.mxu1  ;;  %v3603_v15 = vadd.s32 4294967280, %v6497_v37 }
 0x169   :  { %3410 = vadd.xlane.f32.xlu1 %v3409_v24  ;;  %v4632_v29 = vpop.f32.mrf.mxu0  ;;  %v4671_v30 = vadd.f32 %v4670_v25, %v4669_v18 }
 0x16a   :  { %v3285_v21 = vmax.f32 %v1963_v20, 0.0  ;;  %v2193_v54 = vadd.f32 %v4631_v46, %v6287_v55  ;;  %v4672_v32 = vpop.f32.mrf.mxu1 }
 0x16b   :  { %v4633_v38 = vpop.f32.mrf.mxu0 }
 0x16c   :  { %v3412_v39 = vsel %vm3318_vm0, %v3285_v21, 0.0  ;;  %v2258_v40 = vadd.f32 %v4671_v30, %v2193_v54  ;;  %v4634_v33 = vadd.f32 %v4633_v38, %v4632_v29  ;;  %v4673_v41 = vpop.f32.mrf.mxu1 }
 0x16d   :  { %3413 = vadd.xlane.f32.xlu0 %v3412_v39  ;;  %v4635_v43 = vpop.f32.mrf.mxu0  ;;  %v4674_v35 = vadd.f32 %v4673_v41, %v4672_v32 }
 0x16e   :  { %v2196_v44 = vadd.f32 %v4634_v33, %v6309_v5  ;;  %v4675_v36 = vpop.f32.mrf.mxu1  ;;  %v3286_v28 = vmax.f32 %v2258_v40, 0.0  ;;  %v6520_v40 = vsub.s32 %v3603_v15, %v6500_v63  ;;  %v3610_v33 = vadd.s32 4294967272, %v6497_v37 }
 0x16f   :  { %v4636_v52 = vpop.f32.mrf.mxu0 }
 0x170   :  { %v2261_v7 = vadd.f32 %v4674_v35, %v2196_v44  ;;  %v4637_v45 = vadd.f32 %v4636_v52, %v4635_v43  ;;  %v4676_v53 = vpop.f32.mrf.mxu1  ;;  %v3415_v47 = vsel %vm3318_vm0, %v3286_v28, 0.0 }
 0x171   :  { %v4638_v31 = vpop.f32.mrf.mxu0  ;;  %3416 = vadd.xlane.f32.xlu0 %v3415_v47  ;;  %v4677_v56 = vadd.f32 %v4676_v53, %v4675_v36 }
 0x172   :  { %v2201_v48 = vadd.f32 %v4637_v45, %v6330_v23  ;;  %v4678_v57 = vpop.f32.mrf.mxu1  ;;  %v3287_v58 = vmax.f32 %v2261_v7, 0.0 }
 0x173   :  { %v4639_v62 = vpop.f32.mrf.mxu0 }
 0x174   :  { %v2266_v59 = vadd.f32 %v4677_v56, %v2201_v48  ;;  %v4640_v34 = vadd.f32 %v4639_v62, %v4638_v31  ;;  %v4679_v60 = vpop.f32.mrf.mxu1  ;;  %v3418_v16 = vsel %vm3318_vm0, %v3287_v58, 0.0  ;;  %v6527_v31 = vsub.s32 %v3610_v33, %v6500_v63 }
 0x175   :  { %v4641_v0 = vpop.f32.mrf.mxu0  ;;  %3419 = vadd.xlane.f32.xlu1 %v3418_v16  ;;  %v4680_v6 = vadd.f32 %v4679_v60, %v4678_v57  ;;  %v3617_v48 = vadd.s32 4294967264, %v6497_v37 }
 0x176   :  { %v2204_v42 = vadd.f32 %v4640_v34, %v6348_v50  ;;  %v4681_v1 = vpop.f32.mrf.mxu1  ;;  %v3288_v2 = vmax.f32 %v2266_v59, 0.0 }
 0x177   :  { %v4642_v3 = vpop.f32.mrf.mxu0 }
 0x178   :  { %v2269_v51 = vadd.f32 %v4680_v6, %v2204_v42  ;;  %v4643_v9 = vadd.f32 %v4642_v3, %v4641_v0  ;;  %v4682_v10 = vpop.f32.mrf.mxu1  ;;  %v3421_v11 = vsel %vm3318_vm0, %v3288_v2, 0.0  ;;  %v3321_v12 = vpop.xlane.xlu0 %3320  ;;  %v6535_v2 = vsub.s32 %v3617_v48, %v6500_v63 }
 0x179   :  { %v4644_v13 = vpop.f32.mrf.mxu0  ;;  %3422 = vadd.xlane.f32.xlu0 %v3421_v11  ;;  %v4683_v18 = vadd.f32 %v4682_v10, %v4681_v1  ;;  %v3595_v46 = vrot.slane %v3321_v12, %v6507_v8  ;;  %v3624_v3 = vadd.s32 4294967256, %v6497_v37 }
 0x17a   :  { %v2209_v17 = vadd.f32 %v4643_v9, %v6366_v61  ;;  %v4684_v20 = vpop.f32.mrf.mxu1  ;;  %v3289_v22 = vmax.f32 %v2269_v51, 0.0 }
 0x17b   :  { %v4645_v25 = vpop.f32.mrf.mxu0 }
 0x17c   :  { %v3324_v24 = vpop.xlane.xlu1 %3323  ;;  %v2274_v21 = vadd.f32 %v4683_v18, %v2209_v17  ;;  %v4646_v54 = vadd.f32 %v4645_v25, %v4644_v13  ;;  %v4685_v30 = vpop.f32.mrf.mxu1  ;;  %v3424_v32 = vsel %vm3318_vm0, %v3289_v22, 0.0 }
 0x17d   :  { %v3600_v29 = vrot.slane %v3324_v24, %v6510_v49  ;;  %v4647_v38 = vpop.f32.mrf.mxu0  ;;  %3425 = vadd.xlane.f32.xlu1 %v3424_v32  ;;  %v4686_v43 = vadd.f32 %v4685_v30, %v4684_v20  ;;  %v3631_v24 = vadd.s32 4294967248, %v6497_v37 }
 0x17e   :  { %v2212_v41 = vadd.f32 %v4646_v54, %v6380_v19  ;;  %v4687_v26 = vpop.f32.mrf.mxu1  ;;  %v3290_v44 = vmax.f32 %v2274_v21, 0.0 }
 0x17f   :  { %v3602_v39 = vsel %vm3601_vm1, %v3600_v29, %v3595_v46  ;;  %v4648_v35 = vpop.f32.mrf.mxu0  ;;  %v6544_v29 = vsub.s32 %v3624_v3, %v6500_v63 }
 0x180   :  { %v2277_v36 = vadd.f32 %v4686_v43, %v2212_v41  ;;  %v4649_v28 = vadd.f32 %v4648_v35, %v4647_v38  ;;  %v4688_v52 = vpop.f32.mrf.mxu1  ;;  %v3427_v7 = vsel %vm3318_vm0, %v3290_v44, 0.0  ;;  %v3327_v45 = vpop.xlane.xlu1 %3326  ;;  %v6550_v35 = vsub.s32 %v3631_v24, %v6500_v63 }
 0x181   :  { %v4650_v53 = vpop.f32.mrf.mxu0  ;;  %3428 = vadd.xlane.f32.xlu1 %v3427_v7  ;;  %v3607_v47 = vrot.slane %v3327_v45, %v6520_v40  ;;  %v4689_v57 = vadd.f32 %v4688_v52, %v4687_v26  ;;  %v3638_v52 = vadd.s32 4294967240, %v6497_v37 }
 0x182   :  { %v2217_v56 = vadd.f32 %v4649_v28, %v6398_v27  ;;  %v4690_v58 = vpop.f32.mrf.mxu1  ;;  %v3291_v62 = vmax.f32 %v2277_v36, 0.0 }
 0x183   :  { %v3609_v14 = vsel %vm3608_vm2, %v3607_v47, %v3602_v39  ;;  %v4651_v59 = vpop.f32.mrf.mxu0  ;;  %v6559_v37 = vsub.s32 %v3638_v52, %v6500_v63 }
 0x184   :  { %v2282_v34 = vadd.f32 %v4689_v57, %v2217_v56  ;;  %v4652_v60 = vadd.f32 %v4651_v59, %v4650_v53  ;;  %v4691_v16 = vpop.f32.mrf.mxu1  ;;  %v3430_v0 = vsel %vm3318_vm0, %v3291_v62, 0.0  ;;  %v3330_v42 = vpop.xlane.xlu1 %3329 }
 0x185   :  { %v4709_v6 = vpop.f32.mrf.mxu0  ;;  %3431 = vadd.xlane.f32.xlu0 %v3430_v0  ;;  %v3614_v1 = vrot.slane %v3330_v42, %v6527_v31  ;;  %v4692_v9 = vadd.f32 %v4691_v16, %v4690_v58 }
 0x186   :  { %v2220_v51 = vadd.f32 %v4652_v60, %v6421_v4  ;;  %v4749_v10 = vpop.f32.mrf.mxu1  ;;  %v3292_v11 = vmax.f32 %v2282_v34, 0.0 }
 0x187   :  { %v3616_v12 = vsel %vm3615_vm3, %v3614_v1, %v3609_v14  ;;  %v4710_v13 = vpop.f32.mrf.mxu0 }
 0x188   :  { %v2285_v15 = vadd.f32 %v4692_v9, %v2220_v51  ;;  %v4711_v17 = vadd.f32 %v4710_v13, %v4709_v6  ;;  %v4750_v18 = vpop.f32.mrf.mxu1  ;;  %v3433_v20 = vsel %vm3318_vm0, %v3292_v11, 0.0  ;;  %v3333_v22 = vpop.xlane.xlu0 %3332 }
 0x189   :  { %v4712_v46 = vpop.f32.mrf.mxu0  ;;  %3434 = vadd.xlane.f32.xlu1 %v3433_v20  ;;  %v3621_v25 = vrot.slane %v3333_v22, %v6535_v2  ;;  %v4751_v54 = vadd.f32 %v4750_v18, %v4749_v10 }
 0x18a   :  { %v2515_v21 = vadd.f32 %v4711_v17, %v6287_v55  ;;  %v4752_v30 = vpop.f32.mrf.mxu1  ;;  %v3293_v32 = vmax.f32 %v2285_v15, 0.0 }
 0x18b   :  { %v3623_v38 = vsel %vm3622_vm4, %v3621_v25, %v3616_v12  ;;  %v4713_v39 = vpop.f32.mrf.mxu0 }
 0x18c   :  { %v2580_v33 = vadd.f32 %v4751_v54, %v2515_v21  ;;  %v4714_v41 = vadd.f32 %v4713_v39, %v4712_v46  ;;  %v4753_v43 = vpop.f32.mrf.mxu1  ;;  %v3436_v26 = vsel %vm3318_vm0, %v3293_v32, 0.0 }
 0x18d   :  { %v3336_v44 = vpop.xlane.xlu0 %3335  ;;  %v4715_v36 = vpop.f32.mrf.mxu0  ;;  %3437 = vadd.xlane.f32.xlu1 %v3436_v26  ;;  %v4754_v45 = vadd.f32 %v4753_v43, %v4752_v30 }
 0x18e   :  { %v3628_v28 = vrot.slane %v3336_v44, %v6544_v29  ;;  %v2518_v7 = vadd.f32 %v4714_v41, %v6309_v5  ;;  %v4755_v53 = vpop.f32.mrf.mxu1  ;;  %v3294_v47 = vmax.f32 %v2580_v33, 0.0 }
 0x18f   :  { %v4716_v56 = vpop.f32.mrf.mxu0 }
 0x190   :  { %v3630_v48 = vsel %vm3629_vm5, %v3628_v28, %v3623_v38  ;;  %v3339_v57 = vpop.xlane.xlu1 %3338  ;;  %v2583_v58 = vadd.f32 %v4754_v45, %v2518_v7  ;;  %v4717_v62 = vadd.f32 %v4716_v56, %v4715_v36  ;;  %v4756_v14 = vpop.f32.mrf.mxu1  ;;  %v3439_v59 = vsel %vm3318_vm0, %v3294_v47, 0.0 }
 0x191   :  { %v3635_v34 = vrot.slane %v3339_v57, %v6550_v35  ;;  %v4718_v60 = vpop.f32.mrf.mxu0  ;;  %3440 = vadd.xlane.f32.xlu1 %v3439_v59  ;;  %v4757_v0 = vadd.f32 %v4756_v14, %v4755_v53 }
 0x192   :  { %v2523_v16 = vadd.f32 %v4717_v62, %v6330_v23  ;;  %v4758_v42 = vpop.f32.mrf.mxu1  ;;  %v3295_v1 = vmax.f32 %v2583_v58, 0.0 }
 0x193   :  { %v3637_v6 = vsel %vm3636_vm6, %v3635_v34, %v3630_v48  ;;  %v4719_v3 = vpop.f32.mrf.mxu0 }
 0x194   :  { %v2588_v51 = vadd.f32 %v4757_v0, %v2523_v16  ;;  %v4720_v9 = vadd.f32 %v4719_v3, %v4718_v60  ;;  %v4759_v10 = vpop.f32.mrf.mxu1  ;;  %v3442_v11 = vsel %vm3318_vm0, %v3295_v1, 0.0 }
 0x195   :  { %v3342_v12 = vpop.xlane.xlu1 %3341  ;;  %v4721_v13 = vpop.f32.mrf.mxu0  ;;  %3443 = vadd.xlane.f32.xlu0 %v3442_v11  ;;  %v4760_v17 = vadd.f32 %v4759_v10, %v4758_v42 }
 0x196   :  { %v3642_v63 = vrot.slane %v3342_v12, %v6559_v37  ;;  %v2526_v15 = vadd.f32 %v4720_v9, %v6348_v50  ;;  %v4761_v18 = vpop.f32.mrf.mxu1  ;;  %v3296_v20 = vmax.f32 %v2588_v51, 0.0 }
 0x197   :  { %v4722_v24 = vpop.f32.mrf.mxu0 }
 0x198   :  { %v6567_v22 = vsel %vm3643_vm7, %v3642_v63, %v3637_v6  ;;  %v2591_v25 = vadd.f32 %v4760_v17, %v2526_v15  ;;  %v4723_v21 = vadd.f32 %v4722_v24, %v4721_v13  ;;  %v4762_v54 = vpop.f32.mrf.mxu1  ;;  %v3445_v30 = vsel %vm3318_vm0, %v3296_v20, 0.0 }
 0x199   :  { %v3345_v46 = vpop.xlane.xlu0 %3344  ;;  %v4724_v32 = vpop.f32.mrf.mxu0  ;;  %3446 = vadd.xlane.f32.xlu0 %v3445_v30  ;;  %v4763_v39 = vadd.f32 %v4762_v54, %v4761_v18 }
 0x19a   :  { %v2531_v38 = vadd.f32 %v4723_v21, %v6366_v61  ;;  %v4764_v33 = vpop.f32.mrf.mxu1  ;;  %v3297_v41 = vmax.f32 %v2591_v25, 0.0  ;;  %v3648_v43 = vrot.slane %v3345_v46, %v6507_v8 }
 0x19b   :  { %v4725_v26 = vpop.f32.mrf.mxu0 }
 0x19c   :  { %v2596_v36 = vadd.f32 %v4763_v39, %v2531_v38  ;;  %v4726_v28 = vadd.f32 %v4725_v26, %v4724_v32  ;;  %v4765_v52 = vpop.f32.mrf.mxu1  ;;  %v3448_v7 = vsel %vm3318_vm0, %v3297_v41, 0.0 }
 0x19d   :  { %v3348_v44 = vpop.xlane.xlu0 %3347  ;;  %v4727_v53 = vpop.f32.mrf.mxu0  ;;  %3449 = vadd.xlane.f32.xlu0 %v3448_v7  ;;  %v4766_v48 = vadd.f32 %v4765_v52, %v4764_v33 }
 0x19e   :  { %v3652_v45 = vrot.slane %v3348_v44, %v6510_v49  ;;  %v2534_v47 = vadd.f32 %v4726_v28, %v6380_v19  ;;  %v4767_v56 = vpop.f32.mrf.mxu1  ;;  %v3298_v58 = vmax.f32 %v2596_v36, 0.0 }
 0x19f   :  { %v4728_v62 = vpop.f32.mrf.mxu0 }
 0x1a0   :  { %v3653_v57 = vsel %vm3601_vm1, %v3652_v45, %v3648_v43  ;;  %v2599_v59 = vadd.f32 %v4766_v48, %v2534_v47  ;;  %v4729_v34 = vadd.f32 %v4728_v62, %v4727_v53  ;;  %v4768_v60 = vpop.f32.mrf.mxu1  ;;  %v3451_v16 = vsel %vm3318_vm0, %v3298_v58, 0.0 }
 0x1a1   :  { %v3351_v14 = vpop.xlane.xlu0 %3350  ;;  %v4730_v42 = vpop.f32.mrf.mxu0  ;;  %3452 = vadd.xlane.f32.xlu1 %v3451_v16  ;;  %v4769_v1 = vadd.f32 %v4768_v60, %v4767_v56 }
 0x1a2   :  { %v3657_v0 = vrot.slane %v3351_v14, %v6520_v40  ;;  %v2539_v6 = vadd.f32 %v4729_v34, %v6398_v27  ;;  %v4770_v3 = vpop.f32.mrf.mxu1  ;;  %v3299_v9 = vmax.f32 %v2599_v59, 0.0 }
 0x1a3   :  { %v4731_v10 = vpop.f32.mrf.mxu0 }
 0x1a4   :  { %v3658_v51 = vsel %vm3608_vm2, %v3657_v0, %v3653_v57  ;;  %v2604_v12 = vadd.f32 %v4769_v1, %v2539_v6  ;;  %v4732_v13 = vadd.f32 %v4731_v10, %v4730_v42  ;;  %v4771_v63 = vpop.f32.mrf.mxu1  ;;  %v3454_v15 = vsel %vm3318_vm0, %v3299_v9, 0.0 }
 0x1a5   :  { %v3354_v11 = vpop.xlane.xlu0 %3353  ;;  %v4789_v18 = vpop.f32.mrf.mxu0  ;;  %3455 = vadd.xlane.f32.xlu0 %v3454_v15  ;;  %v4772_v24 = vadd.f32 %v4771_v63, %v4770_v3 }
 0x1a6   :  { %v3662_v17 = vrot.slane %v3354_v11, %v6527_v31  ;;  %v2542_v20 = vadd.f32 %v4732_v13, %v6421_v4  ;;  %v4829_v46 = vpop.f32.mrf.mxu1  ;;  %v3300_v21 = vmax.f32 %v2604_v12, 0.0 }
 0x1a7   :  { %v4790_v54 = vpop.f32.mrf.mxu0 }
 0x1a8   :  { %v3663_v25 = vsel %vm3615_vm3, %v3662_v17, %v3658_v51  ;;  %v2607_v32 = vadd.f32 %v4772_v24, %v2542_v20  ;;  %v4791_v38 = vadd.f32 %v4790_v54, %v4789_v18  ;;  %v4830_v39 = vpop.f32.mrf.mxu1  ;;  %v3457_v33 = vsel %vm3318_vm0, %v3300_v21, 0.0 }
 0x1a9   :  { %v3357_v30 = vpop.xlane.xlu1 %3356  ;;  %v4792_v43 = vpop.f32.mrf.mxu0  ;;  %3458 = vadd.xlane.f32.xlu0 %v3457_v33  ;;  %v4831_v44 = vadd.f32 %v4830_v39, %v4829_v46 }
 0x1aa   :  { %v3667_v41 = vrot.slane %v3357_v30, %v6535_v2  ;;  %v2837_v26 = vadd.f32 %v4791_v38, %v6287_v55  ;;  %v4832_v36 = vpop.f32.mrf.mxu1  ;;  %v3301_v52 = vmax.f32 %v2607_v32, 0.0 }
 0x1ab   :  { %v4793_v7 = vpop.f32.mrf.mxu0 }
 0x1ac   :  { %v3668_v28 = vsel %vm3622_vm4, %v3667_v41, %v3663_v25  ;;  %v2902_v53 = vadd.f32 %v4831_v44, %v2837_v26  ;;  %v4794_v47 = vadd.f32 %v4793_v7, %v4792_v43  ;;  %v4833_v48 = vpop.f32.mrf.mxu1  ;;  %v3460_v56 = vsel %vm3318_vm0, %v3301_v52, 0.0 }
 0x1ad   :  { %v3360_v45 = vpop.xlane.xlu1 %3359  ;;  %v4795_v58 = vpop.f32.mrf.mxu0  ;;  %3461 = vadd.xlane.f32.xlu1 %v3460_v56  ;;  %v4834_v14 = vadd.f32 %v4833_v48, %v4832_v36 }
 0x1ae   :  { %v3672_v57 = vrot.slane %v3360_v45, %v6544_v29  ;;  %v2840_v62 = vadd.f32 %v4794_v47, %v6309_v5  ;;  %v4835_v59 = vpop.f32.mrf.mxu1  ;;  %v3302_v60 = vmax.f32 %v2902_v53, 0.0 }
 0x1af   :  { %v4796_v16 = vpop.f32.mrf.mxu0 }
 0x1b0   :  { %v3673_v34 = vsel %vm3629_vm5, %v3672_v57, %v3668_v28  ;;  %v2905_v42 = vadd.f32 %v4834_v14, %v2840_v62  ;;  %v4797_v6 = vadd.f32 %v4796_v16, %v4795_v58  ;;  %v4836_v1 = vpop.f32.mrf.mxu1  ;;  %v3463_v3 = vsel %vm3318_vm0, %v3302_v60, 0.0 }
 0x1b1   :  { %v3363_v0 = vpop.xlane.xlu0 %3362  ;;  %v4798_v9 = vpop.f32.mrf.mxu0  ;;  %3464 = vadd.xlane.f32.xlu1 %v3463_v3  ;;  %v4837_v11 = vadd.f32 %v4836_v1, %v4835_v59 }
 0x1b2   :  { %v3677_v51 = vrot.slane %v3363_v0, %v6550_v35  ;;  %v2845_v10 = vadd.f32 %v4797_v6, %v6330_v23  ;;  %v4838_v12 = vpop.f32.mrf.mxu1  ;;  %v3303_v63 = vmax.f32 %v2905_v42, 0.0 }
 0x1b3   :  { %v4799_v15 = vpop.f32.mrf.mxu0 }
 0x1b4   :  { %v3678_v13 = vsel %vm3636_vm6, %v3677_v51, %v3673_v34  ;;  %v2910_v18 = vadd.f32 %v4837_v11, %v2845_v10  ;;  %v4800_v20 = vadd.f32 %v4799_v15, %v4798_v9  ;;  %v4839_v24 = vpop.f32.mrf.mxu1  ;;  %v3466_v46 = vsel %vm3318_vm0, %v3303_v63, 0.0 }
 0x1b5   :  { %v3366_v17 = vpop.xlane.xlu0 %3365  ;;  %v4801_v21 = vpop.f32.mrf.mxu0  ;;  %3467 = vadd.xlane.f32.xlu0 %v3466_v46  ;;  %v4840_v30 = vadd.f32 %v4839_v24, %v4838_v12 }
 0x1b6   :  { %v3682_v25 = vrot.slane %v3366_v17, %v6559_v37  ;;  %v2848_v54 = vadd.f32 %v4800_v20, %v6348_v50  ;;  %v4841_v32 = vpop.f32.mrf.mxu1  ;;  %v3304_v39 = vmax.f32 %v2910_v18, 0.0 }
 0x1b7   :  { %v4802_v41 = vpop.f32.mrf.mxu0 }
 0x1b8   :  { %v3683_v38 = vsel %vm3643_vm7, %v3682_v25, %v3678_v13  ;;  %v2913_v43 = vadd.f32 %v4840_v30, %v2848_v54  ;;  %v4803_v26 = vadd.f32 %v4802_v41, %v4801_v21  ;;  %v4842_v44 = vpop.f32.mrf.mxu1  ;;  %v3469_v36 = vsel %vm3318_vm0, %v3304_v39, 0.0 }
 0x1b9   :  { %v6601_v33 = vsel %vm3918_vm8, %v3683_v38, %v6567_v22  ;;  %v3369_v28 = vpop.xlane.xlu1 %3368  ;;  %v4804_v52 = vpop.f32.mrf.mxu0  ;;  %3470 = vadd.xlane.f32.xlu1 %v3469_v36  ;;  %v4843_v45 = vadd.f32 %v4842_v44, %v4841_v32 }
 0x1ba   :  { %v2853_v7 = vadd.f32 %v4803_v26, %v6366_v61  ;;  %v4844_v53 = vpop.f32.mrf.mxu1  ;;  %v3305_v47 = vmax.f32 %v2913_v43, 0.0  ;;  %v3687_v48 = vrot.slane %v3369_v28, %v6507_v8 }
 0x1bb   :  { %v4805_v56 = vpop.f32.mrf.mxu0 }
 0x1bc   :  { %v2918_v22 = vadd.f32 %v4843_v45, %v2853_v7  ;;  %v4806_v58 = vadd.f32 %v4805_v56, %v4804_v52  ;;  %v4845_v62 = vpop.f32.mrf.mxu1  ;;  %v3472_v14 = vsel %vm3318_vm0, %v3305_v47, 0.0 }
 0x1bd   :  { %v3372_v57 = vpop.xlane.xlu0 %3371  ;;  %v4807_v34 = vpop.f32.mrf.mxu0  ;;  %3473 = vadd.xlane.f32.xlu0 %v3472_v14  ;;  %v4846_v16 = vadd.f32 %v4845_v62, %v4844_v53 }
 0x1be   :  { %v3691_v59 = vrot.slane %v3372_v57, %v6510_v49  ;;  %v2856_v60 = vadd.f32 %v4806_v58, %v6380_v19  ;;  %v4847_v0 = vpop.f32.mrf.mxu1  ;;  %v3306_v6 = vmax.f32 %v2918_v22, 0.0 }
 0x1bf   :  { %v4808_v1 = vpop.f32.mrf.mxu0 }
 0x1c0   :  { %v3692_v42 = vsel %vm3601_vm1, %v3691_v59, %v3687_v48  ;;  %v2921_v51 = vadd.f32 %v4846_v16, %v2856_v60  ;;  %v4809_v9 = vadd.f32 %v4808_v1, %v4807_v34  ;;  %v4848_v10 = vpop.f32.mrf.mxu1  ;;  %v3475_v11 = vsel %vm3318_vm0, %v3306_v6, 0.0 }
 0x1c1   :  { %v3375_v3 = vpop.xlane.xlu1 %3374  ;;  %v4810_v13 = vpop.f32.mrf.mxu0  ;;  %3476 = vadd.xlane.f32.xlu1 %v3475_v11  ;;  %v4849_v15 = vadd.f32 %v4848_v10, %v4847_v0 }
 0x1c2   :  { %v3696_v12 = vrot.slane %v3375_v3, %v6520_v40  ;;  %v2861_v63 = vadd.f32 %v4809_v9, %v6398_v27  ;;  %v4850_v17 = vpop.f32.mrf.mxu1  ;;  %v3307_v20 = vmax.f32 %v2921_v51, 0.0 }
 0x1c3   :  { %v4811_v24 = vpop.f32.mrf.mxu0 }
 0x1c4   :  { %v3697_v18 = vsel %vm3608_vm2, %v3696_v12, %v3692_v42  ;;  %v2926_v25 = vadd.f32 %v4849_v15, %v2861_v63  ;;  %v4812_v21 = vadd.f32 %v4811_v24, %v4810_v13  ;;  %v4851_v54 = vpop.f32.mrf.mxu1  ;;  %v3478_v30 = vsel %vm3318_vm0, %v3307_v20, 0.0 }
 0x1c5   :  { %v3378_v46 = vpop.xlane.xlu0 %3377  ;;  %3479 = vadd.xlane.f32.xlu1 %v3478_v30  ;;  %v4852_v41 = vadd.f32 %v4851_v54, %v4850_v17 }
 0x1c6   :  { %v3701_v32 = vrot.slane %v3378_v46, %v6527_v31  ;;  %v4869_v38 = vpop.f32.mrf.mxu0  ;;  %v2864_v39 = vadd.f32 %v4812_v21, %v6421_v4  ;;  %v4909_v43 = vpop.f32.mrf.mxu1  ;;  %v3308_v44 = vmax.f32 %v2926_v25, 0.0 }
 0x1c8   :  { %v3702_v26 = vsel %vm3615_vm3, %v3701_v32, %v3697_v18  ;;  %v4870_v36 = vpop.f32.mrf.mxu0  ;;  %v2929_v52 = vadd.f32 %v4852_v41, %v2864_v39  ;;  %v4910_v45 = vpop.f32.mrf.mxu1  ;;  %v3481_v53 = vsel %vm3318_vm0, %v3308_v44, 0.0 }
 0x1c9   :  { %v3381_v28 = vpop.xlane.xlu0 %3380  ;;  %v4871_v7 = vadd.f32 %v4870_v36, %v4869_v38  ;;  %3482 = vadd.xlane.f32.xlu0 %v3481_v53  ;;  %v4911_v57 = vadd.f32 %v4910_v45, %v4909_v43 }
 0x1ca   :  { %v3706_v47 = vrot.slane %v3381_v28, %v6535_v2  ;;  %v4872_v48 = vpop.f32.mrf.mxu0  ;;  %v4912_v22 = vpop.f32.mrf.mxu1  ;;  %v3309_v62 = vmax.f32 %v2929_v52, 0.0 }
 0x1cb   :  { %v3159_v56 = vadd.f32 %v4871_v7, %v6287_v55 }
 0x1cc   :  { %v3707_v58 = vsel %vm3622_vm4, %v3706_v47, %v3702_v26  ;;  %v4873_v14 = vpop.f32.mrf.mxu0  ;;  %v4913_v16 = vpop.f32.mrf.mxu1  ;;  %v3484_v0 = vsel %vm3318_vm0, %v3309_v62, 0.0 }
 0x1cd   :  { %v3384_v59 = vpop.xlane.xlu1 %3383  ;;  %v3224_v34 = vadd.f32 %v4911_v57, %v3159_v56  ;;  %v4874_v60 = vadd.f32 %v4873_v14, %v4872_v48  ;;  %3485 = vadd.xlane.f32.xlu0 %v3484_v0  ;;  %v4914_v3 = vadd.f32 %v4913_v16, %v4912_v22  ;;  %v5291_v0 = vmov 0.0  }
 0x1ce   :  { %v3711_v42 = vrot.slane %v3384_v59, %v6544_v29  ;;  %v4875_v6 = vpop.f32.mrf.mxu0  ;;  %v4915_v55 = vpop.f32.mrf.mxu1  ;;  %4942 = vmatprep.subr.mxu0 %v5291_v0  ;;  %4958 = vmatprep.mubr.msk.f32.mxu0 %vm5292_vm11, %v5291_v0 }
 0x1cf   :  { %v3162_v1 = vadd.f32 %v4874_v60, %v6309_v5  ;;  %v3310_v9 = vmax.f32 %v3224_v34, 0.0 }
 0x1d0   :  { %v3712_v51 = vsel %vm3629_vm5, %v3711_v42, %v3707_v58  ;;  %v4876_v10 = vpop.f32.mrf.mxu0  ;;  %v4916_v63 = vpop.f32.mrf.mxu1 }
 0x1d1   :  { %v3387_v11 = vpop.xlane.xlu1 %3386  ;;  %v3227_v12 = vadd.f32 %v4914_v3, %v3162_v1  ;;  %v4877_v13 = vadd.f32 %v4876_v10, %v4875_v6  ;;  %v3487_v15 = vsel %vm3318_vm0, %v3310_v9, 0.0  ;;  %v4917_v24 = vadd.f32 %v4916_v63, %v4915_v55 }
 0x1d2   :  { %v3716_v17 = vrot.slane %v3387_v11, %v6550_v35  ;;  %v4878_v18 = vpop.f32.mrf.mxu0  ;;  %3488 = vadd.xlane.f32.xlu0 %v3487_v15  ;;  %v4918_v5 = vpop.f32.mrf.mxu1 }
 0x1d3   :  { %v3167_v20 = vadd.f32 %v4877_v13, %v6330_v23  ;;  %v3311_v25 = vmax.f32 %v3227_v12, 0.0 }
 0x1d4   :  { %v3717_v46 = vsel %vm3636_vm6, %v3716_v17, %v3712_v51  ;;  %v4879_v21 = vpop.f32.mrf.mxu0  ;;  %v4919_v38 = vpop.f32.mrf.mxu1 }
 0x1d5   :  { %v3390_v54 = vpop.xlane.xlu0 %3389  ;;  %v3232_v30 = vadd.f32 %v4917_v24, %v3167_v20  ;;  %v4880_v32 = vadd.f32 %v4879_v21, %v4878_v18  ;;  %v3490_v39 = vsel %vm3318_vm0, %v3311_v25, 0.0  ;;  %v4920_v23 = vadd.f32 %v4919_v38, %v4918_v5 }
 0x1d6   :  { %v3721_v41 = vrot.slane %v3390_v54, %v6559_v37  ;;  %v4881_v43 = vpop.f32.mrf.mxu0  ;;  %3491 = vadd.xlane.f32.xlu1 %v3490_v39  ;;  %v4921_v44 = vpop.f32.mrf.mxu1 }
 0x1d7   :  { %v3170_v26 = vadd.f32 %v4880_v32, %v6348_v50  ;;  %v3312_v28 = vmax.f32 %v3232_v30, 0.0 }
 0x1d8   :  { %v3722_v36 = vsel %vm3643_vm7, %v3721_v41, %v3717_v46  ;;  %v4882_v7 = vpop.f32.mrf.mxu0  ;;  %v4922_v47 = vpop.f32.mrf.mxu1 }
 0x1d9   :  { %v6635_v52 = vsel %vm3920_vm9, %v3722_v36, %v6601_v33  ;;  %v3235_v45 = vadd.f32 %v4920_v23, %v3170_v26  ;;  %v4883_v53 = vadd.f32 %v4882_v7, %v4881_v43  ;;  %v3493_v48 = vsel %vm3318_vm0, %v3312_v28, 0.0  ;;  %v3518_v33 = vld [vmem:[%s6785_s3 + $0x38] sm:$0xff] }
 0x1da   :  { %v4884_v56 = vpop.f32.mrf.mxu0  ;;  %3494 = vadd.xlane.f32.xlu1 %v3493_v48  ;;  %v4923_v22 = vadd.f32 %v4922_v47, %v4921_v44  ;;  %v4924_v50 = vpop.f32.mrf.mxu1  ;;  %4943 = vmatpush3.msra.mxu0 %v3518_v33 }
 0x1db   :  { %v3175_v57 = vadd.f32 %v4883_v53, %v6366_v61  ;;  %v3393_v58 = vpop.xlane.xlu0 %3392  ;;  %v3313_v62 = vmax.f32 %v3235_v45, 0.0  ;;  %4944 = vmatprep.subr.mxu0 %v5291_v0  ;;  %v3515_v45 = vld [vmem:[%s6785_s3 + $0x20] sm:$0xff] }
 0x1dc   :  { %v4885_v14 = vpop.f32.mrf.mxu0  ;;  %v4925_v60 = vpop.f32.mrf.mxu1  ;;  %v3726_v42 = vrot.slane %v3393_v58, %v6507_v8  ;;  %v3513_v58 = vld [vmem:[%s6785_s3 + $0x10] sm:$0xff] }
 0x1dd   :  { %v3240_v59 = vadd.f32 %v4923_v22, %v3175_v57  ;;  %v4886_v34 = vadd.f32 %v4885_v14, %v4884_v56  ;;  %v3496_v16 = vsel %vm3318_vm0, %v3313_v62, 0.0  ;;  %v4926_v3 = vadd.f32 %v4925_v60, %v4924_v50  ;;  %v3514_v57 = vld [vmem:[%s6785_s3 + $0x18] sm:$0xff] }
 0x1de   :  { %v4887_v61 = vpop.f32.mrf.mxu0  ;;  %3497 = vadd.xlane.f32.xlu0 %v3496_v16  ;;  %v3396_v6 = vpop.xlane.xlu1 %3395 }
 0x1df   :  { %v3178_v1 = vadd.f32 %v4886_v34, %v6380_v19  ;;  %v4927_v55 = vpop.f32.mrf.mxu1  ;;  %v3730_v51 = vrot.slane %v3396_v6, %v6510_v49  ;;  %v3314_v9 = vmax.f32 %v3240_v59, 0.0  ;;  %v3517_v19 = vld [vmem:[%s6785_s3 + $0x30] sm:$0xff]  ;;  %v3512_v59 = vld [vmem:[%s6785_s3 + $0x8] sm:$0xff]  ;;  %v3511_v6 = vld [vmem:[%s6785_s3] sm:$0xff] }
 0x1e0   :  { %v4888_v10 = vpop.f32.mrf.mxu0  ;;  %4945 = vmatpush3.msra.mxu0 %v3517_v19 }
 0x1e1   :  { %v3243_v11 = vadd.f32 %v4926_v3, %v3178_v1  ;;  %v3731_v12 = vsel %vm3601_vm1, %v3730_v51, %v3726_v42  ;;  %v4889_v13 = vadd.f32 %v4888_v10, %v4887_v61  ;;  %v4928_v63 = vpop.f32.mrf.mxu1  ;;  %v3499_v15 = vsel %vm3318_vm0, %v3314_v9, 0.0  ;;  %4946 = vmatprep.subr.mxu0 %v5291_v0 }
 0x1e2   :  { %v4890_v17 = vpop.f32.mrf.mxu0  ;;  %3500 = vadd.xlane.f32.xlu0 %v3499_v15  ;;  %v3399_v18 = vpop.xlane.xlu1 %3398  ;;  %v4929_v24 = vadd.f32 %v4928_v63, %v4927_v55 }
 0x1e3   :  { %v3183_v20 = vadd.f32 %v4889_v13, %v6398_v27  ;;  %v4930_v5 = vpop.f32.mrf.mxu1  ;;  %v3735_v46 = vrot.slane %v3399_v18, %v6520_v40  ;;  %v3315_v25 = vmax.f32 %v3243_v11, 0.0  ;;  %v3516_v27 = vld [vmem:[%s6785_s3 + $0x28] sm:$0xff] }
 0x1e4   :  { %v4891_v21 = vpop.f32.mrf.mxu0  ;;  %4947 = vmatpush3.msra.mxu0 %v3516_v27 }
 0x1e5   :  { %v3248_v54 = vadd.f32 %v4929_v24, %v3183_v20  ;;  %v3736_v30 = vsel %vm3608_vm2, %v3735_v46, %v3731_v12  ;;  %v4892_v32 = vadd.f32 %v4891_v21, %v4890_v17  ;;  %v4931_v38 = vpop.f32.mrf.mxu1  ;;  %v3502_v39 = vsel %vm3318_vm0, %v3315_v25, 0.0  ;;  %4948 = vmatprep.subr.mxu0 %v5291_v0 }
 0x1e6   :  { %3503 = vadd.xlane.f32.xlu1 %v3502_v39  ;;  %v3402_v41 = vpop.xlane.xlu1 %3401  ;;  %v4932_v26 = vadd.f32 %v4931_v38, %v4930_v5  ;;  %4949 = vmatpush3.msra.mxu0 %v3515_v45 }
 0x1e7   :  { %v3186_v43 = vadd.f32 %v4892_v32, %v6421_v4  ;;  %v3316_v23 = vmax.f32 %v3248_v54, 0.0  ;;  %v3740_v44 = vrot.slane %v3402_v41, %v6527_v31  ;;  %4950 = vmatprep.subr.mxu0 %v5291_v0 }
 0x1e8   :  { %4951 = vmatpush3.msra.mxu0 %v3514_v57 }
 0x1e9   :  { %v3251_v36 = vadd.f32 %v4932_v26, %v3186_v43  ;;  %v3505_v28 = vsel %vm3318_vm0, %v3316_v23, 0.0  ;;  %v3741_v4 = vsel %vm3615_vm3, %v3740_v44, %v3736_v30  ;;  %4952 = vmatprep.subr.mxu0 %v5291_v0 }
 0x1ea   :  { %3506 = vadd.xlane.f32.xlu1 %v3505_v28  ;;  %v3405_v7 = vpop.xlane.xlu0 %3404  ;;  %4953 = vmatpush3.msra.mxu0 %v3513_v58 }
 0x1eb   :  { %v3745_v53 = vrot.slane %v3405_v7, %v6535_v2  ;;  %v3317_v47 = vmax.f32 %v3251_v36, 0.0  ;;  %4954 = vmatprep.subr.mxu0 %v5291_v0 }
 0x1ec   :  { %4955 = vmatpush3.msra.mxu0 %v3512_v59 }
 0x1ed   :  { %v3746_v48 = vsel %vm3622_vm4, %v3745_v53, %v3741_v4  ;;  %v3508_v56 = vsel %vm3318_vm0, %v3317_v47, 0.0  ;;  %4956 = vmatprep.subr.mxu0 %v5291_v0 }
 0x1ee   :  { %3509 = vadd.xlane.f32.xlu0 %v3508_v56  ;;  %v3408_v22 = vpop.xlane.xlu0 %3407  ;;  %4957 = vmatpush3.msra.mxu0 %v3511_v6 }
 0x1ef   :  { %v3750_v62 = vrot.slane %v3408_v22, %v6544_v29 }
 0x1f1   :  { %v3751_v34 = vsel %vm3629_vm5, %v3750_v62, %v3746_v48 }
 0x1f2   :  { %v3411_v50 = vpop.xlane.xlu1 %3410 }
 0x1f3   :  { %v3755_v14 = vrot.slane %v3411_v50, %v6550_v35 }
 0x1f5   :  { %v3756_v16 = vsel %vm3636_vm6, %v3755_v14, %v3751_v34 }
 0x1f6   :  { %v3414_v33 = vpop.xlane.xlu0 %3413 }
 0x1f7   :  { %v3760_v60 = vrot.slane %v3414_v33, %v6559_v37 }
 0x1f9   :  { %v3761_v42 = vsel %vm3643_vm7, %v3760_v60, %v3756_v16 }
 0x1fa   :  { %v6692_v61 = vsel %vm3922_vm10, %v3761_v42, %v6635_v52  ;;  %v3417_v3 = vpop.xlane.xlu0 %3416 }
 0x1fb   :  { %v3765_v41 = vrot.slane %v3417_v3, %v6507_v8 }
 0x1fe   :  { %v3420_v1 = vpop.xlane.xlu1 %3419 }
 0x1ff   :  { %v3769_v32 = vrot.slane %v3420_v1, %v6510_v49 }
 0x201   :  { %v3770_v23 = vsel %vm3601_vm1, %v3769_v32, %v3765_v41 }
 0x202   :  { %v3423_v51 = vpop.xlane.xlu0 %3422 }
 0x203   :  { %v3774_v38 = vrot.slane %v3423_v51, %v6520_v40 }
 0x205   :  { %v3775_v36 = vsel %vm3608_vm2, %v3774_v38, %v3770_v23 }
 0x206   :  { %v3426_v55 = vpop.xlane.xlu1 %3425 }
 0x207   :  { %v3779_v27 = vrot.slane %v3426_v55, %v6527_v31 }
 0x209   :  { %v3780_v45 = vsel %vm3615_vm3, %v3779_v27, %v3775_v36 }
 0x20a   :  { %v3429_v10 = vpop.xlane.xlu1 %3428 }
 0x20b   :  { %v3784_v26 = vrot.slane %v3429_v10, %v6535_v2 }
 0x20d   :  { %v3785_v48 = vsel %vm3622_vm4, %v3784_v26, %v3780_v45 }
 0x20e   :  { %v3432_v9 = vpop.xlane.xlu0 %3431 }
 0x20f   :  { %v3789_v44 = vrot.slane %v3432_v9, %v6544_v29 }
 0x211   :  { %v3790_v50 = vsel %vm3629_vm5, %v3789_v44, %v3785_v48 }
 0x212   :  { %v3435_v12 = vpop.xlane.xlu1 %3434 }
 0x213   :  { %v3794_v28 = vrot.slane %v3435_v12, %v6550_v35 }
 0x215   :  { %v3795_v58 = vsel %vm3636_vm6, %v3794_v28, %v3790_v50  ;;  %v4291_v28 = vld [vmem:[%s6786_s4] ss:$0 sm:$0xff] }
 0x216   :  { %v3438_v63 = vpop.xlane.xlu1 %3437 }
 0x217   :  { %v3799_v53 = vrot.slane %v3438_v63, %v6559_v37 }
 0x219   :  { %v3800_v33 = vsel %vm3643_vm7, %v3799_v53, %v3795_v58 }
 0x21a   :  { %v3441_v15 = vpop.xlane.xlu1 %3440  ;;  %v3925_v41 = vsel %vm3924_vm12, %v3800_v33, %v6692_v61 }
 0x21b   :  { %v3804_v56 = vrot.slane %v3441_v15, %v6507_v8 }
 0x21e   :  { %v3444_v11 = vpop.xlane.xlu0 %3443 }
 0x21f   :  { %v3808_v7 = vrot.slane %v3444_v11, %v6510_v49 }
 0x221   :  { %v3809_v62 = vsel %vm3601_vm1, %v3808_v7, %v3804_v56 }
 0x222   :  { %v3447_v13 = vpop.xlane.xlu0 %3446 }
 0x223   :  { %v3813_v47 = vrot.slane %v3447_v13, %v6520_v40 }
 0x225   :  { %v3814_v59 = vsel %vm3608_vm2, %v3813_v47, %v3809_v62 }
 0x226   :  { %v3450_v52 = vpop.xlane.xlu0 %3449 }
 0x227   :  { %v3818_v57 = vrot.slane %v3450_v52, %v6527_v31 }
 0x229   :  { %v3819_v60 = vsel %vm3615_vm3, %v3818_v57, %v3814_v59 }
 0x22a   :  { %v3453_v18 = vpop.xlane.xlu1 %3452 }
 0x22b   :  { %v3823_v16 = vrot.slane %v3453_v18, %v6535_v2 }
 0x22e   :  { %v6698_v17 = vpop.xlane.xlu0 %3455 }
 0x22f   :  { %v3828_v3 = vrot.slane %v6698_v17, %v6544_v29 }
 0x232   :  { %v6702_v20 = vpop.xlane.xlu0 %3458 }
 0x233   :  { %v3833_v55 = vrot.slane %v6702_v20, %v6550_v35 }
 0x236   :  { %v6700_v19 = vpop.xlane.xlu1 %3461 }
 0x237   :  { %v3838_v11 = vrot.slane %v6700_v19, %v6559_v37 }
 0x23a   :  { %v3465_v24 = vpop.xlane.xlu1 %3464 }
 0x23b   :  { %v3843_v42 = vrot.slane %v3465_v24, %v6507_v8 }
 0x23e   :  { %v3468_v0 = vpop.xlane.xlu0 %3467 }
 0x23f   :  { %v3847_v14 = vrot.slane %v3468_v0, %v6510_v49 }
 0x241   :  { %v3848_v12 = vsel %vm3601_vm1, %v3847_v14, %v3843_v42 }
 0x242   :  { %v3471_v46 = vpop.xlane.xlu1 %3470 }
 0x243   :  { %v3852_v34 = vrot.slane %v3471_v46, %v6520_v40 }
 0x245   :  { %v3853_v52 = vsel %vm3608_vm2, %v3852_v34, %v3848_v12 }
 0x246   :  { %v3474_v5 = vpop.xlane.xlu0 %3473 }
 0x247   :  { %v3857_v6 = vrot.slane %v3474_v5, %v6527_v31 }
 0x249   :  { %v3858_v20 = vsel %vm3615_vm3, %v3857_v6, %v3853_v52 }
 0x24a   :  { %v3477_v21 = vpop.xlane.xlu1 %3476 }
 0x24b   :  { %v3862_v51 = vrot.slane %v3477_v21, %v6535_v2 }
 0x24d   :  { %v3863_v5 = vsel %vm3622_vm4, %v3862_v51, %v3858_v20 }
 0x24e   :  { %v3480_v30 = vpop.xlane.xlu1 %3479 }
 0x24f   :  { %v3867_v13 = vrot.slane %v3480_v30, %v6544_v29 }
 0x252   :  { %v6704_v25 = vpop.xlane.xlu0 %3482 }
 0x253   :  { %v3872_v15 = vrot.slane %v6704_v25, %v6550_v35  ;;  %v3868_v25 = vsel %vm3629_vm5, %v3867_v13, %v3863_v5 }
 0x256   :  { %v6706_v54 = vpop.xlane.xlu0 %3485 }
 0x257   :  { %v3877_v19 = vrot.slane %v6706_v54, %v6559_v37  ;;  %v3873_v54 = vsel %vm3636_vm6, %v3872_v15, %v3868_v25 }
 0x259   :  { %v3878_v38 = vsel %vm3643_vm7, %v3877_v19, %v3873_v54 }
 0x25b   :  { %v3489_v43 = vpop.xlane.xlu0 %3488 }
 0x25c   :  { %v3882_v17 = vrot.slane %v3489_v43, %v6507_v8 }
 0x25f   :  { %v3492_v39 = vpop.xlane.xlu1 %3491 }
 0x260   :  { %v3886_v9 = vrot.slane %v3492_v39, %v6510_v49  ;;  %v3824_v49 = vsel %vm3622_vm4, %v3823_v16, %v3819_v60 }
 0x262   :  { %v3887_v46 = vsel %vm3601_vm1, %v3886_v9, %v3882_v17 }
 0x263   :  { %v3495_v22 = vpop.xlane.xlu1 %3494 }
 0x264   :  { %v3891_v63 = vrot.slane %v3495_v22, %v6520_v40  ;;  %v3829_v40 = vsel %vm3629_vm5, %v3828_v3, %v3824_v49 }
 0x266   :  { %v3892_v21 = vsel %vm3608_vm2, %v3891_v63, %v3887_v46 }
 0x267   :  { %v3498_v4 = vpop.xlane.xlu0 %3497 }
 0x268   :  { %v3896_v18 = vrot.slane %v3498_v4, %v6527_v31  ;;  %v3834_v31 = vsel %vm3636_vm6, %v3833_v55, %v3829_v40 }
 0x26a   :  { %v3897_v32 = vsel %vm3615_vm3, %v3896_v18, %v3892_v21 }
 0x26b   :  { %v3501_v10 = vpop.xlane.xlu0 %3500 }
 0x26c   :  { %v3901_v0 = vrot.slane %v3501_v10, %v6535_v2  ;;  %v3839_v2 = vsel %vm3643_vm7, %v3838_v11, %v3834_v31 }
 0x26d   :  { %v3927_v43 = vsel %vm3926_vm13, %v3839_v2, %v3925_v41 }
 0x26e   :  { %v3929_v23 = vsel %vm3928_vm14, %v3878_v38, %v3927_v43 }
 0x26f   :  { %v3504_v1 = vpop.xlane.xlu1 %3503 }
 0x270   :  { %v3906_v8 = vrot.slane %v3504_v1, %v6544_v29  ;;  %v3902_v29 = vsel %vm3622_vm4, %v3901_v0, %v3897_v32 }
 0x272   :  { %v3907_v27 = vsel %vm3629_vm5, %v3906_v8, %v3902_v29 }
 0x273   :  { %v3507_v24 = vpop.xlane.xlu1 %3506 }
 0x274   :  { %v3911_v30 = vrot.slane %v3507_v24, %v6550_v35 }
 0x276   :  { %v3912_v26 = vsel %vm3636_vm6, %v3911_v30, %v3907_v27 }
 0x277   :  { %v3510_v39 = vpop.xlane.xlu0 %3509 }
 0x278   :  { %v3916_v35 = vrot.slane %v3510_v39, %v6559_v37 }
 0x27a   :  { %v3917_v44 = vsel %vm3643_vm7, %v3916_v35, %v3912_v26 }
 0x27b   :  { %v3931_v36 = vsel %vm3930_vm15, %v3917_v44, %v3929_v23 }
 0x27c   :  { %4959 = vmatmul.mubr.msk.f32.vlgmr.msra.gmra.mxu0 %vm3318_vm0, %v3931_v36 }
 0x33c   :  { %v4000_v61 = vpop.f32.mrf.mxu0 }
 0x33d   :  { %v4001_v7 = vadd.f32 %v4291_v28, %v4000_v61 }
 0x33e   :  { %v4960_v45 = vpop.f32.mrf.mxu0 }
 0x33f   :  { %4004 = vst [vmem:[#allocation2] sm:$0xff] %v4001_v7 }
 0x340   :  { %5279 = shalt.err (!%p5276_p4)
}
 0x341   :  { %4014 = dma.vmem_to_hbm [thread:$0]  %s4012_s24, 128, %s6787_s5, [#allocation3]  }
 0x342   :  { %5288 = dma.done.wait [#allocation3], 128  }
 0x343   :  { %5289 = vsyncadd [#allocation3], 4294967168 }
 0x344   :  { %4018 = vsyncpa [#allocation3], 1 }

// kernel: tpu_custom_call.1
= control target key start
LH: loop header
LB: loop body
LE: loop exit
PB: predicated region body
PF: predicated region fallthrough
CT: control target
= control target key end

     0   :  { %v6359_v2 = vmov 0   ;;  %s8021_s0 = inlined_call_operand.vmem [shape: bf16[8,512,64], index: 0, kind: input, shape index: {}]   ;;  %s8022_s1 = inlined_call_operand.vmem [shape: bf16[64,512], index: 1, kind: input, shape index: {}]   ;;  %s8023_s2 = inlined_call_operand.vmem [shape: f32[64,1], index: 2, kind: input, shape index: {}]   ;;  %s8024_s3 = inlined_call_operand.vmem [shape: f32[64,128], index: 3, kind: input, shape index: {}]   ;;  %s8025_s4 = inlined_call_operand.vmem [shape: f32[1,128], index: 4, kind: input, shape index: {}]   ;;  %s8026_s5 = inlined_call_operand.hbm [shape: f32[8,128], index: 5, kind: output, shape index: {}]  }
   0x1   :  { %v6003_v0 = vld [vmem:[%s8021_s0 + $0x78] sm:$0xff]   ;;  %6001 = vset.pattern.permute.xlu0 %v6359_v2  ;;  %6002 = vset.pattern.permute.xlu1 %v6359_v2  ;;  %v6007_v5 = vld [vmem:[%s8021_s0 + $0x70] sm:$0xff]   ;;  %v6011_v9 = vld [vmem:[%s8021_s0 + $0x68] sm:$0xff]  }
   0x2   :  { %v6004_v1 = vld [vmem:[%s8021_s0 + $0xf8] sm:$0xff]   ;;  %5117 = vmatprep.subr.bf16.mxu0 %v6003_v0  ;;  %v6008_v6 = vld [vmem:[%s8021_s0 + $0xf0] sm:$0xff]   ;;  %v6012_v10 = vld [vmem:[%s8021_s0 + $0xe8] sm:$0xff]  }
   0x3   :  { %v6005_v3 = vld [vmem:[%s8021_s0 + $0x38] sm:$0xff]   ;;  %5157 = vmatprep.subr.bf16.mxu1 %v6004_v1  ;;  %v6009_v7 = vld [vmem:[%s8021_s0 + $0x30] sm:$0xff]   ;;  %v6013_v11 = vld [vmem:[%s8021_s0 + $0x28] sm:$0xff]  }
   0x4   :  { %v6006_v4 = vld [vmem:[%s8021_s0 + $0xb8] sm:$0xff]   ;;  %5118 = vmatpush3.bf16.msra.mxu0 %v6005_v3  ;;  %v6010_v8 = vld [vmem:[%s8021_s0 + $0xb0] sm:$0xff]   ;;  %v6014_v12 = vld [vmem:[%s8021_s0 + $0xa8] sm:$0xff]  }
   0x5   :  { %5158 = vmatpush3.bf16.msra.mxu1 %v6006_v4  ;;  %5119 = vmatprep.subr.bf16.mxu0 %v6007_v5  ;;  %v6015_v13 = vld [vmem:[%s8021_s0 + $0x60] sm:$0xff]   ;;  %v6019_v17 = vld [vmem:[%s8021_s0 + $0x58] sm:$0xff]   ;;  %v6023_v21 = vld [vmem:[%s8021_s0 + $0x50] sm:$0xff]  }
   0x6   :  { %5159 = vmatprep.subr.bf16.mxu1 %v6008_v6  ;;  %v6016_v14 = vld [vmem:[%s8021_s0 + $0xe0] sm:$0xff]   ;;  %v6020_v18 = vld [vmem:[%s8021_s0 + $0xd8] sm:$0xff]   ;;  %v6024_v22 = vld [vmem:[%s8021_s0 + $0xd0] sm:$0xff]  }
   0x7   :  { %v6017_v15 = vld [vmem:[%s8021_s0 + $0x20] sm:$0xff]   ;;  %v6021_v19 = vld [vmem:[%s8021_s0 + $0x18] sm:$0xff]   ;;  %v6025_v23 = vld [vmem:[%s8021_s0 + $0x10] sm:$0xff]  }
   0x8   :  { %5120 = vmatpush3.bf16.msra.mxu0 %v6009_v7  ;;  %v6018_v16 = vld [vmem:[%s8021_s0 + $0xa0] sm:$0xff]   ;;  %v6022_v20 = vld [vmem:[%s8021_s0 + $0x98] sm:$0xff]   ;;  %v6026_v24 = vld [vmem:[%s8021_s0 + $0x90] sm:$0xff]  }
   0x9   :  { %5160 = vmatpush3.bf16.msra.mxu1 %v6010_v8  ;;  %5121 = vmatprep.subr.bf16.mxu0 %v6011_v9  ;;  %v6027_v25 = vld [vmem:[%s8021_s0 + $0x48] sm:$0xff]   ;;  %v6031_v29 = vld [vmem:[%s8021_s0 + $0x40] sm:$0xff]   ;;  %v6041_v37 = vld [vmem:[%s8021_s0 + $0x178] sm:$0xff]  }
   0xa   :  { %5161 = vmatprep.subr.bf16.mxu1 %v6012_v10  ;;  %v6028_v26 = vld [vmem:[%s8021_s0 + $0xc8] sm:$0xff]   ;;  %v6032_v30 = vld [vmem:[%s8021_s0 + $0xc0] sm:$0xff]   ;;  %v6042_v38 = vld [vmem:[%s8021_s0 + $0x138] sm:$0xff]  }
   0xb   :  { %v6029_v27 = vld [vmem:[%s8021_s0 + $0x8] sm:$0xff]   ;;  %v6033_v31 = vld [vmem:[%s8021_s0] sm:$0xff]   ;;  %v6043_v39 = vld [vmem:[%s8021_s0 + $0x170] sm:$0xff]  }
   0xc   :  { %5122 = vmatpush3.bf16.msra.mxu0 %v6013_v11  ;;  %v6030_v28 = vld [vmem:[%s8021_s0 + $0x88] sm:$0xff]   ;;  %v6034_v32 = vld [vmem:[%s8021_s0 + $0x80] sm:$0xff]   ;;  %v6044_v40 = vld [vmem:[%s8021_s0 + $0x130] sm:$0xff]  }
   0xd   :  { %5162 = vmatpush3.bf16.msra.mxu1 %v6014_v12  ;;  %5123 = vmatprep.subr.bf16.mxu0 %v6015_v13  ;;  %v6492_v33 = vld [vmem:[%s8022_s1 + $0x4] ss:$16 sps:$4 sm:$0xff]   ;;  %v6037_v34 = vld [vmem:[%s8022_s1 + $0xc] ss:$16 sps:$4 sm:$0xff]   ;;  %v6501_v35 = vld [vmem:[%s8022_s1] ss:$16 sps:$4 sm:$0xff]  }
   0xe   :  { %5163 = vmatprep.subr.bf16.mxu1 %v6016_v14  ;;  %463 = vmatprep.mubr.bf16.mxu0 %v6492_v33  ;;  %v6040_v36 = vld [vmem:[%s8022_s1 + $0x8] ss:$16 sps:$4 sm:$0xff]   ;;  %v6522_v41 = vld [vmem:[%s8022_s1 + $0x24] ss:$16 sps:$4 sm:$0xff]   ;;  %v6047_v42 = vld [vmem:[%s8022_s1 + $0x2c] ss:$16 sps:$4 sm:$0xff]  }
   0xf   :  { %528 = vmatprep.mubr.bf16.mxu1 %v6037_v34  ;;  %v6530_v43 = vld [vmem:[%s8022_s1 + $0x20] ss:$16 sps:$4 sm:$0xff]   ;;  %v6050_v44 = vld [vmem:[%s8022_s1 + $0x28] ss:$16 sps:$4 sm:$0xff]   ;;  %v6055_v49 = vld [vmem:[%s8022_s1 + $0x44] ss:$16 sps:$4 sm:$0xff]  }
  0x10   :  { %5124 = vmatpush3.bf16.msra.mxu0 %v6017_v15  ;;  %v6051_v45 = vld [vmem:[%s8021_s0 + $0x168] sm:$0xff]   ;;  %v6053_v47 = vld [vmem:[%s8021_s0 + $0x160] sm:$0xff]   ;;  %v6061_v53 = vld [vmem:[%s8021_s0 + $0x158] sm:$0xff]  }
  0x11   :  { %5164 = vmatpush3.bf16.msra.mxu1 %v6018_v16  ;;  %5125 = vmatprep.subr.bf16.mxu0 %v6019_v17  ;;  %v6052_v46 = vld [vmem:[%s8021_s0 + $0x128] sm:$0xff]   ;;  %v6054_v48 = vld [vmem:[%s8021_s0 + $0x120] sm:$0xff]   ;;  %v6062_v54 = vld [vmem:[%s8021_s0 + $0x118] sm:$0xff]  }
  0x12   :  { %5165 = vmatprep.subr.bf16.mxu1 %v6020_v18  ;;  %v6057_v50 = vld [vmem:[%s8022_s1 + $0x4c] ss:$16 sps:$4 sm:$0xff]   ;;  %v6059_v51 = vld [vmem:[%s8022_s1 + $0x40] ss:$16 sps:$4 sm:$0xff]   ;;  %v6060_v52 = vld [vmem:[%s8022_s1 + $0x48] ss:$16 sps:$4 sm:$0xff]  }
  0x13   :  { %v6063_v55 = vld [vmem:[%s8021_s0 + $0x150] sm:$0xff]   ;;  %v6067_v57 = vld [vmem:[%s8022_s1 + $0x6c] ss:$16 sps:$4 sm:$0xff]   ;;  %v6070_v61 = vld [vmem:[%s8022_s1 + $0x68] ss:$16 sps:$4 sm:$0xff]  }
  0x14   :  { %5126 = vmatpush3.bf16.msra.mxu0 %v6021_v19  ;;  %v6065_v56 = vld [vmem:[%s8022_s1 + $0x64] ss:$16 sps:$4 sm:$0xff]   ;;  %v6069_v59 = vld [vmem:[%s8022_s1 + $0x60] ss:$16 sps:$4 sm:$0xff]   ;;  %v6071_v60 = vld [vmem:[%s8021_s0 + $0x148] sm:$0xff]  }
  0x15   :  { %5166 = vmatpush3.bf16.msra.mxu1 %v6022_v20  ;;  %5127 = vmatprep.subr.bf16.mxu0 %v6023_v21  ;;  %v6064_v58 = vld [vmem:[%s8021_s0 + $0x110] sm:$0xff]   ;;  %v6072_v62 = vld [vmem:[%s8021_s0 + $0x108] sm:$0xff]   ;;  %v38_v63 = vld [vmem:[%s8023_s2] sm:$0xff] }
  0x16   :  { %5167 = vmatprep.subr.bf16.mxu1 %v6024_v22  ;;  %v6073_v0 = vld [vmem:[%s8021_s0 + $0x140] sm:$0xff]   ;;  %121 = vperm.xlu0 %6001, %v38_v63   ;;  %v40_v1 = vld [vmem:[%s8023_s2 + $0x10] sm:$0xff]  ;;  %v39_v3 = vld [vmem:[%s8023_s2 + $0x8] sm:$0xff] }
  0x17   :  { %v6074_v2 = vld [vmem:[%s8021_s0 + $0x100] sm:$0xff]   ;;  %131 = vperm.xlu1 %6002, %v40_v1   ;;  %v41_v4 = vld [vmem:[%s8023_s2 + $0x18] sm:$0xff]  ;;  %v43_v6 = vld [vmem:[%s8023_s2 + $0x28] sm:$0xff] }
  0x18   :  { %5128 = vmatpush3.bf16.msra.mxu0 %v6025_v23  ;;  %v42_v5 = vld [vmem:[%s8023_s2 + $0x20] sm:$0xff]  ;;  %v44_v7 = vld [vmem:[%s8023_s2 + $0x30] sm:$0xff]  ;;  %v45_v8 = vld [vmem:[%s8023_s2 + $0x38] sm:$0xff] }
  0x19   :  { %5168 = vmatpush3.bf16.msra.mxu1 %v6026_v24  ;;  %5129 = vmatprep.subr.bf16.mxu0 %v6027_v25 }
  0x1a   :  { %5169 = vmatprep.subr.bf16.mxu1 %v6028_v26  ;;  %126 = vperm.xlu0 %6001, %v39_v3  }
  0x1b   :  { %136 = vperm.xlu1 %6002, %v41_v4  }
  0x1c   :  { %5130 = vmatpush3.bf16.msra.mxu0 %v6029_v27 }
  0x1d   :  { %5170 = vmatpush3.bf16.msra.mxu1 %v6030_v28  ;;  %5131 = vmatprep.subr.bf16.mxu0 %v6031_v29 }
  0x1e   :  { %5171 = vmatprep.subr.bf16.mxu1 %v6032_v30  ;;  %141 = vperm.xlu0 %6001, %v42_v5  }
  0x1f   :  { %146 = vperm.xlu1 %6002, %v43_v6  }
  0x20   :  { %5132 = vmatpush3.bf16.msra.mxu0 %v6033_v31 }
  0x21   :  { %5172 = vmatpush3.bf16.msra.mxu1 %v6034_v32 }
  0x22   :  { %5206 = vmatprep.subr.bf16.mxu1 %v6041_v37  ;;  %151 = vperm.xlu0 %6001, %v44_v7  }
  0x23   :  { %464 = vmatmul.mubr.bf16.vlgmr.msra.gmra.mxu0 %v6501_v35  ;;  %156 = vperm.xlu1 %6002, %v45_v8  }
  0x24   :  { %529 = vmatmul.mubr.bf16.vlgmr.msra.gmra.mxu1 %v6040_v36  ;;  %471 = vmatprep.mubr.bf16.mxu0 %v6522_v41 }
  0x25   :  { %5207 = vmatpush3.bf16.msra.mxu1 %v6042_v38  ;;  %536 = vmatprep.mubr.bf16.mxu1 %v6047_v42 }
  0x26   :  { %5208 = vmatprep.subr.bf16.mxu1 %v6043_v39 }
  0x29   :  { %5209 = vmatpush3.bf16.msra.mxu1 %v6044_v40 }
  0x2a   :  { %5210 = vmatprep.subr.bf16.mxu1 %v6051_v45 }
  0x2b   :  { %472 = vmatmul.mubr.bf16.gmra.mxu0 %v6530_v43 }
  0x2c   :  { %537 = vmatmul.mubr.bf16.gmra.mxu1 %v6050_v44  ;;  %479 = vmatprep.mubr.bf16.mxu0 %v6055_v49 }
  0x2d   :  { %5211 = vmatpush3.bf16.msra.mxu1 %v6052_v46  ;;  %544 = vmatprep.mubr.bf16.mxu1 %v6057_v50 }
  0x2e   :  { %5212 = vmatprep.subr.bf16.mxu1 %v6053_v47 }
  0x31   :  { %5213 = vmatpush3.bf16.msra.mxu1 %v6054_v48 }
  0x32   :  { %5214 = vmatprep.subr.bf16.mxu1 %v6061_v53 }
  0x33   :  { %480 = vmatmul.mubr.bf16.gmra.mxu0 %v6059_v51 }
  0x34   :  { %545 = vmatmul.mubr.bf16.gmra.mxu1 %v6060_v52  ;;  %487 = vmatprep.mubr.bf16.mxu0 %v6065_v56 }
  0x35   :  { %5215 = vmatpush3.bf16.msra.mxu1 %v6062_v54  ;;  %552 = vmatprep.mubr.bf16.mxu1 %v6067_v57 }
  0x36   :  { %5216 = vmatprep.subr.bf16.mxu1 %v6063_v55 }
  0x39   :  { %5217 = vmatpush3.bf16.msra.mxu1 %v6064_v58 }
  0x3a   :  { %5218 = vmatprep.subr.bf16.mxu1 %v6071_v60 }
  0x3b   :  { %488 = vmatmul.mubr.bf16.gmra.mxu0 %v6069_v59 }
  0x3c   :  { %553 = vmatmul.mubr.bf16.gmra.mxu1 %v6070_v61 }
  0x3d   :  { %989 = vmatprep.mubr.bf16.mxu1 %v6492_v33  ;;  %5219 = vmatpush3.bf16.msra.mxu1 %v6072_v62 }
  0x3e   :  { %5220 = vmatprep.subr.bf16.mxu1 %v6073_v0 }
  0x41   :  { %5221 = vmatpush3.bf16.msra.mxu1 %v6074_v2 }
  0x44   :  { %990 = vmatmul.mubr.bf16.vlgmr.msra.gmra.mxu1 %v6501_v35 }
  0x45   :  { %997 = vmatprep.mubr.bf16.mxu1 %v6522_v41 }
  0x4c   :  { %998 = vmatmul.mubr.bf16.gmra.mxu1 %v6530_v43 }
  0x4d   :  { %1005 = vmatprep.mubr.bf16.mxu1 %v6055_v49 }
  0x54   :  { %1006 = vmatmul.mubr.bf16.gmra.mxu1 %v6059_v51 }
  0x55   :  { %1013 = vmatprep.mubr.bf16.mxu1 %v6065_v56 }
  0x5c   :  { %1014 = vmatmul.mubr.bf16.gmra.mxu1 %v6069_v59 }
  0x5d   :  { %10 = vsyncpa [#allocation3], 0  ;;  %vm569_vm0 = vcmask 523264   ;;  %vm6361_vm1 = vmmov 0  }
  0x91   :  { %v6625_v11 = vpop.permute.xlu0 %121 }
  0x92   :  { %v6630_v26 = vpop.permute.xlu1 %131 }
  0x95   :  { %v6628_v21 = vpop.permute.xlu0 %126 }
  0x96   :  { %v6635_v42 = vpop.permute.xlu1 %136 }
  0x99   :  { %v6639_v53 = vpop.permute.xlu0 %141 }
  0x9a   :  { %v6643_v0 = vpop.permute.xlu1 %146 }
  0xe3   :  { %v5133_v9 = vpop.f32.mrf.mxu0 }
  0xe4   :  { %v5173_v10 = vpop.f32.mrf.mxu1 }
  0xe5   :  { %v5134_v12 = vpop.f32.mrf.mxu0 }
  0xe6   :  { %v5174_v13 = vpop.f32.mrf.mxu1  ;;  %v5135_v14 = vadd.f32 %v5134_v12, %v5133_v9  ;;  %v6647_v12 = vpop.permute.xlu0 %151 }
  0xe7   :  { %v5136_v15 = vpop.f32.mrf.mxu0  ;;  %v5175_v18 = vadd.f32 %v5174_v13, %v5173_v10 }
  0xe8   :  { %v5176_v16 = vpop.f32.mrf.mxu1  ;;  %v466_v17 = vadd.f32 %v5135_v14, %v6625_v11 }
  0xe9   :  { %v5137_v19 = vpop.f32.mrf.mxu0 }
  0xea   :  { %v5177_v20 = vpop.f32.mrf.mxu1  ;;  %v5138_v22 = vadd.f32 %v5137_v19, %v5136_v15  ;;  %v531_v23 = vadd.f32 %v5175_v18, %v466_v17 }
  0xeb   :  { %v5139_v24 = vpop.f32.mrf.mxu0  ;;  %v5178_v28 = vadd.f32 %v5177_v20, %v5176_v16 }
  0xec   :  { %v5179_v25 = vpop.f32.mrf.mxu1  ;;  %v469_v27 = vadd.f32 %v5138_v22, %v6628_v21  ;;  %v561_v29 = vmax.f32 %v531_v23, 0.0 }
  0xed   :  { %v5140_v30 = vpop.f32.mrf.mxu0 }
  0xee   :  { %v5180_v31 = vpop.f32.mrf.mxu1  ;;  %v534_v32 = vadd.f32 %v5178_v28, %v469_v27  ;;  %v5141_v33 = vadd.f32 %v5140_v30, %v5139_v24  ;;  %v570_v34 = vsel %vm569_vm0, %v561_v29, 0.0  ;;  %v6652_v28 = vpop.permute.xlu1 %156 }
  0xef   :  { %v5142_v35 = vpop.f32.mrf.mxu0  ;;  %571 = vadd.xlane.f32.xlu0 %v570_v34  ;;  %v5181_v38 = vadd.f32 %v5180_v31, %v5179_v25 }
  0xf0   :  { %v5182_v36 = vpop.f32.mrf.mxu1  ;;  %v474_v37 = vadd.f32 %v5141_v33, %v6630_v26  ;;  %v562_v39 = vmax.f32 %v534_v32, 0.0 }
  0xf1   :  { %v5143_v40 = vpop.f32.mrf.mxu0 }
  0xf2   :  { %v5183_v41 = vpop.f32.mrf.mxu1  ;;  %v5144_v43 = vadd.f32 %v5143_v40, %v5142_v35  ;;  %v573_v44 = vsel %vm569_vm0, %v562_v39, 0.0  ;;  %v539_v45 = vadd.f32 %v5181_v38, %v474_v37  ;;  %v6360_v37 = vmov 0.0   ;;  %v6666_v38 = vld [vmem:[%s8024_s3 + $0x30] sm:$0xff]  ;;  %v6676_v39 = vld [vmem:[%s8024_s3 + $0x28] sm:$0xff]  ;;  %v6685_v40 = vld [vmem:[%s8024_s3 + $0x20] sm:$0xff] }
  0xf3   :  { %v5145_v46 = vpop.f32.mrf.mxu0  ;;  %574 = vadd.xlane.f32.xlu1 %v573_v44  ;;  %v5184_v49 = vadd.f32 %v5183_v41, %v5182_v36  ;;  %v6660_v36 = vld [vmem:[%s8024_s3 + $0x38] sm:$0xff]  ;;  %5829 = vmatprep.subr.mxu0 %v6360_v37  ;;  %v6712_v44 = vld [vmem:[%s8024_s3 + $0x8] sm:$0xff] }
  0xf4   :  { %v5185_v47 = vpop.f32.mrf.mxu1  ;;  %v477_v48 = vadd.f32 %v5144_v43, %v6635_v42  ;;  %v563_v50 = vmax.f32 %v539_v45, 0.0  ;;  %5845 = vmatprep.mubr.msk.f32.mxu0 %vm6361_vm1, %v6360_v37  ;;  %5830 = vmatpush3.msra.mxu0 %v6660_v36  ;;  %v6694_v41 = vld [vmem:[%s8024_s3 + $0x18] sm:$0xff]  ;;  %v6703_v43 = vld [vmem:[%s8024_s3 + $0x10] sm:$0xff]  ;;  %v6721_v45 = vld [vmem:[%s8024_s3] sm:$0xff] }
  0xf5   :  { %v5146_v51 = vpop.f32.mrf.mxu0  ;;  %5848 = vmatprep.subr.mxu1 %v6360_v37  ;;  %5831 = vmatprep.subr.mxu0 %v6360_v37 }
  0xf6   :  { %v5186_v52 = vpop.f32.mrf.mxu1  ;;  %v542_v54 = vadd.f32 %v5184_v49, %v477_v48  ;;  %v5147_v55 = vadd.f32 %v5146_v51, %v5145_v46  ;;  %v576_v56 = vsel %vm569_vm0, %v563_v50, 0.0  ;;  %5849 = vmatpush3.msra.mxu1 %v6660_v36  ;;  %5832 = vmatpush3.msra.mxu0 %v6666_v38  ;;  %v6075_v46 = vld [vmem:[%s8021_s0 + $0x1f8] sm:$0xff]  }
  0xf7   :  { %v5148_v57 = vpop.f32.mrf.mxu0  ;;  %577 = vadd.xlane.f32.xlu0 %v576_v56  ;;  %v5187_v60 = vadd.f32 %v5186_v52, %v5185_v47  ;;  %5850 = vmatprep.subr.mxu1 %v6360_v37  ;;  %v6076_v56 = vld [vmem:[%s8021_s0 + $0x1b8] sm:$0xff]  }
  0xf8   :  { %v5188_v58 = vpop.f32.mrf.mxu1  ;;  %v482_v59 = vadd.f32 %v5147_v55, %v6639_v53  ;;  %v564_v61 = vmax.f32 %v542_v54, 0.0  ;;  %5833 = vmatprep.subr.mxu0 %v6360_v37  ;;  %5851 = vmatpush3.msra.mxu1 %v6666_v38 }
  0xf9   :  { %v5149_v62 = vpop.f32.mrf.mxu0  ;;  %5834 = vmatpush3.msra.mxu0 %v6676_v39  ;;  %5852 = vmatprep.subr.mxu1 %v6360_v37 }
  0xfa   :  { %v5189_v63 = vpop.f32.mrf.mxu1  ;;  %v5150_v1 = vadd.f32 %v5149_v62, %v5148_v57  ;;  %v579_v2 = vsel %vm569_vm0, %v564_v61, 0.0  ;;  %v547_v3 = vadd.f32 %v5187_v60, %v482_v59  ;;  %5835 = vmatprep.subr.mxu0 %v6360_v37  ;;  %5853 = vmatpush3.msra.mxu1 %v6676_v39  ;;  %v6077_v57 = vld [vmem:[%s8021_s0 + $0x1f0] sm:$0xff]   ;;  %v6749_v60 = vld [vmem:[%s8022_s1 + $0xc] ss:$16 sps:$4 sm:$0xff]  }
  0xfb   :  { %v5151_v4 = vpop.f32.mrf.mxu0  ;;  %580 = vadd.xlane.f32.xlu0 %v579_v2  ;;  %v5190_v7 = vadd.f32 %v5189_v63, %v5188_v58  ;;  %5836 = vmatpush3.msra.mxu0 %v6685_v40  ;;  %v6078_v59 = vld [vmem:[%s8021_s0 + $0x1b0] sm:$0xff]   ;;  %v6079_v61 = vld [vmem:[%s8021_s0 + $0x1e8] sm:$0xff]   ;;  %v6081_v63 = vld [vmem:[%s8021_s0 + $0x1e0] sm:$0xff]  }
  0xfc   :  { %v5191_v5 = vpop.f32.mrf.mxu1  ;;  %v485_v6 = vadd.f32 %v5150_v1, %v6643_v0  ;;  %v565_v8 = vmax.f32 %v547_v3, 0.0  ;;  %5854 = vmatprep.subr.mxu1 %v6360_v37  ;;  %5837 = vmatprep.subr.mxu0 %v6360_v37  ;;  %v6080_v62 = vld [vmem:[%s8021_s0 + $0x1a8] sm:$0xff]   ;;  %v6082_v1 = vld [vmem:[%s8021_s0 + $0x1a0] sm:$0xff]   ;;  %v6083_v2 = vld [vmem:[%s8021_s0 + $0x1d8] sm:$0xff]  }
  0xfd   :  { %v5152_v9 = vpop.f32.mrf.mxu0  ;;  %5855 = vmatpush3.msra.mxu1 %v6685_v40  ;;  %5838 = vmatpush3.msra.mxu0 %v6694_v41  ;;  %v6084_v3 = vld [vmem:[%s8021_s0 + $0x198] sm:$0xff]  }
  0xfe   :  { %v5192_v10 = vpop.f32.mrf.mxu1  ;;  %v550_v13 = vadd.f32 %v5190_v7, %v485_v6  ;;  %v5153_v14 = vadd.f32 %v5152_v9, %v5151_v4  ;;  %v582_v15 = vsel %vm569_vm0, %v565_v8, 0.0  ;;  %5856 = vmatprep.subr.mxu1 %v6360_v37  ;;  %5839 = vmatprep.subr.mxu0 %v6360_v37  ;;  %v6085_v4 = vld [vmem:[%s8021_s0 + $0x1d0] sm:$0xff]   ;;  %v6087_v6 = vld [vmem:[%s8021_s0 + $0x1c8] sm:$0xff]   ;;  %v6089_v8 = vld [vmem:[%s8021_s0 + $0x1c0] sm:$0xff]  }
  0xff   :  { %v5154_v16 = vpop.f32.mrf.mxu0  ;;  %583 = vadd.xlane.f32.xlu1 %v582_v15  ;;  %v5193_v19 = vadd.f32 %v5192_v10, %v5191_v5  ;;  %5857 = vmatpush3.msra.mxu1 %v6694_v41  ;;  %v6086_v5 = vld [vmem:[%s8021_s0 + $0x190] sm:$0xff]   ;;  %v6088_v7 = vld [vmem:[%s8021_s0 + $0x188] sm:$0xff]   ;;  %v6090_v9 = vld [vmem:[%s8021_s0 + $0x180] sm:$0xff]  }
 0x100   :  { %v5194_v17 = vpop.f32.mrf.mxu1  ;;  %v490_v18 = vadd.f32 %v5153_v14, %v6647_v12  ;;  %v566_v20 = vmax.f32 %v550_v13, 0.0  ;;  %5840 = vmatpush3.msra.mxu0 %v6703_v43  ;;  %5858 = vmatprep.subr.mxu1 %v6360_v37  ;;  %v6091_v10 = vld [vmem:[%s8021_s0 + $0x278] sm:$0xff]   ;;  %v6093_v14 = vld [vmem:[%s8021_s0 + $0x270] sm:$0xff]  }
 0x101   :  { %v5155_v22 = vpop.f32.mrf.mxu0  ;;  %5841 = vmatprep.subr.mxu0 %v6360_v37  ;;  %5859 = vmatpush3.msra.mxu1 %v6703_v43  ;;  %v6092_v13 = vld [vmem:[%s8021_s0 + $0x238] sm:$0xff]  }
 0x102   :  { %v5195_v23 = vpop.f32.mrf.mxu1  ;;  %v5156_v24 = vadd.f32 %v5155_v22, %v5154_v16  ;;  %v585_v25 = vsel %vm569_vm0, %v566_v20, 0.0  ;;  %v555_v27 = vadd.f32 %v5193_v19, %v490_v18  ;;  %5842 = vmatpush3.msra.mxu0 %v6712_v44  ;;  %5860 = vmatprep.subr.mxu1 %v6360_v37  ;;  %v6800_v15 = vld [vmem:[%s8022_s1 + $0x8] ss:$16 sps:$4 sm:$0xff]   ;;  %v6094_v16 = vld [vmem:[%s8021_s0 + $0x230] sm:$0xff]   ;;  %v6097_v20 = vld [vmem:[%s8021_s0 + $0x260] sm:$0xff]  }
 0x103   :  { %586 = vadd.xlane.f32.xlu0 %v585_v25  ;;  %v5196_v30 = vadd.f32 %v5195_v23, %v5194_v17  ;;  %5843 = vmatprep.subr.mxu0 %v6360_v37  ;;  %v6809_v17 = vld [vmem:[%s8022_s1 + $0x2c] ss:$16 sps:$4 sm:$0xff]   ;;  %v6824_v22 = vld [vmem:[%s8022_s1 + $0x28] ss:$16 sps:$4 sm:$0xff]   ;;  %v6098_v23 = vld [vmem:[%s8021_s0 + $0x220] sm:$0xff]  }
 0x104   :  { %v493_v29 = vadd.f32 %v5156_v24, %v6652_v28  ;;  %v567_v31 = vmax.f32 %v555_v27, 0.0  ;;  %5861 = vmatpush3.msra.mxu1 %v6712_v44  ;;  %5844 = vmatpush3.msra.mxu0 %v6721_v45  ;;  %v6095_v18 = vld [vmem:[%s8021_s0 + $0x268] sm:$0xff]   ;;  %v6099_v25 = vld [vmem:[%s8021_s0 + $0x258] sm:$0xff]  }
 0x105   :  { %5862 = vmatprep.subr.mxu1 %v6360_v37  ;;  %5246 = vmatprep.subr.bf16.mxu0 %v6075_v46  ;;  %v6096_v19 = vld [vmem:[%s8021_s0 + $0x228] sm:$0xff]   ;;  %v6100_v27 = vld [vmem:[%s8021_s0 + $0x218] sm:$0xff]  }
 0x106   :  { %v558_v32 = vadd.f32 %v5196_v30, %v493_v29  ;;  %v588_v33 = vsel %vm569_vm0, %v567_v31, 0.0  ;;  %5863 = vmatpush3.msra.mxu1 %v6721_v45  ;;  %5864 = vmatprep.mubr.msk.f32.mxu1 %vm6361_vm1, %v6360_v37  ;;  %v6833_v24 = vld [vmem:[%s8022_s1 + $0x4c] ss:$16 sps:$4 sm:$0xff]   ;;  %v6101_v29 = vld [vmem:[%s8021_s0 + $0x250] sm:$0xff]   ;;  %v6848_v30 = vld [vmem:[%s8022_s1 + $0x48] ss:$16 sps:$4 sm:$0xff]  }
 0x107   :  { %589 = vadd.xlane.f32.xlu1 %v588_v33  ;;  %v6102_v31 = vld [vmem:[%s8021_s0 + $0x210] sm:$0xff]   ;;  %v6103_v33 = vld [vmem:[%s8021_s0 + $0x248] sm:$0xff]  }
 0x108   :  { %v568_v34 = vmax.f32 %v558_v32, 0.0  ;;  %v6857_v32 = vld [vmem:[%s8022_s1 + $0x6c] ss:$16 sps:$4 sm:$0xff]   ;;  %v6872_v46 = vld [vmem:[%s8022_s1 + $0x68] ss:$16 sps:$4 sm:$0xff]  }
 0x10a   :  { %v591_v35 = vsel %vm569_vm0, %v568_v34, 0.0  ;;  %v6104_v34 = vld [vmem:[%s8021_s0 + $0x208] sm:$0xff]  }
 0x10b   :  { %592 = vadd.xlane.f32.xlu0 %v591_v35  ;;  %v6105_v35 = vld [vmem:[%s8021_s0 + $0x240] sm:$0xff]  }
 0x178   :  { %v572_v47 = vpop.xlane.xlu0 %571 }
 0x179   :  { %594 = vxpose.xlu1.b32.start [1/8] (short) (narrow) %v572_v47, 8  ;;  %v6106_v47 = vld [vmem:[%s8021_s0 + $0x200] sm:$0xff]  }
 0x17c   :  { %v575_v48 = vpop.xlane.xlu1 %574 }
 0x17d   :  { %595 = vxpose.xlu1.b32.cont [2/8] (short) (narrow) %v575_v48, 8  ;;  %v6881_v48 = vld [vmem:[%s8022_s1 + $0x4] ss:$16 sps:$4 sm:$0xff]  }
 0x180   :  { %v578_v49 = vpop.xlane.xlu0 %577 }
 0x181   :  { %596 = vxpose.xlu1.b32.cont [3/8] (short) (narrow) %v578_v49, 8  ;;  %v6888_v49 = vld [vmem:[%s8022_s1] ss:$16 sps:$4 sm:$0xff]  }
 0x184   :  { %v581_v50 = vpop.xlane.xlu0 %580 }
 0x185   :  { %597 = vxpose.xlu1.b32.cont [4/8] (short) (narrow) %v581_v50, 8  ;;  %v6894_v50 = vld [vmem:[%s8022_s1 + $0x24] ss:$16 sps:$4 sm:$0xff]  }
 0x188   :  { %v584_v51 = vpop.xlane.xlu1 %583 }
 0x189   :  { %598 = vxpose.xlu1.b32.cont [5/8] (short) (narrow) %v584_v51, 8  ;;  %v6907_v51 = vld [vmem:[%s8022_s1 + $0x20] ss:$16 sps:$4 sm:$0xff]  }
 0x18c   :  { %v587_v52 = vpop.xlane.xlu0 %586 }
 0x18d   :  { %599 = vxpose.xlu1.b32.cont [6/8] (short) (narrow) %v587_v52, 8  ;;  %v6914_v52 = vld [vmem:[%s8022_s1 + $0x44] ss:$16 sps:$4 sm:$0xff]  }
 0x190   :  { %v590_v54 = vpop.xlane.xlu1 %589 }
 0x191   :  { %600 = vxpose.xlu1.b32.cont [7/8] (short) (narrow) %v590_v54, 8  ;;  %v6927_v54 = vld [vmem:[%s8022_s1 + $0x40] ss:$16 sps:$4 sm:$0xff]  }
 0x194   :  { %v593_v55 = vpop.xlane.xlu0 %592 }
 0x195   :  { %601 = vxpose.xlu1.b32.end [8/8] (short) (narrow) %v593_v55, 8  ;;  %v6933_v55 = vld [vmem:[%s8022_s1 + $0x64] ss:$16 sps:$4 sm:$0xff]  }
 0x1f5   :  { %v610_v58 = vpop.trf.xlu1 }
 0x1f6   :  { %5846 = vmatmul.mubr.msk.f32.vlgmr.msra.gmra.mxu0 %vm569_vm0, %v610_v58  ;;  %v6947_v58 = vld [vmem:[%s8025_s4] sm:$0x1] }
 0x1f7   :  { %5247 = vmatpush3.bf16.msra.mxu0 %v6076_v56  ;;  %1054 = vmatprep.mubr.bf16.mxu0 %v6749_v60  ;;  %v6939_v56 = vld [vmem:[%s8022_s1 + $0x60] ss:$16 sps:$4 sm:$0xff]  }
 0x1f8   :  { %5248 = vmatprep.subr.bf16.mxu0 %v6077_v57  ;;  %v5222_v57 = vpop.f32.mrf.mxu1 }
 0x1fb   :  { %5249 = vmatpush3.bf16.msra.mxu0 %v6078_v59  ;;  %v5223_v59 = vpop.f32.mrf.mxu1 }
 0x1fc   :  { %5250 = vmatprep.subr.bf16.mxu0 %v6079_v61 }
 0x1ff   :  { %5251 = vmatpush3.bf16.msra.mxu0 %v6080_v62 }
 0x200   :  { %5252 = vmatprep.subr.bf16.mxu0 %v6081_v63 }
 0x203   :  { %5253 = vmatpush3.bf16.msra.mxu0 %v6082_v1  ;;  %v5225_v1 = vpop.f32.mrf.mxu1 }
 0x204   :  { %5254 = vmatprep.subr.bf16.mxu0 %v6083_v2 }
 0x205   :  { %v5226_v2 = vpop.f32.mrf.mxu1 }
 0x207   :  { %5255 = vmatpush3.bf16.msra.mxu0 %v6084_v3  ;;  %v5228_v3 = vpop.f32.mrf.mxu1 }
 0x208   :  { %5256 = vmatprep.subr.bf16.mxu0 %v6085_v4 }
 0x209   :  { %v5229_v4 = vpop.f32.mrf.mxu1 }
 0x20b   :  { %5257 = vmatpush3.bf16.msra.mxu0 %v6086_v5  ;;  %v5231_v5 = vpop.f32.mrf.mxu1 }
 0x20c   :  { %5258 = vmatprep.subr.bf16.mxu0 %v6087_v6 }
 0x20d   :  { %v5232_v6 = vpop.f32.mrf.mxu1 }
 0x20f   :  { %5259 = vmatpush3.bf16.msra.mxu0 %v6088_v7  ;;  %v5234_v7 = vpop.f32.mrf.mxu1 }
 0x210   :  { %5260 = vmatprep.subr.bf16.mxu0 %v6089_v8  ;;  %v5224_v8 = vadd.f32 %v5223_v59, %v5222_v57 }
 0x213   :  { %5261 = vmatpush3.bf16.msra.mxu0 %v6090_v9  ;;  %v5235_v9 = vpop.f32.mrf.mxu1 }
 0x214   :  { %5295 = vmatprep.subr.bf16.mxu0 %v6091_v10 }
 0x216   :  { %1055 = vmatmul.mubr.bf16.vlgmr.msra.gmra.mxu0 %v6800_v15 }
 0x217   :  { %5296 = vmatpush3.bf16.msra.mxu0 %v6092_v13  ;;  %1062 = vmatprep.mubr.bf16.mxu0 %v6809_v17 }
 0x218   :  { %5297 = vmatprep.subr.bf16.mxu0 %v6093_v14  ;;  %v992_v14 = vadd.f32 %v5224_v8, %v6625_v11 }
 0x21b   :  { %5298 = vmatpush3.bf16.msra.mxu0 %v6094_v16  ;;  %v5227_v16 = vadd.f32 %v5226_v2, %v5225_v1 }
 0x21c   :  { %5299 = vmatprep.subr.bf16.mxu0 %v6095_v18 }
 0x21e   :  { %1063 = vmatmul.mubr.bf16.gmra.mxu0 %v6824_v22 }
 0x21f   :  { %5300 = vmatpush3.bf16.msra.mxu0 %v6096_v19  ;;  %1070 = vmatprep.mubr.bf16.mxu0 %v6833_v24  ;;  %v5237_v19 = vpop.f32.mrf.mxu1 }
 0x220   :  { %5301 = vmatprep.subr.bf16.mxu0 %v6097_v20 }
 0x223   :  { %5302 = vmatpush3.bf16.msra.mxu0 %v6098_v23 }
 0x224   :  { %5303 = vmatprep.subr.bf16.mxu0 %v6099_v25 }
 0x226   :  { %1071 = vmatmul.mubr.bf16.gmra.mxu0 %v6848_v30 }
 0x227   :  { %5304 = vmatpush3.bf16.msra.mxu0 %v6100_v27  ;;  %1078 = vmatprep.mubr.bf16.mxu0 %v6857_v32  ;;  %v995_v27 = vadd.f32 %v5227_v16, %v6628_v21 }
 0x228   :  { %5305 = vmatprep.subr.bf16.mxu0 %v6101_v29  ;;  %v5230_v29 = vadd.f32 %v5229_v4, %v5228_v3 }
 0x22b   :  { %5306 = vmatpush3.bf16.msra.mxu0 %v6102_v31 }
 0x22c   :  { %5307 = vmatprep.subr.bf16.mxu0 %v6103_v33 }
 0x22e   :  { %1079 = vmatmul.mubr.bf16.gmra.mxu0 %v6872_v46 }
 0x22f   :  { %5308 = vmatpush3.bf16.msra.mxu0 %v6104_v34  ;;  %1514 = vmatprep.mubr.bf16.mxu0 %v6881_v48  ;;  %v5238_v34 = vpop.f32.mrf.mxu1 }
 0x230   :  { %5309 = vmatprep.subr.bf16.mxu0 %v6105_v35 }
 0x231   :  { %v5240_v2 = vpop.f32.mrf.mxu1 }
 0x233   :  { %5310 = vmatpush3.bf16.msra.mxu0 %v6106_v47 }
 0x234   :  { %5867 = vmatprep.subr.mxu0 %v6360_v37 }
 0x236   :  { %1515 = vmatmul.mubr.bf16.vlgmr.msra.gmra.mxu0 %v6888_v49 }
 0x237   :  { %1522 = vmatprep.mubr.bf16.mxu0 %v6894_v50  ;;  %5868 = vmatpush3.msra.mxu0 %v6660_v36 }
 0x238   :  { %5869 = vmatprep.subr.mxu0 %v6360_v37 }
 0x239   :  { %5870 = vmatpush3.msra.mxu0 %v6666_v38 }
 0x23a   :  { %5871 = vmatprep.subr.mxu0 %v6360_v37 }
 0x23b   :  { %5872 = vmatpush3.msra.mxu0 %v6676_v39 }
 0x23c   :  { %5873 = vmatprep.subr.mxu0 %v6360_v37 }
 0x23d   :  { %5874 = vmatpush3.msra.mxu0 %v6685_v40 }
 0x23e   :  { %1523 = vmatmul.mubr.bf16.gmra.mxu0 %v6907_v51  ;;  %5875 = vmatprep.subr.mxu0 %v6360_v37 }
 0x23f   :  { %1530 = vmatprep.mubr.bf16.mxu0 %v6914_v52  ;;  %5876 = vmatpush3.msra.mxu0 %v6694_v41 }
 0x240   :  { %5877 = vmatprep.subr.mxu0 %v6360_v37 }
 0x241   :  { %5878 = vmatpush3.msra.mxu0 %v6703_v43 }
 0x242   :  { %5879 = vmatprep.subr.mxu0 %v6360_v37 }
 0x243   :  { %5880 = vmatpush3.msra.mxu0 %v6712_v44 }
 0x244   :  { %5881 = vmatprep.subr.mxu0 %v6360_v37 }
 0x245   :  { %5882 = vmatpush3.msra.mxu0 %v6721_v45 }
 0x246   :  { %1531 = vmatmul.mubr.bf16.gmra.mxu0 %v6927_v54 }
 0x247   :  { %1538 = vmatprep.mubr.bf16.mxu0 %v6933_v55 }
 0x24e   :  { %1539 = vmatmul.mubr.bf16.gmra.mxu0 %v6939_v56 }
 0x24f   :  { %5883 = vmatprep.mubr.msk.f32.mxu0 %vm6361_vm1, %v6360_v37 }
 0x2b6   :  { %v695_v61 = vpop.f32.mrf.mxu0 }
 0x2b7   :  { %v696_v62 = vadd.f32 %v695_v61, %v6947_v58  ;;  %v1000_v61 = vadd.f32 %v5230_v29, %v6630_v26  ;;  %v5239_v29 = vadd.f32 %v5238_v34, %v5237_v19 }
 0x2b8   :  { %v5847_v63 = vpop.f32.mrf.mxu0 }
 0x2b9   :  { %699 = vst [vmem:[#allocation2] sm:$0x1] %v696_v62  ;;  %v5233_v62 = vadd.f32 %v5232_v6, %v5231_v5 }
 0x2bb   :  { %v1003_v4 = vadd.f32 %v5233_v62, %v6635_v42 }
 0x2d6   :  { %v5262_v10 = vpop.f32.mrf.mxu0 }
 0x2d8   :  { %v5263_v13 = vpop.f32.mrf.mxu0 }
 0x2d9   :  { %v5264_v18 = vadd.f32 %v5263_v13, %v5262_v10 }
 0x2da   :  { %v5265_v20 = vpop.f32.mrf.mxu0 }
 0x2db   :  { %v1057_v23 = vadd.f32 %v5264_v18, %v992_v14  ;;  %v5236_v14 = vadd.f32 %v5235_v9, %v5234_v7  ;;  %v1011_v9 = vadd.f32 %v5239_v29, %v6643_v0 }
 0x2dc   :  { %v5266_v25 = vpop.f32.mrf.mxu0 }
 0x2dd   :  { %v5267_v31 = vadd.f32 %v5266_v25, %v5265_v20  ;;  %v1087_v33 = vmax.f32 %v1057_v23, 0.0  ;;  %v5241_v20 = vpop.f32.mrf.mxu1  ;;  %v1008_v6 = vadd.f32 %v5236_v14, %v6639_v53 }
 0x2de   :  { %v5268_v35 = vpop.f32.mrf.mxu0 }
 0x2df   :  { %v1060_v47 = vadd.f32 %v5267_v31, %v995_v27  ;;  %v1095_v57 = vsel %vm569_vm0, %v1087_v33, 0.0 }
 0x2e0   :  { %v5269_v59 = vpop.f32.mrf.mxu0  ;;  %1096 = vadd.xlane.f32.xlu0 %v1095_v57 }
 0x2e1   :  { %v5270_v63 = vadd.f32 %v5269_v59, %v5268_v35  ;;  %v1088_v1 = vmax.f32 %v1060_v47, 0.0  ;;  %v5243_v35 = vpop.f32.mrf.mxu1 }
 0x2e2   :  { %v5271_v8 = vpop.f32.mrf.mxu0 }
 0x2e3   :  { %v1065_v10 = vadd.f32 %v5270_v63, %v1000_v61  ;;  %v1098_v13 = vsel %vm569_vm0, %v1088_v1, 0.0  ;;  %v5242_v61 = vadd.f32 %v5241_v20, %v5240_v2  ;;  %v5244_v1 = vpop.f32.mrf.mxu1 }
 0x2e4   :  { %v5272_v3 = vpop.f32.mrf.mxu0  ;;  %1099 = vadd.xlane.f32.xlu0 %v1098_v13 }
 0x2e5   :  { %v5273_v16 = vadd.f32 %v5272_v3, %v5271_v8  ;;  %v1089_v18 = vmax.f32 %v1065_v10, 0.0  ;;  %v1016_v34 = vadd.f32 %v5242_v61, %v6647_v12  ;;  %v5245_v3 = vadd.f32 %v5244_v1, %v5243_v35  ;;  %v6109_v1 = vld [vmem:[%s8021_s0 + $0x2f0] sm:$0xff]  }
 0x2e6   :  { %v5274_v23 = vpop.f32.mrf.mxu0 }
 0x2e7   :  { %v1068_v25 = vadd.f32 %v5273_v16, %v1003_v4  ;;  %v1101_v27 = vsel %vm569_vm0, %v1089_v18, 0.0  ;;  %v1019_v2 = vadd.f32 %v5245_v3, %v6652_v28  ;;  %v6114_v3 = vld [vmem:[%s8021_s0 + $0x2a0] sm:$0xff]  }
 0x2e8   :  { %v5275_v5 = vpop.f32.mrf.mxu0  ;;  %1102 = vadd.xlane.f32.xlu0 %v1101_v27 }
 0x2e9   :  { %v5276_v31 = vadd.f32 %v5275_v5, %v5274_v23  ;;  %v1090_v33 = vmax.f32 %v1068_v25, 0.0 }
 0x2ea   :  { %v5277_v47 = vpop.f32.mrf.mxu0 }
 0x2eb   :  { %v1073_v57 = vadd.f32 %v5276_v31, %v1008_v6  ;;  %v1104_v59 = vsel %vm569_vm0, %v1090_v33, 0.0  ;;  %v6107_v33 = vld [vmem:[%s8021_s0 + $0x2f8] sm:$0xff]  }
 0x2ec   :  { %v5278_v7 = vpop.f32.mrf.mxu0  ;;  %1105 = vadd.xlane.f32.xlu0 %v1104_v59  ;;  %5335 = vmatprep.subr.bf16.mxu1 %v6107_v33  ;;  %v6128_v33 = vld [vmem:[%s8021_s0 + $0x328] sm:$0xff]  }
 0x2ed   :  { %v5279_v62 = vadd.f32 %v5278_v7, %v5277_v47  ;;  %v1091_v63 = vmax.f32 %v1073_v57, 0.0 }
 0x2ee   :  { %v5280_v8 = vpop.f32.mrf.mxu0 }
 0x2ef   :  { %v1076_v10 = vadd.f32 %v5279_v62, %v1011_v9  ;;  %v1107_v13 = vsel %vm569_vm0, %v1091_v63, 0.0  ;;  %v6108_v63 = vld [vmem:[%s8021_s0 + $0x2b8] sm:$0xff]  }
 0x2f0   :  { %v5281_v19 = vpop.f32.mrf.mxu0  ;;  %1108 = vadd.xlane.f32.xlu0 %v1107_v13  ;;  %v6111_v13 = vld [vmem:[%s8021_s0 + $0x2e8] sm:$0xff]  }
 0x2f1   :  { %v5282_v4 = vadd.f32 %v5281_v19, %v5280_v8  ;;  %v1092_v14 = vmax.f32 %v1076_v10, 0.0  ;;  %v6110_v10 = vld [vmem:[%s8021_s0 + $0x2b0] sm:$0xff]   ;;  %v6112_v19 = vld [vmem:[%s8021_s0 + $0x2a8] sm:$0xff]  }
 0x2f2   :  { %v5283_v16 = vpop.f32.mrf.mxu0 }
 0x2f3   :  { %v1081_v18 = vadd.f32 %v5282_v4, %v1016_v34  ;;  %v1110_v23 = vsel %vm569_vm0, %v1092_v14, 0.0  ;;  %v6113_v34 = vld [vmem:[%s8021_s0 + $0x2e0] sm:$0xff]   ;;  %v6115_v4 = vld [vmem:[%s8021_s0 + $0x2d8] sm:$0xff]  }
 0x2f4   :  { %v5284_v25 = vpop.f32.mrf.mxu0  ;;  %1111 = vadd.xlane.f32.xlu0 %v1110_v23  ;;  %v6116_v14 = vld [vmem:[%s8021_s0 + $0x298] sm:$0xff]   ;;  %v6119_v23 = vld [vmem:[%s8021_s0 + $0x2c8] sm:$0xff]  }
 0x2f5   :  { %v5285_v20 = vadd.f32 %v5284_v25, %v5283_v16  ;;  %v1093_v27 = vmax.f32 %v1081_v18, 0.0  ;;  %v6117_v16 = vld [vmem:[%s8021_s0 + $0x2d0] sm:$0xff]   ;;  %v6120_v25 = vld [vmem:[%s8021_s0 + $0x288] sm:$0xff]  }
 0x2f6   :  { %v6118_v18 = vld [vmem:[%s8021_s0 + $0x290] sm:$0xff]  }
 0x2f7   :  { %v1084_v5 = vadd.f32 %v5285_v20, %v1019_v2  ;;  %v1113_v6 = vsel %vm569_vm0, %v1093_v27, 0.0  ;;  %v6121_v2 = vld [vmem:[%s8021_s0 + $0x2c0] sm:$0xff]   ;;  %v6123_v27 = vld [vmem:[%s8021_s0 + $0x378] sm:$0xff]  }
 0x2f8   :  { %1114 = vadd.xlane.f32.xlu0 %v1113_v6  ;;  %v6122_v20 = vld [vmem:[%s8021_s0 + $0x280] sm:$0xff]   ;;  %v6125_v6 = vld [vmem:[%s8021_s0 + $0x370] sm:$0xff]  }
 0x2f9   :  { %v1094_v29 = vmax.f32 %v1084_v5, 0.0  ;;  %v6124_v5 = vld [vmem:[%s8021_s0 + $0x338] sm:$0xff]  }
 0x2fb   :  { %v1116_v31 = vsel %vm569_vm0, %v1094_v29, 0.0  ;;  %v6126_v29 = vld [vmem:[%s8021_s0 + $0x330] sm:$0xff]  }
 0x2fc   :  { %1117 = vadd.xlane.f32.xlu0 %v1116_v31  ;;  %v6127_v31 = vld [vmem:[%s8021_s0 + $0x368] sm:$0xff]  }
 0x369   :  { %v1097_v35 = vpop.xlane.xlu0 %1096 }
 0x36a   :  { %1119 = vxpose.xlu0.b32.start [1/8] (short) (narrow) %v1097_v35, 8  ;;  %v6129_v35 = vld [vmem:[%s8021_s0 + $0x360] sm:$0xff]  }
 0x36d   :  { %v1100_v47 = vpop.xlane.xlu0 %1099 }
 0x36e   :  { %1120 = vxpose.xlu0.b32.cont [2/8] (short) (narrow) %v1100_v47, 8  ;;  %v6130_v47 = vld [vmem:[%s8021_s0 + $0x320] sm:$0xff]  }
 0x371   :  { %v1103_v57 = vpop.xlane.xlu0 %1102 }
 0x372   :  { %1121 = vxpose.xlu0.b32.cont [3/8] (short) (narrow) %v1103_v57, 8  ;;  %v6131_v57 = vld [vmem:[%s8021_s0 + $0x358] sm:$0xff]  }
 0x375   :  { %v1106_v59 = vpop.xlane.xlu0 %1105 }
 0x376   :  { %1122 = vxpose.xlu0.b32.cont [4/8] (short) (narrow) %v1106_v59, 8  ;;  %v6132_v59 = vld [vmem:[%s8021_s0 + $0x318] sm:$0xff]  }
 0x379   :  { %v1109_v7 = vpop.xlane.xlu0 %1108 }
 0x37a   :  { %1123 = vxpose.xlu0.b32.cont [5/8] (short) (narrow) %v1109_v7, 8  ;;  %v6133_v7 = vld [vmem:[%s8021_s0 + $0x350] sm:$0xff]  }
 0x37d   :  { %v1112_v9 = vpop.xlane.xlu0 %1111 }
 0x37e   :  { %1124 = vxpose.xlu0.b32.cont [6/8] (short) (narrow) %v1112_v9, 8  ;;  %v6134_v9 = vld [vmem:[%s8021_s0 + $0x310] sm:$0xff]  }
 0x381   :  { %v1115_v61 = vpop.xlane.xlu0 %1114 }
 0x382   :  { %1125 = vxpose.xlu0.b32.cont [7/8] (short) (narrow) %v1115_v61, 8  ;;  %v6135_v61 = vld [vmem:[%s8021_s0 + $0x348] sm:$0xff]  }
 0x385   :  { %v1118_v62 = vpop.xlane.xlu0 %1117 }
 0x386   :  { %1126 = vxpose.xlu0.b32.end [8/8] (short) (narrow) %v1118_v62, 8  ;;  %v6136_v62 = vld [vmem:[%s8021_s0 + $0x308] sm:$0xff]  }
 0x3e6   :  { %v1135_v8 = vpop.trf.xlu0 }
 0x3e7   :  { %5865 = vmatmul.mubr.msk.f32.vlgmr.msra.gmra.mxu1 %vm569_vm0, %v1135_v8 }
 0x3e8   :  { %5336 = vmatpush3.bf16.msra.mxu1 %v6108_v63  ;;  %1579 = vmatprep.mubr.bf16.mxu1 %v6749_v60  ;;  %v6137_v63 = vld [vmem:[%s8021_s0 + $0x340] sm:$0xff]  }
 0x3e9   :  { %5337 = vmatprep.subr.bf16.mxu1 %v6109_v1  ;;  %v6138_v1 = vld [vmem:[%s8021_s0 + $0x300] sm:$0xff]  }
 0x3ec   :  { %5338 = vmatpush3.bf16.msra.mxu1 %v6110_v10 }
 0x3ed   :  { %5339 = vmatprep.subr.bf16.mxu1 %v6111_v13 }
 0x3f0   :  { %5340 = vmatpush3.bf16.msra.mxu1 %v6112_v19 }
 0x3f1   :  { %5341 = vmatprep.subr.bf16.mxu1 %v6113_v34 }
 0x3f4   :  { %5342 = vmatpush3.bf16.msra.mxu1 %v6114_v3 }
 0x3f5   :  { %5343 = vmatprep.subr.bf16.mxu1 %v6115_v4 }
 0x3f8   :  { %5344 = vmatpush3.bf16.msra.mxu1 %v6116_v14 }
 0x3f9   :  { %5345 = vmatprep.subr.bf16.mxu1 %v6117_v16 }
 0x3fc   :  { %5346 = vmatpush3.bf16.msra.mxu1 %v6118_v18 }
 0x3fd   :  { %5347 = vmatprep.subr.bf16.mxu1 %v6119_v23 }
 0x400   :  { %5348 = vmatpush3.bf16.msra.mxu1 %v6120_v25 }
 0x401   :  { %5349 = vmatprep.subr.bf16.mxu1 %v6121_v2 }
 0x404   :  { %5350 = vmatpush3.bf16.msra.mxu1 %v6122_v20 }
 0x405   :  { %5384 = vmatprep.subr.bf16.mxu1 %v6123_v27 }
 0x407   :  { %1580 = vmatmul.mubr.bf16.vlgmr.msra.gmra.mxu1 %v6800_v15 }
 0x408   :  { %5385 = vmatpush3.bf16.msra.mxu1 %v6124_v5  ;;  %1587 = vmatprep.mubr.bf16.mxu1 %v6809_v17 }
 0x409   :  { %5386 = vmatprep.subr.bf16.mxu1 %v6125_v6 }
 0x40c   :  { %5387 = vmatpush3.bf16.msra.mxu1 %v6126_v29 }
 0x40d   :  { %5388 = vmatprep.subr.bf16.mxu1 %v6127_v31 }
 0x40f   :  { %1588 = vmatmul.mubr.bf16.gmra.mxu1 %v6824_v22 }
 0x410   :  { %5389 = vmatpush3.bf16.msra.mxu1 %v6128_v33  ;;  %1595 = vmatprep.mubr.bf16.mxu1 %v6833_v24 }
 0x411   :  { %5390 = vmatprep.subr.bf16.mxu1 %v6129_v35 }
 0x414   :  { %5391 = vmatpush3.bf16.msra.mxu1 %v6130_v47 }
 0x415   :  { %5392 = vmatprep.subr.bf16.mxu1 %v6131_v57 }
 0x417   :  { %1596 = vmatmul.mubr.bf16.gmra.mxu1 %v6848_v30 }
 0x418   :  { %5393 = vmatpush3.bf16.msra.mxu1 %v6132_v59  ;;  %1603 = vmatprep.mubr.bf16.mxu1 %v6857_v32 }
 0x419   :  { %5394 = vmatprep.subr.bf16.mxu1 %v6133_v7 }
 0x41c   :  { %5395 = vmatpush3.bf16.msra.mxu1 %v6134_v9 }
 0x41d   :  { %5396 = vmatprep.subr.bf16.mxu1 %v6135_v61 }
 0x41f   :  { %1604 = vmatmul.mubr.bf16.gmra.mxu1 %v6872_v46 }
 0x420   :  { %5397 = vmatpush3.bf16.msra.mxu1 %v6136_v62  ;;  %2039 = vmatprep.mubr.bf16.mxu1 %v6881_v48 }
 0x421   :  { %5398 = vmatprep.subr.bf16.mxu1 %v6137_v63 }
 0x424   :  { %5399 = vmatpush3.bf16.msra.mxu1 %v6138_v1 }
 0x425   :  { %5886 = vmatprep.subr.mxu1 %v6360_v37 }
 0x427   :  { %2040 = vmatmul.mubr.bf16.vlgmr.msra.gmra.mxu1 %v6888_v49 }
 0x428   :  { %2047 = vmatprep.mubr.bf16.mxu1 %v6894_v50  ;;  %5887 = vmatpush3.msra.mxu1 %v6660_v36  ;;  %v5311_v36 = vpop.f32.mrf.mxu0 }
 0x429   :  { %5888 = vmatprep.subr.mxu1 %v6360_v37 }
 0x42a   :  { %5889 = vmatpush3.msra.mxu1 %v6666_v38  ;;  %v5312_v38 = vpop.f32.mrf.mxu0 }
 0x42b   :  { %5890 = vmatprep.subr.mxu1 %v6360_v37  ;;  %v5313_v34 = vadd.f32 %v5312_v38, %v5311_v36 }
 0x42c   :  { %5891 = vmatpush3.msra.mxu1 %v6676_v39 }
 0x42d   :  { %5892 = vmatprep.subr.mxu1 %v6360_v37  ;;  %v1517_v16 = vadd.f32 %v5313_v34, %v6625_v11 }
 0x42e   :  { %5893 = vmatpush3.msra.mxu1 %v6685_v40 }
 0x42f   :  { %2048 = vmatmul.mubr.bf16.gmra.mxu1 %v6907_v51  ;;  %5894 = vmatprep.subr.mxu1 %v6360_v37 }
 0x430   :  { %2055 = vmatprep.mubr.bf16.mxu1 %v6914_v52  ;;  %5895 = vmatpush3.msra.mxu1 %v6694_v41 }
 0x431   :  { %5896 = vmatprep.subr.mxu1 %v6360_v37 }
 0x432   :  { %5897 = vmatpush3.msra.mxu1 %v6703_v43  ;;  %v5314_v43 = vpop.f32.mrf.mxu0 }
 0x433   :  { %5898 = vmatprep.subr.mxu1 %v6360_v37 }
 0x434   :  { %5899 = vmatpush3.msra.mxu1 %v6712_v44  ;;  %v5315_v44 = vpop.f32.mrf.mxu0 }
 0x435   :  { %5900 = vmatprep.subr.mxu1 %v6360_v37  ;;  %v5316_v18 = vadd.f32 %v5315_v44, %v5314_v43 }
 0x436   :  { %5901 = vmatpush3.msra.mxu1 %v6721_v45  ;;  %v5317_v8 = vpop.f32.mrf.mxu0 }
 0x437   :  { %2056 = vmatmul.mubr.bf16.gmra.mxu1 %v6927_v54  ;;  %v1520_v5 = vadd.f32 %v5316_v18, %v6628_v21 }
 0x438   :  { %2063 = vmatprep.mubr.bf16.mxu1 %v6933_v55  ;;  %v5318_v45 = vpop.f32.mrf.mxu0 }
 0x439   :  { %v5319_v6 = vadd.f32 %v5318_v45, %v5317_v8 }
 0x43a   :  { %v5320_v10 = vpop.f32.mrf.mxu0 }
 0x43b   :  { %v1525_v7 = vadd.f32 %v5319_v6, %v6630_v26 }
 0x43c   :  { %v5321_v13 = vpop.f32.mrf.mxu0 }
 0x43d   :  { %v5322_v9 = vadd.f32 %v5321_v13, %v5320_v10 }
 0x43e   :  { %v5323_v19 = vpop.f32.mrf.mxu0 }
 0x43f   :  { %2064 = vmatmul.mubr.bf16.gmra.mxu1 %v6939_v56 }
 0x440   :  { %5902 = vmatprep.mubr.msk.f32.mxu1 %vm6361_vm1, %v6360_v37  ;;  %v5324_v3 = vpop.f32.mrf.mxu0 }
 0x442   :  { %v5326_v25 = vpop.f32.mrf.mxu0 }
 0x444   :  { %v5327_v33 = vpop.f32.mrf.mxu0 }
 0x446   :  { %v5329_v63 = vpop.f32.mrf.mxu0 }
 0x448   :  { %v5330_v8 = vpop.f32.mrf.mxu0 }
 0x4a7   :  { %v1220_v39 = vpop.f32.mrf.mxu1 }
 0x4a8   :  { %v1221_v40 = vadd.f32 %v1220_v39, %v6947_v58 }
 0x4a9   :  { %v5866_v41 = vpop.f32.mrf.mxu1 }
 0x4aa   :  { %1224 = vst [vmem:[#allocation2 + $0x1] sm:$0x1] %v1221_v40  ;;  %v1528_v40 = vadd.f32 %v5322_v9, %v6635_v42  ;;  %v5325_v41 = vadd.f32 %v5324_v3, %v5323_v19 }
 0x4ac   :  { %v1533_v13 = vadd.f32 %v5325_v41, %v6639_v53 }
 0x4c7   :  { %v5351_v4 = vpop.f32.mrf.mxu1 }
 0x4c9   :  { %v5352_v14 = vpop.f32.mrf.mxu1 }
 0x4ca   :  { %v5353_v23 = vadd.f32 %v5352_v14, %v5351_v4  ;;  %v5328_v14 = vadd.f32 %v5327_v33, %v5326_v25 }
 0x4cb   :  { %v5354_v2 = vpop.f32.mrf.mxu1 }
 0x4cc   :  { %v1582_v20 = vadd.f32 %v5353_v23, %v1517_v16  ;;  %v5332_v23 = vpop.f32.mrf.mxu0  ;;  %v1536_v3 = vadd.f32 %v5328_v14, %v6643_v0 }
 0x4cd   :  { %v5355_v27 = vpop.f32.mrf.mxu1 }
 0x4ce   :  { %v5356_v29 = vadd.f32 %v5355_v27, %v5354_v2  ;;  %v1612_v31 = vmax.f32 %v1582_v20, 0.0 }
 0x4cf   :  { %v5357_v35 = vpop.f32.mrf.mxu1 }
 0x4d0   :  { %v1585_v47 = vadd.f32 %v5356_v29, %v1520_v5  ;;  %v1620_v57 = vsel %vm569_vm0, %v1612_v31, 0.0  ;;  %v5331_v5 = vadd.f32 %v5330_v8, %v5329_v63  ;;  %v5333_v31 = vpop.f32.mrf.mxu0  ;;  %v6139_v8 = vld [vmem:[%s8021_s0 + $0x3f8] sm:$0xff]  }
 0x4d1   :  { %v5358_v59 = vpop.f32.mrf.mxu1  ;;  %1621 = vadd.xlane.f32.xlu1 %v1620_v57  ;;  %5424 = vmatprep.subr.bf16.mxu0 %v6139_v8 }
 0x4d2   :  { %v5359_v61 = vadd.f32 %v5358_v59, %v5357_v35  ;;  %v1613_v62 = vmax.f32 %v1585_v47, 0.0  ;;  %v1541_v33 = vadd.f32 %v5331_v5, %v6647_v12  ;;  %v5334_v59 = vadd.f32 %v5333_v31, %v5332_v23  ;;  %v6140_v23 = vld [vmem:[%s8021_s0 + $0x3b8] sm:$0xff]   ;;  %v6145_v5 = vld [vmem:[%s8021_s0 + $0x3e0] sm:$0xff]   ;;  %v6149_v31 = vld [vmem:[%s8021_s0 + $0x3d0] sm:$0xff]  }
 0x4d3   :  { %v5360_v1 = vpop.f32.mrf.mxu1 }
 0x4d4   :  { %v1590_v36 = vadd.f32 %v5359_v61, %v1525_v7  ;;  %v1623_v38 = vsel %vm569_vm0, %v1613_v62, 0.0  ;;  %v1544_v63 = vadd.f32 %v5334_v59, %v6652_v28  ;;  %v6155_v59 = vld [vmem:[%s8021_s0 + $0x478] sm:$0xff]  }
 0x4d5   :  { %v5361_v39 = vpop.f32.mrf.mxu1  ;;  %1624 = vadd.xlane.f32.xlu0 %v1623_v38 }
 0x4d6   :  { %v5362_v43 = vadd.f32 %v5361_v39, %v5360_v1  ;;  %v1614_v44 = vmax.f32 %v1590_v36, 0.0 }
 0x4d7   :  { %v5363_v45 = vpop.f32.mrf.mxu1 }
 0x4d8   :  { %v1593_v34 = vadd.f32 %v5362_v43, %v1528_v40  ;;  %v1626_v4 = vsel %vm569_vm0, %v1614_v44, 0.0 }
 0x4d9   :  { %v5364_v10 = vpop.f32.mrf.mxu1  ;;  %1627 = vadd.xlane.f32.xlu1 %v1626_v4 }
 0x4da   :  { %v5365_v16 = vadd.f32 %v5364_v10, %v5363_v45  ;;  %v1615_v18 = vmax.f32 %v1593_v34, 0.0 }
 0x4db   :  { %v5366_v2 = vpop.f32.mrf.mxu1 }
 0x4dc   :  { %v1598_v20 = vadd.f32 %v5365_v16, %v1533_v13  ;;  %v1629_v27 = vsel %vm569_vm0, %v1615_v18, 0.0 }
 0x4dd   :  { %v5367_v19 = vpop.f32.mrf.mxu1  ;;  %1630 = vadd.xlane.f32.xlu1 %v1629_v27  ;;  %v6142_v27 = vld [vmem:[%s8021_s0 + $0x3b0] sm:$0xff]  }
 0x4de   :  { %v5368_v6 = vadd.f32 %v5367_v19, %v5366_v2  ;;  %v1616_v29 = vmax.f32 %v1598_v20, 0.0  ;;  %v6141_v2 = vld [vmem:[%s8021_s0 + $0x3f0] sm:$0xff]   ;;  %v6143_v19 = vld [vmem:[%s8021_s0 + $0x3e8] sm:$0xff]  }
 0x4df   :  { %v5369_v35 = vpop.f32.mrf.mxu1 }
 0x4e0   :  { %v1601_v47 = vadd.f32 %v5368_v6, %v1536_v3  ;;  %v1632_v57 = vsel %vm569_vm0, %v1616_v29, 0.0  ;;  %v6144_v3 = vld [vmem:[%s8021_s0 + $0x3a8] sm:$0xff]   ;;  %v6147_v6 = vld [vmem:[%s8021_s0 + $0x3d8] sm:$0xff]  }
 0x4e1   :  { %v5370_v25 = vpop.f32.mrf.mxu1  ;;  %1633 = vadd.xlane.f32.xlu1 %v1632_v57  ;;  %v6148_v29 = vld [vmem:[%s8021_s0 + $0x398] sm:$0xff]   ;;  %v6152_v57 = vld [vmem:[%s8021_s0 + $0x388] sm:$0xff]  }
 0x4e2   :  { %v5371_v7 = vadd.f32 %v5370_v25, %v5369_v35  ;;  %v1617_v9 = vmax.f32 %v1601_v47, 0.0  ;;  %v6150_v35 = vld [vmem:[%s8021_s0 + $0x390] sm:$0xff]   ;;  %v6151_v47 = vld [vmem:[%s8021_s0 + $0x3c8] sm:$0xff]   ;;  %v6153_v25 = vld [vmem:[%s8021_s0 + $0x3c0] sm:$0xff]  }
 0x4e3   :  { %v5372_v61 = vpop.f32.mrf.mxu1 }
 0x4e4   :  { %v1606_v62 = vadd.f32 %v5371_v7, %v1541_v33  ;;  %v1635_v1 = vsel %vm569_vm0, %v1617_v9, 0.0  ;;  %v6154_v33 = vld [vmem:[%s8021_s0 + $0x380] sm:$0xff]   ;;  %v6156_v7 = vld [vmem:[%s8021_s0 + $0x438] sm:$0xff]   ;;  %v6157_v9 = vld [vmem:[%s8021_s0 + $0x470] sm:$0xff]  }
 0x4e5   :  { %v5373_v36 = vpop.f32.mrf.mxu1  ;;  %1636 = vadd.xlane.f32.xlu1 %v1635_v1  ;;  %v6160_v1 = vld [vmem:[%s8021_s0 + $0x428] sm:$0xff]  }
 0x4e6   :  { %v5374_v38 = vadd.f32 %v5373_v36, %v5372_v61  ;;  %v1618_v39 = vmax.f32 %v1606_v62, 0.0  ;;  %v6158_v61 = vld [vmem:[%s8021_s0 + $0x430] sm:$0xff]   ;;  %v6159_v62 = vld [vmem:[%s8021_s0 + $0x468] sm:$0xff]   ;;  %v6163_v36 = vld [vmem:[%s8021_s0 + $0x458] sm:$0xff]  }
 0x4e8   :  { %v1609_v40 = vadd.f32 %v5374_v38, %v1544_v63  ;;  %v1638_v41 = vsel %vm569_vm0, %v1618_v39, 0.0  ;;  %v6164_v63 = vld [vmem:[%s8021_s0 + $0x418] sm:$0xff]   ;;  %v6167_v38 = vld [vmem:[%s8021_s0 + $0x448] sm:$0xff]  }
 0x4e9   :  { %1639 = vadd.xlane.f32.xlu1 %v1638_v41  ;;  %v6168_v39 = vld [vmem:[%s8021_s0 + $0x408] sm:$0xff]   ;;  %v7263_v41 = vld [vmem:[%s8024_s3 + $0x10] sm:$0xff] }
 0x4ea   :  { %v1619_v43 = vmax.f32 %v1609_v40, 0.0  ;;  %v7226_v40 = vld [vmem:[%s8024_s3 + $0x38] sm:$0xff] }
 0x4ec   :  { %v1641_v44 = vsel %vm569_vm0, %v1619_v43, 0.0  ;;  %v5400_v43 = vpop.f32.mrf.mxu1 }
 0x4ed   :  { %1642 = vadd.xlane.f32.xlu1 %v1641_v44 }
 0x4ee   :  { %v5401_v44 = vpop.f32.mrf.mxu1 }
 0x55a   :  { %v1622_v45 = vpop.xlane.xlu1 %1621 }
 0x55b   :  { %1644 = vxpose.xlu1.b32.start [1/8] (short) (narrow) %v1622_v45, 8 }
 0x55e   :  { %v1625_v34 = vpop.xlane.xlu0 %1624 }
 0x55f   :  { %1645 = vxpose.xlu1.b32.cont [2/8] (short) (narrow) %v1625_v34, 8 }
 0x562   :  { %v1628_v4 = vpop.xlane.xlu1 %1627 }
 0x563   :  { %1646 = vxpose.xlu1.b32.cont [3/8] (short) (narrow) %v1628_v4, 8  ;;  %v5403_v4 = vpop.f32.mrf.mxu1 }
 0x566   :  { %v1631_v10 = vpop.xlane.xlu1 %1630 }
 0x567   :  { %1647 = vxpose.xlu1.b32.cont [4/8] (short) (narrow) %v1631_v10, 8  ;;  %v5404_v10 = vpop.f32.mrf.mxu1 }
 0x56a   :  { %v1634_v13 = vpop.xlane.xlu1 %1633 }
 0x56b   :  { %1648 = vxpose.xlu1.b32.cont [5/8] (short) (narrow) %v1634_v13, 8  ;;  %v5406_v13 = vpop.f32.mrf.mxu1 }
 0x56e   :  { %v1637_v14 = vpop.xlane.xlu1 %1636 }
 0x56f   :  { %1649 = vxpose.xlu1.b32.cont [6/8] (short) (narrow) %v1637_v14, 8  ;;  %v5407_v14 = vpop.f32.mrf.mxu1 }
 0x572   :  { %v1640_v16 = vpop.xlane.xlu1 %1639 }
 0x573   :  { %1650 = vxpose.xlu1.b32.cont [7/8] (short) (narrow) %v1640_v16, 8  ;;  %v5409_v16 = vpop.f32.mrf.mxu1 }
 0x576   :  { %v1643_v18 = vpop.xlane.xlu1 %1642 }
 0x577   :  { %1651 = vxpose.xlu1.b32.end [8/8] (short) (narrow) %v1643_v18, 8 }
 0x5d7   :  { %v1660_v20 = vpop.trf.xlu1 }
 0x5d8   :  { %5884 = vmatmul.mubr.msk.f32.vlgmr.msra.gmra.mxu0 %vm569_vm0, %v1660_v20 }
 0x5d9   :  { %5425 = vmatpush3.bf16.msra.mxu0 %v6140_v23  ;;  %2104 = vmatprep.mubr.bf16.mxu0 %v6749_v60  ;;  %v6146_v60 = vld [vmem:[%s8021_s0 + $0x3a0] sm:$0xff]  }
 0x5da   :  { %5426 = vmatprep.subr.bf16.mxu0 %v6141_v2 }
 0x5dd   :  { %5427 = vmatpush3.bf16.msra.mxu0 %v6142_v27  ;;  %v5405_v27 = vadd.f32 %v5404_v10, %v5403_v4 }
 0x5de   :  { %5428 = vmatprep.subr.bf16.mxu0 %v6143_v19 }
 0x5e1   :  { %5429 = vmatpush3.bf16.msra.mxu0 %v6144_v3 }
 0x5e2   :  { %5430 = vmatprep.subr.bf16.mxu0 %v6145_v5 }
 0x5e5   :  { %5431 = vmatpush3.bf16.msra.mxu0 %v6146_v60 }
 0x5e6   :  { %5432 = vmatprep.subr.bf16.mxu0 %v6147_v6  ;;  %v2045_v6 = vadd.f32 %v5405_v27, %v6628_v21 }
 0x5e9   :  { %5433 = vmatpush3.bf16.msra.mxu0 %v6148_v29  ;;  %v5408_v29 = vadd.f32 %v5407_v14, %v5406_v13 }
 0x5ea   :  { %5434 = vmatprep.subr.bf16.mxu0 %v6149_v31 }
 0x5ed   :  { %5435 = vmatpush3.bf16.msra.mxu0 %v6150_v35 }
 0x5ee   :  { %5436 = vmatprep.subr.bf16.mxu0 %v6151_v47 }
 0x5f1   :  { %5437 = vmatpush3.bf16.msra.mxu0 %v6152_v57 }
 0x5f2   :  { %5438 = vmatprep.subr.bf16.mxu0 %v6153_v25 }
 0x5f5   :  { %5439 = vmatpush3.bf16.msra.mxu0 %v6154_v33 }
 0x5f6   :  { %5473 = vmatprep.subr.bf16.mxu0 %v6155_v59 }
 0x5f8   :  { %2105 = vmatmul.mubr.bf16.vlgmr.msra.gmra.mxu0 %v6800_v15  ;;  %v6161_v15 = vld [vmem:[%s8021_s0 + $0x460] sm:$0xff]  }
 0x5f9   :  { %5474 = vmatpush3.bf16.msra.mxu0 %v6156_v7  ;;  %2112 = vmatprep.mubr.bf16.mxu0 %v6809_v17  ;;  %v6162_v17 = vld [vmem:[%s8021_s0 + $0x420] sm:$0xff]   ;;  %v2050_v7 = vadd.f32 %v5408_v29, %v6630_v26 }
 0x5fa   :  { %5475 = vmatprep.subr.bf16.mxu0 %v6157_v9 }
 0x5fd   :  { %5476 = vmatpush3.bf16.msra.mxu0 %v6158_v61 }
 0x5fe   :  { %5477 = vmatprep.subr.bf16.mxu0 %v6159_v62 }
 0x600   :  { %2113 = vmatmul.mubr.bf16.gmra.mxu0 %v6824_v22  ;;  %v6165_v22 = vld [vmem:[%s8021_s0 + $0x450] sm:$0xff]  }
 0x601   :  { %5478 = vmatpush3.bf16.msra.mxu0 %v6160_v1  ;;  %2120 = vmatprep.mubr.bf16.mxu0 %v6833_v24  ;;  %v6166_v24 = vld [vmem:[%s8021_s0 + $0x410] sm:$0xff]  }
 0x602   :  { %5479 = vmatprep.subr.bf16.mxu0 %v6161_v15 }
 0x605   :  { %5480 = vmatpush3.bf16.msra.mxu0 %v6162_v17 }
 0x606   :  { %5481 = vmatprep.subr.bf16.mxu0 %v6163_v36 }
 0x608   :  { %2121 = vmatmul.mubr.bf16.gmra.mxu0 %v6848_v30  ;;  %v6169_v30 = vld [vmem:[%s8021_s0 + $0x440] sm:$0xff]  }
 0x609   :  { %5482 = vmatpush3.bf16.msra.mxu0 %v6164_v63  ;;  %2128 = vmatprep.mubr.bf16.mxu0 %v6857_v32  ;;  %v6170_v32 = vld [vmem:[%s8021_s0 + $0x400] sm:$0xff]  }
 0x60a   :  { %5483 = vmatprep.subr.bf16.mxu0 %v6165_v22 }
 0x60d   :  { %5484 = vmatpush3.bf16.msra.mxu0 %v6166_v24 }
 0x60e   :  { %5485 = vmatprep.subr.bf16.mxu0 %v6167_v38 }
 0x610   :  { %2129 = vmatmul.mubr.bf16.gmra.mxu0 %v6872_v46  ;;  %v7233_v46 = vld [vmem:[%s8024_s3 + $0x30] sm:$0xff] }
 0x611   :  { %5486 = vmatpush3.bf16.msra.mxu0 %v6168_v39  ;;  %2564 = vmatprep.mubr.bf16.mxu0 %v6881_v48  ;;  %v7240_v48 = vld [vmem:[%s8024_s3 + $0x28] sm:$0xff] }
 0x612   :  { %5487 = vmatprep.subr.bf16.mxu0 %v6169_v30 }
 0x615   :  { %5488 = vmatpush3.bf16.msra.mxu0 %v6170_v32 }
 0x616   :  { %5905 = vmatprep.subr.mxu0 %v6360_v37 }
 0x618   :  { %2565 = vmatmul.mubr.bf16.vlgmr.msra.gmra.mxu0 %v6888_v49  ;;  %v7247_v49 = vld [vmem:[%s8024_s3 + $0x20] sm:$0xff] }
 0x619   :  { %2572 = vmatprep.mubr.bf16.mxu0 %v6894_v50  ;;  %5906 = vmatpush3.msra.mxu0 %v7226_v40  ;;  %v7256_v50 = vld [vmem:[%s8024_s3 + $0x18] sm:$0xff] }
 0x61a   :  { %5907 = vmatprep.subr.mxu0 %v6360_v37 }
 0x61b   :  { %5908 = vmatpush3.msra.mxu0 %v7233_v46 }
 0x61c   :  { %5909 = vmatprep.subr.mxu0 %v6360_v37 }
 0x61d   :  { %5910 = vmatpush3.msra.mxu0 %v7240_v48 }
 0x61e   :  { %5911 = vmatprep.subr.mxu0 %v6360_v37 }
 0x61f   :  { %5912 = vmatpush3.msra.mxu0 %v7247_v49 }
 0x620   :  { %2573 = vmatmul.mubr.bf16.gmra.mxu0 %v6907_v51  ;;  %5913 = vmatprep.subr.mxu0 %v6360_v37  ;;  %v7270_v51 = vld [vmem:[%s8024_s3 + $0x8] sm:$0xff] }
 0x621   :  { %2580 = vmatprep.mubr.bf16.mxu0 %v6914_v52  ;;  %5914 = vmatpush3.msra.mxu0 %v7256_v50  ;;  %v7277_v52 = vld [vmem:[%s8024_s3] sm:$0xff] }
 0x622   :  { %5915 = vmatprep.subr.mxu0 %v6360_v37 }
 0x623   :  { %5916 = vmatpush3.msra.mxu0 %v7263_v41 }
 0x624   :  { %5917 = vmatprep.subr.mxu0 %v6360_v37 }
 0x625   :  { %5918 = vmatpush3.msra.mxu0 %v7270_v51 }
 0x626   :  { %5919 = vmatprep.subr.mxu0 %v6360_v37 }
 0x627   :  { %5920 = vmatpush3.msra.mxu0 %v7277_v52 }
 0x628   :  { %2581 = vmatmul.mubr.bf16.gmra.mxu0 %v6927_v54  ;;  %v5410_v54 = vpop.f32.mrf.mxu1 }
 0x629   :  { %2588 = vmatprep.mubr.bf16.mxu0 %v6933_v55  ;;  %v5402_v55 = vadd.f32 %v5401_v44, %v5400_v43  ;;  %v5411_v9 = vadd.f32 %v5410_v54, %v5409_v16 }
 0x62a   :  { %v5412_v18 = vpop.f32.mrf.mxu1 }
 0x62b   :  { %v2042_v20 = vadd.f32 %v5402_v55, %v6625_v11  ;;  %v2053_v22 = vadd.f32 %v5411_v9, %v6635_v42 }
 0x62c   :  { %v5413_v23 = vpop.f32.mrf.mxu1 }
 0x62d   :  { %v5414_v24 = vadd.f32 %v5413_v23, %v5412_v18 }
 0x62e   :  { %v5415_v3 = vpop.f32.mrf.mxu1 }
 0x630   :  { %2589 = vmatmul.mubr.bf16.gmra.mxu0 %v6939_v56  ;;  %v5416_v47 = vpop.f32.mrf.mxu1 }
 0x631   :  { %5921 = vmatprep.mubr.msk.f32.mxu0 %vm6361_vm1, %v6360_v37 }
 0x632   :  { %v5418_v1 = vpop.f32.mrf.mxu1 }
 0x634   :  { %v5419_v30 = vpop.f32.mrf.mxu1 }
 0x635   :  { %v5420_v23 = vadd.f32 %v5419_v30, %v5418_v1  ;;  %v6171_v1 = vld [vmem:[%s8021_s0 + $0x4f8] sm:$0xff]  }
 0x636   :  { %v5421_v13 = vpop.f32.mrf.mxu1  ;;  %5513 = vmatprep.subr.bf16.mxu1 %v6171_v1  ;;  %v6172_v30 = vld [vmem:[%s8021_s0 + $0x4b8] sm:$0xff]  }
 0x637   :  { %v7441_v1 = vld [vmem:[%s8022_s1 + $0x68] ss:$16 sps:$4 sm:$0xff]  }
 0x698   :  { %v1745_v8 = vpop.f32.mrf.mxu0 }
 0x699   :  { %v1746_v45 = vadd.f32 %v1745_v8, %v6947_v58 }
 0x69a   :  { %v5885_v34 = vpop.f32.mrf.mxu0 }
 0x69b   :  { %1749 = vst [vmem:[#allocation2 + $0x2] sm:$0x1] %v1746_v45  ;;  %v2058_v45 = vadd.f32 %v5414_v24, %v6639_v53  ;;  %v5417_v34 = vadd.f32 %v5416_v47, %v5415_v3 }
 0x69d   :  { %v2061_v55 = vadd.f32 %v5417_v34, %v6643_v0  ;;  %v6176_v34 = vld [vmem:[%s8021_s0 + $0x4a8] sm:$0xff]  }
 0x6b8   :  { %v5440_v56 = vpop.f32.mrf.mxu0 }
 0x6ba   :  { %v5441_v2 = vpop.f32.mrf.mxu0 }
 0x6bb   :  { %v5442_v19 = vadd.f32 %v5441_v2, %v5440_v56 }
 0x6bc   :  { %v5443_v5 = vpop.f32.mrf.mxu0 }
 0x6bd   :  { %v2107_v58 = vadd.f32 %v5442_v19, %v2042_v20  ;;  %v5422_v20 = vpop.f32.mrf.mxu1 }
 0x6be   :  { %v5444_v60 = vpop.f32.mrf.mxu0 }
 0x6bf   :  { %v5445_v31 = vadd.f32 %v5444_v60, %v5443_v5  ;;  %v2137_v35 = vmax.f32 %v2107_v58, 0.0  ;;  %v2066_v58 = vadd.f32 %v5420_v23, %v6647_v12  ;;  %v5423_v60 = vadd.f32 %v5422_v20, %v5421_v13  ;;  %v6179_v13 = vld [vmem:[%s8021_s0 + $0x4d8] sm:$0xff]   ;;  %v6185_v23 = vld [vmem:[%s8021_s0 + $0x4c0] sm:$0xff]  }
 0x6c0   :  { %v5446_v57 = vpop.f32.mrf.mxu0  ;;  %v6188_v20 = vld [vmem:[%s8021_s0 + $0x538] sm:$0xff]  }
 0x6c1   :  { %v2110_v25 = vadd.f32 %v5445_v31, %v2045_v6  ;;  %v2145_v33 = vsel %vm569_vm0, %v2137_v35, 0.0 }
 0x6c2   :  { %v5447_v59 = vpop.f32.mrf.mxu0  ;;  %2146 = vadd.xlane.f32.xlu0 %v2145_v33 }
 0x6c3   :  { %v5448_v61 = vadd.f32 %v5447_v59, %v5446_v57  ;;  %v2138_v62 = vmax.f32 %v2110_v25, 0.0  ;;  %v2069_v25 = vadd.f32 %v5423_v60, %v6652_v28  ;;  %v6192_v60 = vld [vmem:[%s8021_s0 + $0x528] sm:$0xff]  }
 0x6c4   :  { %v5449_v15 = vpop.f32.mrf.mxu0 }
 0x6c5   :  { %v2115_v17 = vadd.f32 %v5448_v61, %v2050_v7  ;;  %v2148_v36 = vsel %vm569_vm0, %v2138_v62, 0.0 }
 0x6c6   :  { %v5450_v63 = vpop.f32.mrf.mxu0  ;;  %2149 = vadd.xlane.f32.xlu0 %v2148_v36 }
 0x6c7   :  { %v5451_v38 = vadd.f32 %v5450_v63, %v5449_v15  ;;  %v2139_v39 = vmax.f32 %v2115_v17, 0.0 }
 0x6c8   :  { %v5452_v32 = vpop.f32.mrf.mxu0 }
 0x6c9   :  { %v2118_v43 = vadd.f32 %v5451_v38, %v2053_v22  ;;  %v2151_v44 = vsel %vm569_vm0, %v2139_v39, 0.0 }
 0x6ca   :  { %v5453_v8 = vpop.f32.mrf.mxu0  ;;  %2152 = vadd.xlane.f32.xlu0 %v2151_v44  ;;  %v6174_v44 = vld [vmem:[%s8021_s0 + $0x4b0] sm:$0xff]  }
 0x6cb   :  { %v5454_v4 = vadd.f32 %v5453_v8, %v5452_v32  ;;  %v2140_v10 = vmax.f32 %v2118_v43, 0.0  ;;  %v6173_v32 = vld [vmem:[%s8021_s0 + $0x4f0] sm:$0xff]   ;;  %v7318_v8 = vld [vmem:[%s8022_s1 + $0xc] ss:$16 sps:$4 sm:$0xff]  }
 0x6cc   :  { %v5455_v14 = vpop.f32.mrf.mxu0 }
 0x6cd   :  { %v2123_v16 = vadd.f32 %v5454_v4, %v2058_v45  ;;  %v2154_v54 = vsel %vm569_vm0, %v2140_v10, 0.0  ;;  %v6175_v45 = vld [vmem:[%s8021_s0 + $0x4e8] sm:$0xff]   ;;  %v6177_v4 = vld [vmem:[%s8021_s0 + $0x4e0] sm:$0xff]  }
 0x6ce   :  { %v5456_v18 = vpop.f32.mrf.mxu0  ;;  %2155 = vadd.xlane.f32.xlu0 %v2154_v54  ;;  %v6178_v10 = vld [vmem:[%s8021_s0 + $0x4a0] sm:$0xff]   ;;  %v6182_v54 = vld [vmem:[%s8021_s0 + $0x490] sm:$0xff]  }
 0x6cf   :  { %v5457_v56 = vadd.f32 %v5456_v18, %v5455_v14  ;;  %v2141_v2 = vmax.f32 %v2123_v16, 0.0  ;;  %v6180_v14 = vld [vmem:[%s8021_s0 + $0x498] sm:$0xff]   ;;  %v6181_v16 = vld [vmem:[%s8021_s0 + $0x4d0] sm:$0xff]   ;;  %v6183_v18 = vld [vmem:[%s8021_s0 + $0x4c8] sm:$0xff]  }
 0x6d0   :  { %v5458_v27 = vpop.f32.mrf.mxu0 }
 0x6d1   :  { %v2126_v19 = vadd.f32 %v5457_v56, %v2061_v55  ;;  %v2157_v5 = vsel %vm569_vm0, %v2141_v2, 0.0  ;;  %v6184_v55 = vld [vmem:[%s8021_s0 + $0x488] sm:$0xff]   ;;  %v6186_v56 = vld [vmem:[%s8021_s0 + $0x480] sm:$0xff]   ;;  %v6187_v2 = vld [vmem:[%s8021_s0 + $0x578] sm:$0xff]  }
 0x6d2   :  { %v5459_v3 = vpop.f32.mrf.mxu0  ;;  %2158 = vadd.xlane.f32.xlu0 %v2157_v5  ;;  %v6190_v5 = vld [vmem:[%s8021_s0 + $0x530] sm:$0xff]  }
 0x6d3   :  { %v5460_v6 = vadd.f32 %v5459_v3, %v5458_v27  ;;  %v2142_v29 = vmax.f32 %v2126_v19, 0.0  ;;  %v6189_v27 = vld [vmem:[%s8021_s0 + $0x570] sm:$0xff]   ;;  %v7369_v19 = vld [vmem:[%s8022_s1 + $0x8] ss:$16 sps:$4 sm:$0xff]   ;;  %v7378_v3 = vld [vmem:[%s8022_s1 + $0x2c] ss:$16 sps:$4 sm:$0xff]  }
 0x6d4   :  { %v5461_v31 = vpop.f32.mrf.mxu0 }
 0x6d5   :  { %v2131_v35 = vadd.f32 %v5460_v6, %v2066_v58  ;;  %v2160_v47 = vsel %vm569_vm0, %v2142_v29, 0.0  ;;  %v6191_v58 = vld [vmem:[%s8021_s0 + $0x568] sm:$0xff]   ;;  %v6193_v6 = vld [vmem:[%s8021_s0 + $0x560] sm:$0xff]  }
 0x6d6   :  { %v5462_v57 = vpop.f32.mrf.mxu0  ;;  %2161 = vadd.xlane.f32.xlu0 %v2160_v47  ;;  %v7393_v29 = vld [vmem:[%s8022_s1 + $0x28] ss:$16 sps:$4 sm:$0xff]  }
 0x6d7   :  { %v5463_v33 = vadd.f32 %v5462_v57, %v5461_v31  ;;  %v2143_v59 = vmax.f32 %v2131_v35, 0.0  ;;  %v6194_v31 = vld [vmem:[%s8021_s0 + $0x520] sm:$0xff]   ;;  %v7402_v35 = vld [vmem:[%s8022_s1 + $0x4c] ss:$16 sps:$4 sm:$0xff]  }
 0x6d8   :  { %v6195_v47 = vld [vmem:[%s8021_s0 + $0x558] sm:$0xff]  }
 0x6d9   :  { %v2134_v7 = vadd.f32 %v5463_v33, %v2069_v25  ;;  %v2163_v9 = vsel %vm569_vm0, %v2143_v59, 0.0  ;;  %v6196_v57 = vld [vmem:[%s8021_s0 + $0x518] sm:$0xff]   ;;  %v6197_v25 = vld [vmem:[%s8021_s0 + $0x550] sm:$0xff]  }
 0x6da   :  { %2164 = vadd.xlane.f32.xlu0 %v2163_v9  ;;  %v7417_v33 = vld [vmem:[%s8022_s1 + $0x48] ss:$16 sps:$4 sm:$0xff]   ;;  %v6198_v59 = vld [vmem:[%s8021_s0 + $0x510] sm:$0xff]  }
 0x6db   :  { %v2144_v61 = vmax.f32 %v2134_v7, 0.0  ;;  %v7426_v7 = vld [vmem:[%s8022_s1 + $0x6c] ss:$16 sps:$4 sm:$0xff]  }
 0x6dc   :  { %v6199_v9 = vld [vmem:[%s8021_s0 + $0x548] sm:$0xff]  }
 0x6dd   :  { %v2166_v62 = vsel %vm569_vm0, %v2144_v61, 0.0  ;;  %v6200_v61 = vld [vmem:[%s8021_s0 + $0x508] sm:$0xff]  }
 0x6de   :  { %2167 = vadd.xlane.f32.xlu0 %v2166_v62  ;;  %v6201_v62 = vld [vmem:[%s8021_s0 + $0x540] sm:$0xff]  }
 0x74b   :  { %v2147_v15 = vpop.xlane.xlu0 %2146 }
 0x74c   :  { %2169 = vxpose.xlu0.b32.start [1/8] (short) (narrow) %v2147_v15, 8  ;;  %v6202_v15 = vld [vmem:[%s8021_s0 + $0x500] sm:$0xff]  }
 0x74f   :  { %v2150_v17 = vpop.xlane.xlu0 %2149 }
 0x750   :  { %2170 = vxpose.xlu0.b32.cont [2/8] (short) (narrow) %v2150_v17, 8  ;;  %v7450_v17 = vld [vmem:[%s8022_s1 + $0x4] ss:$16 sps:$4 sm:$0xff]  }
 0x753   :  { %v2153_v36 = vpop.xlane.xlu0 %2152 }
 0x754   :  { %2171 = vxpose.xlu0.b32.cont [3/8] (short) (narrow) %v2153_v36, 8  ;;  %v7457_v36 = vld [vmem:[%s8022_s1] ss:$16 sps:$4 sm:$0xff]  }
 0x757   :  { %v2156_v63 = vpop.xlane.xlu0 %2155 }
 0x758   :  { %2172 = vxpose.xlu0.b32.cont [4/8] (short) (narrow) %v2156_v63, 8  ;;  %v7463_v63 = vld [vmem:[%s8022_s1 + $0x24] ss:$16 sps:$4 sm:$0xff]  }
 0x75b   :  { %v2159_v22 = vpop.xlane.xlu0 %2158 }
 0x75c   :  { %2173 = vxpose.xlu0.b32.cont [5/8] (short) (narrow) %v2159_v22, 8  ;;  %v7476_v22 = vld [vmem:[%s8022_s1 + $0x20] ss:$16 sps:$4 sm:$0xff]  }
 0x75f   :  { %v2162_v24 = vpop.xlane.xlu0 %2161 }
 0x760   :  { %2174 = vxpose.xlu0.b32.cont [6/8] (short) (narrow) %v2162_v24, 8  ;;  %v7483_v24 = vld [vmem:[%s8022_s1 + $0x44] ss:$16 sps:$4 sm:$0xff]  }
 0x763   :  { %v2165_v38 = vpop.xlane.xlu0 %2164 }
 0x764   :  { %2175 = vxpose.xlu0.b32.cont [7/8] (short) (narrow) %v2165_v38, 8  ;;  %v7496_v38 = vld [vmem:[%s8022_s1 + $0x40] ss:$16 sps:$4 sm:$0xff]  }
 0x767   :  { %v2168_v39 = vpop.xlane.xlu0 %2167 }
 0x768   :  { %2176 = vxpose.xlu0.b32.end [8/8] (short) (narrow) %v2168_v39, 8  ;;  %v7502_v39 = vld [vmem:[%s8022_s1 + $0x64] ss:$16 sps:$4 sm:$0xff]  }
 0x7c8   :  { %v2185_v43 = vpop.trf.xlu0 }
 0x7c9   :  { %5903 = vmatmul.mubr.msk.f32.vlgmr.msra.gmra.mxu1 %vm569_vm0, %v2185_v43 }
 0x7ca   :  { %5514 = vmatpush3.bf16.msra.mxu1 %v6172_v30  ;;  %2629 = vmatprep.mubr.bf16.mxu1 %v7318_v8  ;;  %v7508_v30 = vld [vmem:[%s8022_s1 + $0x60] ss:$16 sps:$4 sm:$0xff]  }
 0x7cb   :  { %5515 = vmatprep.subr.bf16.mxu1 %v6173_v32  ;;  %v5489_v32 = vpop.f32.mrf.mxu0 }
 0x7cd   :  { %v5490_v43 = vpop.f32.mrf.mxu0 }
 0x7ce   :  { %5516 = vmatpush3.bf16.msra.mxu1 %v6174_v44 }
 0x7cf   :  { %5517 = vmatprep.subr.bf16.mxu1 %v6175_v45  ;;  %v7516_v45 = vld [vmem:[%s8025_s4] sm:$0x1] }
 0x7d2   :  { %5518 = vmatpush3.bf16.msra.mxu1 %v6176_v34 }
 0x7d3   :  { %5519 = vmatprep.subr.bf16.mxu1 %v6177_v4 }
 0x7d6   :  { %5520 = vmatpush3.bf16.msra.mxu1 %v6178_v10  ;;  %v5492_v10 = vpop.f32.mrf.mxu0 }
 0x7d7   :  { %5521 = vmatprep.subr.bf16.mxu1 %v6179_v13 }
 0x7d8   :  { %v5493_v13 = vpop.f32.mrf.mxu0 }
 0x7da   :  { %5522 = vmatpush3.bf16.msra.mxu1 %v6180_v14  ;;  %v5495_v14 = vpop.f32.mrf.mxu0 }
 0x7db   :  { %5523 = vmatprep.subr.bf16.mxu1 %v6181_v16 }
 0x7dc   :  { %v5496_v16 = vpop.f32.mrf.mxu0 }
 0x7de   :  { %5524 = vmatpush3.bf16.msra.mxu1 %v6182_v54  ;;  %v5498_v54 = vpop.f32.mrf.mxu0 }
 0x7df   :  { %5525 = vmatprep.subr.bf16.mxu1 %v6183_v18 }
 0x7e0   :  { %v5499_v18 = vpop.f32.mrf.mxu0 }
 0x7e2   :  { %5526 = vmatpush3.bf16.msra.mxu1 %v6184_v55  ;;  %v5501_v55 = vpop.f32.mrf.mxu0 }
 0x7e3   :  { %5527 = vmatprep.subr.bf16.mxu1 %v6185_v23  ;;  %v5491_v23 = vadd.f32 %v5490_v43, %v5489_v32 }
 0x7e6   :  { %5528 = vmatpush3.bf16.msra.mxu1 %v6186_v56  ;;  %v5502_v56 = vpop.f32.mrf.mxu0 }
 0x7e7   :  { %5562 = vmatprep.subr.bf16.mxu1 %v6187_v2 }
 0x7e9   :  { %2630 = vmatmul.mubr.bf16.vlgmr.msra.gmra.mxu1 %v7369_v19 }
 0x7ea   :  { %5563 = vmatpush3.bf16.msra.mxu1 %v6188_v20  ;;  %2637 = vmatprep.mubr.bf16.mxu1 %v7378_v3 }
 0x7eb   :  { %5564 = vmatprep.subr.bf16.mxu1 %v6189_v27  ;;  %v2567_v27 = vadd.f32 %v5491_v23, %v6625_v11 }
 0x7ee   :  { %5565 = vmatpush3.bf16.msra.mxu1 %v6190_v5  ;;  %v5494_v5 = vadd.f32 %v5493_v13, %v5492_v10 }
 0x7ef   :  { %5566 = vmatprep.subr.bf16.mxu1 %v6191_v58 }
 0x7f1   :  { %2638 = vmatmul.mubr.bf16.gmra.mxu1 %v7393_v29 }
 0x7f2   :  { %5567 = vmatpush3.bf16.msra.mxu1 %v6192_v60  ;;  %2645 = vmatprep.mubr.bf16.mxu1 %v7402_v35  ;;  %v5504_v60 = vpop.f32.mrf.mxu0 }
 0x7f3   :  { %5568 = vmatprep.subr.bf16.mxu1 %v6193_v6 }
 0x7f6   :  { %5569 = vmatpush3.bf16.msra.mxu1 %v6194_v31 }
 0x7f7   :  { %5570 = vmatprep.subr.bf16.mxu1 %v6195_v47 }
 0x7f9   :  { %2646 = vmatmul.mubr.bf16.gmra.mxu1 %v7417_v33 }
 0x7fa   :  { %5571 = vmatpush3.bf16.msra.mxu1 %v6196_v57  ;;  %2653 = vmatprep.mubr.bf16.mxu1 %v7426_v7  ;;  %v2570_v57 = vadd.f32 %v5494_v5, %v6628_v21 }
 0x7fb   :  { %5572 = vmatprep.subr.bf16.mxu1 %v6197_v25  ;;  %v5497_v25 = vadd.f32 %v5496_v16, %v5495_v14 }
 0x7fe   :  { %5573 = vmatpush3.bf16.msra.mxu1 %v6198_v59 }
 0x7ff   :  { %5574 = vmatprep.subr.bf16.mxu1 %v6199_v9 }
 0x801   :  { %2654 = vmatmul.mubr.bf16.gmra.mxu1 %v7441_v1 }
 0x802   :  { %5575 = vmatpush3.bf16.msra.mxu1 %v6200_v61  ;;  %3089 = vmatprep.mubr.bf16.mxu1 %v7450_v17  ;;  %v5505_v61 = vpop.f32.mrf.mxu0 }
 0x803   :  { %5576 = vmatprep.subr.bf16.mxu1 %v6201_v62 }
 0x804   :  { %v5507_v13 = vpop.f32.mrf.mxu0 }
 0x806   :  { %5577 = vmatpush3.bf16.msra.mxu1 %v6202_v15 }
 0x807   :  { %5924 = vmatprep.subr.mxu1 %v6360_v37 }
 0x809   :  { %3090 = vmatmul.mubr.bf16.vlgmr.msra.gmra.mxu1 %v7457_v36 }
 0x80a   :  { %3097 = vmatprep.mubr.bf16.mxu1 %v7463_v63  ;;  %5925 = vmatpush3.msra.mxu1 %v7226_v40 }
 0x80b   :  { %5926 = vmatprep.subr.mxu1 %v6360_v37 }
 0x80c   :  { %5927 = vmatpush3.msra.mxu1 %v7233_v46 }
 0x80d   :  { %5928 = vmatprep.subr.mxu1 %v6360_v37 }
 0x80e   :  { %5929 = vmatpush3.msra.mxu1 %v7240_v48 }
 0x80f   :  { %5930 = vmatprep.subr.mxu1 %v6360_v37 }
 0x810   :  { %5931 = vmatpush3.msra.mxu1 %v7247_v49 }
 0x811   :  { %3098 = vmatmul.mubr.bf16.gmra.mxu1 %v7476_v22  ;;  %5932 = vmatprep.subr.mxu1 %v6360_v37 }
 0x812   :  { %3105 = vmatprep.mubr.bf16.mxu1 %v7483_v24  ;;  %5933 = vmatpush3.msra.mxu1 %v7256_v50 }
 0x813   :  { %5934 = vmatprep.subr.mxu1 %v6360_v37 }
 0x814   :  { %5935 = vmatpush3.msra.mxu1 %v7263_v41 }
 0x815   :  { %5936 = vmatprep.subr.mxu1 %v6360_v37 }
 0x816   :  { %5937 = vmatpush3.msra.mxu1 %v7270_v51 }
 0x817   :  { %5938 = vmatprep.subr.mxu1 %v6360_v37 }
 0x818   :  { %5939 = vmatpush3.msra.mxu1 %v7277_v52 }
 0x819   :  { %3106 = vmatmul.mubr.bf16.gmra.mxu1 %v7496_v38 }
 0x81a   :  { %3113 = vmatprep.mubr.bf16.mxu1 %v7502_v39 }
 0x821   :  { %3114 = vmatmul.mubr.bf16.gmra.mxu1 %v7508_v30 }
 0x822   :  { %5940 = vmatprep.mubr.msk.f32.mxu1 %vm6361_vm1, %v6360_v37 }
 0x889   :  { %v2270_v44 = vpop.f32.mrf.mxu1 }
 0x88a   :  { %v2271_v34 = vadd.f32 %v7516_v45, %v2270_v44  ;;  %v2575_v44 = vadd.f32 %v5497_v25, %v6630_v26  ;;  %v5506_v25 = vadd.f32 %v5505_v61, %v5504_v60 }
 0x88b   :  { %v5904_v4 = vpop.f32.mrf.mxu1 }
 0x88c   :  { %2274 = vst [vmem:[#allocation2 + $0x3] sm:$0x1] %v2271_v34  ;;  %v5500_v34 = vadd.f32 %v5499_v18, %v5498_v54 }
 0x88e   :  { %v2578_v16 = vadd.f32 %v5500_v34, %v6635_v42 }
 0x8a9   :  { %v5529_v2 = vpop.f32.mrf.mxu1 }
 0x8ab   :  { %v5530_v20 = vpop.f32.mrf.mxu1 }
 0x8ac   :  { %v5531_v58 = vadd.f32 %v5530_v20, %v5529_v2 }
 0x8ad   :  { %v5532_v6 = vpop.f32.mrf.mxu1 }
 0x8ae   :  { %v2632_v31 = vadd.f32 %v5531_v58, %v2567_v27  ;;  %v5503_v27 = vadd.f32 %v5502_v56, %v5501_v55  ;;  %v2586_v56 = vadd.f32 %v5506_v25, %v6643_v0 }
 0x8af   :  { %v5533_v47 = vpop.f32.mrf.mxu1 }
 0x8b0   :  { %v5534_v59 = vadd.f32 %v5533_v47, %v5532_v6  ;;  %v2662_v9 = vmax.f32 %v2632_v31, 0.0  ;;  %v5508_v6 = vpop.f32.mrf.mxu0  ;;  %v2583_v18 = vadd.f32 %v5503_v27, %v6639_v53 }
 0x8b1   :  { %v5535_v62 = vpop.f32.mrf.mxu1 }
 0x8b2   :  { %v2635_v15 = vadd.f32 %v5534_v59, %v2570_v57  ;;  %v2670_v32 = vsel %vm569_vm0, %v2662_v9, 0.0 }
 0x8b3   :  { %v5536_v43 = vpop.f32.mrf.mxu1  ;;  %2671 = vadd.xlane.f32.xlu1 %v2670_v32 }
 0x8b4   :  { %v5537_v4 = vadd.f32 %v5536_v43, %v5535_v62  ;;  %v2663_v10 = vmax.f32 %v2635_v15, 0.0  ;;  %v5510_v62 = vpop.f32.mrf.mxu0 }
 0x8b5   :  { %v5538_v23 = vpop.f32.mrf.mxu1 }
 0x8b6   :  { %v2640_v2 = vadd.f32 %v5537_v4, %v2575_v44  ;;  %v2673_v20 = vsel %vm569_vm0, %v2663_v10, 0.0  ;;  %v5509_v44 = vadd.f32 %v5508_v6, %v5507_v13  ;;  %v5511_v10 = vpop.f32.mrf.mxu0 }
 0x8b7   :  { %v5539_v14 = vpop.f32.mrf.mxu1  ;;  %2674 = vadd.xlane.f32.xlu0 %v2673_v20 }
 0x8b8   :  { %v5540_v5 = vadd.f32 %v5539_v14, %v5538_v23  ;;  %v2664_v58 = vmax.f32 %v2640_v2, 0.0  ;;  %v2591_v61 = vadd.f32 %v5509_v44, %v6647_v12  ;;  %v5512_v14 = vadd.f32 %v5511_v10, %v5510_v62  ;;  %v6205_v10 = vld [vmem:[%s8021_s0 + $0x5f0] sm:$0xff]  }
 0x8b9   :  { %v5541_v31 = vpop.f32.mrf.mxu1 }
 0x8ba   :  { %v2643_v47 = vadd.f32 %v5540_v5, %v2578_v16  ;;  %v2676_v57 = vsel %vm569_vm0, %v2664_v58, 0.0  ;;  %v2594_v13 = vadd.f32 %v5512_v14, %v6652_v28  ;;  %v6210_v14 = vld [vmem:[%s8021_s0 + $0x5a0] sm:$0xff]  }
 0x8bb   :  { %v5542_v54 = vpop.f32.mrf.mxu1  ;;  %2677 = vadd.xlane.f32.xlu1 %v2676_v57 }
 0x8bc   :  { %v5543_v59 = vadd.f32 %v5542_v54, %v5541_v31  ;;  %v2665_v9 = vmax.f32 %v2643_v47, 0.0 }
 0x8bd   :  { %v5544_v15 = vpop.f32.mrf.mxu1 }
 0x8be   :  { %v2648_v32 = vadd.f32 %v5543_v59, %v2583_v18  ;;  %v2679_v43 = vsel %vm569_vm0, %v2665_v9, 0.0  ;;  %v6203_v9 = vld [vmem:[%s8021_s0 + $0x5f8] sm:$0xff]  }
 0x8bf   :  { %v5545_v55 = vpop.f32.mrf.mxu1  ;;  %2680 = vadd.xlane.f32.xlu1 %v2679_v43  ;;  %5602 = vmatprep.subr.bf16.mxu0 %v6203_v9  ;;  %v6224_v9 = vld [vmem:[%s8021_s0 + $0x628] sm:$0xff]  }
 0x8c0   :  { %v5546_v34 = vadd.f32 %v5545_v55, %v5544_v15  ;;  %v2666_v4 = vmax.f32 %v2648_v32, 0.0 }
 0x8c1   :  { %v5547_v23 = vpop.f32.mrf.mxu1 }
 0x8c2   :  { %v2651_v2 = vadd.f32 %v5546_v34, %v2586_v56  ;;  %v2682_v20 = vsel %vm569_vm0, %v2666_v4, 0.0  ;;  %v6204_v4 = vld [vmem:[%s8021_s0 + $0x5b8] sm:$0xff]  }
 0x8c3   :  { %v5548_v60 = vpop.f32.mrf.mxu1  ;;  %2683 = vadd.xlane.f32.xlu1 %v2682_v20  ;;  %v6207_v20 = vld [vmem:[%s8021_s0 + $0x5e8] sm:$0xff]  }
 0x8c4   :  { %v5549_v16 = vadd.f32 %v5548_v60, %v5547_v23  ;;  %v2667_v27 = vmax.f32 %v2651_v2, 0.0  ;;  %v6206_v2 = vld [vmem:[%s8021_s0 + $0x5b0] sm:$0xff]   ;;  %v6208_v60 = vld [vmem:[%s8021_s0 + $0x5a8] sm:$0xff]  }
 0x8c5   :  { %v5550_v5 = vpop.f32.mrf.mxu1 }
 0x8c6   :  { %v2656_v58 = vadd.f32 %v5549_v16, %v2591_v61  ;;  %v2685_v31 = vsel %vm569_vm0, %v2667_v27, 0.0  ;;  %v6209_v61 = vld [vmem:[%s8021_s0 + $0x5e0] sm:$0xff]   ;;  %v6211_v16 = vld [vmem:[%s8021_s0 + $0x5d8] sm:$0xff]  }
 0x8c7   :  { %v5551_v47 = vpop.f32.mrf.mxu1  ;;  %2686 = vadd.xlane.f32.xlu1 %v2685_v31  ;;  %v6212_v27 = vld [vmem:[%s8021_s0 + $0x598] sm:$0xff]   ;;  %v6215_v31 = vld [vmem:[%s8021_s0 + $0x5c8] sm:$0xff]  }
 0x8c8   :  { %v5552_v6 = vadd.f32 %v5551_v47, %v5550_v5  ;;  %v2668_v57 = vmax.f32 %v2656_v58, 0.0  ;;  %v6213_v5 = vld [vmem:[%s8021_s0 + $0x5d0] sm:$0xff]   ;;  %v6216_v47 = vld [vmem:[%s8021_s0 + $0x588] sm:$0xff]  }
 0x8c9   :  { %v6214_v58 = vld [vmem:[%s8021_s0 + $0x590] sm:$0xff]  }
 0x8ca   :  { %v2659_v54 = vadd.f32 %v5552_v6, %v2594_v13  ;;  %v2688_v18 = vsel %vm569_vm0, %v2668_v57, 0.0  ;;  %v6217_v13 = vld [vmem:[%s8021_s0 + $0x5c0] sm:$0xff]   ;;  %v6219_v57 = vld [vmem:[%s8021_s0 + $0x678] sm:$0xff]  }
 0x8cb   :  { %2689 = vadd.xlane.f32.xlu1 %v2688_v18  ;;  %v6218_v6 = vld [vmem:[%s8021_s0 + $0x580] sm:$0xff]   ;;  %v6221_v18 = vld [vmem:[%s8021_s0 + $0x670] sm:$0xff]  }
 0x8cc   :  { %v2669_v25 = vmax.f32 %v2659_v54, 0.0  ;;  %v6220_v54 = vld [vmem:[%s8021_s0 + $0x638] sm:$0xff]  }
 0x8ce   :  { %v2691_v59 = vsel %vm569_vm0, %v2669_v25, 0.0  ;;  %v6222_v25 = vld [vmem:[%s8021_s0 + $0x630] sm:$0xff]  }
 0x8cf   :  { %2692 = vadd.xlane.f32.xlu1 %v2691_v59  ;;  %v6223_v59 = vld [vmem:[%s8021_s0 + $0x668] sm:$0xff]  }
 0x93c   :  { %v2672_v62 = vpop.xlane.xlu1 %2671 }
 0x93d   :  { %2694 = vxpose.xlu1.b32.start [1/8] (short) (narrow) %v2672_v62, 8  ;;  %v6225_v62 = vld [vmem:[%s8021_s0 + $0x660] sm:$0xff]  }
 0x940   :  { %v2675_v15 = vpop.xlane.xlu0 %2674 }
 0x941   :  { %2695 = vxpose.xlu1.b32.cont [2/8] (short) (narrow) %v2675_v15, 8  ;;  %v6226_v15 = vld [vmem:[%s8021_s0 + $0x620] sm:$0xff]  }
 0x944   :  { %v2678_v32 = vpop.xlane.xlu1 %2677 }
 0x945   :  { %2696 = vxpose.xlu1.b32.cont [3/8] (short) (narrow) %v2678_v32, 8  ;;  %v6227_v32 = vld [vmem:[%s8021_s0 + $0x658] sm:$0xff]  }
 0x948   :  { %v2681_v43 = vpop.xlane.xlu1 %2680 }
 0x949   :  { %2697 = vxpose.xlu1.b32.cont [4/8] (short) (narrow) %v2681_v43, 8  ;;  %v6228_v43 = vld [vmem:[%s8021_s0 + $0x618] sm:$0xff]  }
 0x94c   :  { %v2684_v55 = vpop.xlane.xlu1 %2683 }
 0x94d   :  { %2698 = vxpose.xlu1.b32.cont [5/8] (short) (narrow) %v2684_v55, 8  ;;  %v6229_v55 = vld [vmem:[%s8021_s0 + $0x650] sm:$0xff]  }
 0x950   :  { %v2687_v56 = vpop.xlane.xlu1 %2686 }
 0x951   :  { %2699 = vxpose.xlu1.b32.cont [6/8] (short) (narrow) %v2687_v56, 8  ;;  %v6230_v56 = vld [vmem:[%s8021_s0 + $0x610] sm:$0xff]  }
 0x954   :  { %v2690_v44 = vpop.xlane.xlu1 %2689 }
 0x955   :  { %2700 = vxpose.xlu1.b32.cont [7/8] (short) (narrow) %v2690_v44, 8  ;;  %v6231_v44 = vld [vmem:[%s8021_s0 + $0x648] sm:$0xff]  }
 0x958   :  { %v2693_v34 = vpop.xlane.xlu1 %2692 }
 0x959   :  { %2701 = vxpose.xlu1.b32.end [8/8] (short) (narrow) %v2693_v34, 8  ;;  %v6232_v34 = vld [vmem:[%s8021_s0 + $0x608] sm:$0xff]  }
 0x9b9   :  { %v2710_v23 = vpop.trf.xlu1 }
 0x9ba   :  { %5922 = vmatmul.mubr.msk.f32.vlgmr.msra.gmra.mxu0 %vm569_vm0, %v2710_v23 }
 0x9bb   :  { %5603 = vmatpush3.bf16.msra.mxu0 %v6204_v4  ;;  %3154 = vmatprep.mubr.bf16.mxu0 %v7318_v8  ;;  %v6233_v4 = vld [vmem:[%s8021_s0 + $0x640] sm:$0xff]  }
 0x9bc   :  { %5604 = vmatprep.subr.bf16.mxu0 %v6205_v10  ;;  %v6234_v10 = vld [vmem:[%s8021_s0 + $0x600] sm:$0xff]  }
 0x9bf   :  { %5605 = vmatpush3.bf16.msra.mxu0 %v6206_v2 }
 0x9c0   :  { %5606 = vmatprep.subr.bf16.mxu0 %v6207_v20 }
 0x9c3   :  { %5607 = vmatpush3.bf16.msra.mxu0 %v6208_v60 }
 0x9c4   :  { %5608 = vmatprep.subr.bf16.mxu0 %v6209_v61 }
 0x9c7   :  { %5609 = vmatpush3.bf16.msra.mxu0 %v6210_v14 }
 0x9c8   :  { %5610 = vmatprep.subr.bf16.mxu0 %v6211_v16 }
 0x9cb   :  { %5611 = vmatpush3.bf16.msra.mxu0 %v6212_v27 }
 0x9cc   :  { %5612 = vmatprep.subr.bf16.mxu0 %v6213_v5 }
 0x9cf   :  { %5613 = vmatpush3.bf16.msra.mxu0 %v6214_v58 }
 0x9d0   :  { %5614 = vmatprep.subr.bf16.mxu0 %v6215_v31 }
 0x9d3   :  { %5615 = vmatpush3.bf16.msra.mxu0 %v6216_v47 }
 0x9d4   :  { %5616 = vmatprep.subr.bf16.mxu0 %v6217_v13 }
 0x9d7   :  { %5617 = vmatpush3.bf16.msra.mxu0 %v6218_v6 }
 0x9d8   :  { %5651 = vmatprep.subr.bf16.mxu0 %v6219_v57 }
 0x9da   :  { %3155 = vmatmul.mubr.bf16.vlgmr.msra.gmra.mxu0 %v7369_v19 }
 0x9db   :  { %5652 = vmatpush3.bf16.msra.mxu0 %v6220_v54  ;;  %3162 = vmatprep.mubr.bf16.mxu0 %v7378_v3 }
 0x9dc   :  { %5653 = vmatprep.subr.bf16.mxu0 %v6221_v18 }
 0x9df   :  { %5654 = vmatpush3.bf16.msra.mxu0 %v6222_v25 }
 0x9e0   :  { %5655 = vmatprep.subr.bf16.mxu0 %v6223_v59 }
 0x9e2   :  { %3163 = vmatmul.mubr.bf16.gmra.mxu0 %v7393_v29 }
 0x9e3   :  { %5656 = vmatpush3.bf16.msra.mxu0 %v6224_v9  ;;  %3170 = vmatprep.mubr.bf16.mxu0 %v7402_v35 }
 0x9e4   :  { %5657 = vmatprep.subr.bf16.mxu0 %v6225_v62 }
 0x9e7   :  { %5658 = vmatpush3.bf16.msra.mxu0 %v6226_v15 }
 0x9e8   :  { %5659 = vmatprep.subr.bf16.mxu0 %v6227_v32 }
 0x9ea   :  { %3171 = vmatmul.mubr.bf16.gmra.mxu0 %v7417_v33 }
 0x9eb   :  { %5660 = vmatpush3.bf16.msra.mxu0 %v6228_v43  ;;  %3178 = vmatprep.mubr.bf16.mxu0 %v7426_v7 }
 0x9ec   :  { %5661 = vmatprep.subr.bf16.mxu0 %v6229_v55 }
 0x9ef   :  { %5662 = vmatpush3.bf16.msra.mxu0 %v6230_v56 }
 0x9f0   :  { %5663 = vmatprep.subr.bf16.mxu0 %v6231_v44 }
 0x9f2   :  { %3179 = vmatmul.mubr.bf16.gmra.mxu0 %v7441_v1 }
 0x9f3   :  { %5664 = vmatpush3.bf16.msra.mxu0 %v6232_v34  ;;  %3614 = vmatprep.mubr.bf16.mxu0 %v7450_v17 }
 0x9f4   :  { %5665 = vmatprep.subr.bf16.mxu0 %v6233_v4 }
 0x9f7   :  { %5666 = vmatpush3.bf16.msra.mxu0 %v6234_v10 }
 0x9f8   :  { %5943 = vmatprep.subr.mxu0 %v6360_v37 }
 0x9fa   :  { %3615 = vmatmul.mubr.bf16.vlgmr.msra.gmra.mxu0 %v7457_v36 }
 0x9fb   :  { %3622 = vmatprep.mubr.bf16.mxu0 %v7463_v63  ;;  %5944 = vmatpush3.msra.mxu0 %v7226_v40  ;;  %v5578_v40 = vpop.f32.mrf.mxu1 }
 0x9fc   :  { %5945 = vmatprep.subr.mxu0 %v6360_v37 }
 0x9fd   :  { %5946 = vmatpush3.msra.mxu0 %v7233_v46  ;;  %v5579_v46 = vpop.f32.mrf.mxu1 }
 0x9fe   :  { %5947 = vmatprep.subr.mxu0 %v6360_v37  ;;  %v5580_v61 = vadd.f32 %v5579_v46, %v5578_v40 }
 0x9ff   :  { %5948 = vmatpush3.msra.mxu0 %v7240_v48 }
 0xa00   :  { %5949 = vmatprep.subr.mxu0 %v6360_v37  ;;  %v3092_v5 = vadd.f32 %v5580_v61, %v6625_v11 }
 0xa01   :  { %5950 = vmatpush3.msra.mxu0 %v7247_v49 }
 0xa02   :  { %3623 = vmatmul.mubr.bf16.gmra.mxu0 %v7476_v22  ;;  %5951 = vmatprep.subr.mxu0 %v6360_v37 }
 0xa03   :  { %3630 = vmatprep.mubr.bf16.mxu0 %v7483_v24  ;;  %5952 = vmatpush3.msra.mxu0 %v7256_v50 }
 0xa04   :  { %5953 = vmatprep.subr.mxu0 %v6360_v37 }
 0xa05   :  { %5954 = vmatpush3.msra.mxu0 %v7263_v41  ;;  %v5581_v41 = vpop.f32.mrf.mxu1 }
 0xa06   :  { %5955 = vmatprep.subr.mxu0 %v6360_v37 }
 0xa07   :  { %5956 = vmatpush3.msra.mxu0 %v7270_v51  ;;  %v5582_v51 = vpop.f32.mrf.mxu1 }
 0xa08   :  { %5957 = vmatprep.subr.mxu0 %v6360_v37  ;;  %v5583_v58 = vadd.f32 %v5582_v51, %v5581_v41 }
 0xa09   :  { %5958 = vmatpush3.msra.mxu0 %v7277_v52  ;;  %v5584_v23 = vpop.f32.mrf.mxu1 }
 0xa0a   :  { %3631 = vmatmul.mubr.bf16.gmra.mxu0 %v7496_v38  ;;  %v3095_v54 = vadd.f32 %v5583_v58, %v6628_v21 }
 0xa0b   :  { %3638 = vmatprep.mubr.bf16.mxu0 %v7502_v39  ;;  %v5585_v52 = vpop.f32.mrf.mxu1 }
 0xa0c   :  { %v5586_v18 = vadd.f32 %v5585_v52, %v5584_v23 }
 0xa0d   :  { %v5587_v2 = vpop.f32.mrf.mxu1 }
 0xa0e   :  { %v3100_v55 = vadd.f32 %v5586_v18, %v6630_v26 }
 0xa0f   :  { %v5588_v20 = vpop.f32.mrf.mxu1 }
 0xa10   :  { %v5589_v56 = vadd.f32 %v5588_v20, %v5587_v2 }
 0xa11   :  { %v5590_v60 = vpop.f32.mrf.mxu1 }
 0xa12   :  { %3639 = vmatmul.mubr.bf16.gmra.mxu0 %v7508_v30 }
 0xa13   :  { %5959 = vmatprep.mubr.msk.f32.mxu0 %vm6361_vm1, %v6360_v37  ;;  %v5591_v14 = vpop.f32.mrf.mxu1 }
 0xa15   :  { %v5593_v47 = vpop.f32.mrf.mxu1 }
 0xa17   :  { %v5594_v9 = vpop.f32.mrf.mxu1 }
 0xa19   :  { %v5596_v4 = vpop.f32.mrf.mxu1 }
 0xa1b   :  { %v5597_v23 = vpop.f32.mrf.mxu1 }
 0xa7a   :  { %v2795_v48 = vpop.f32.mrf.mxu0 }
 0xa7b   :  { %v2796_v49 = vadd.f32 %v7516_v45, %v2795_v48 }
 0xa7c   :  { %v5923_v50 = vpop.f32.mrf.mxu0 }
 0xa7d   :  { %2799 = vst [vmem:[#allocation2 + $0x4] sm:$0x1] %v2796_v49  ;;  %v3103_v49 = vadd.f32 %v5589_v56, %v6635_v42  ;;  %v5592_v50 = vadd.f32 %v5591_v14, %v5590_v60 }
 0xa7f   :  { %v3108_v20 = vadd.f32 %v5592_v50, %v6639_v53 }
 0xa9a   :  { %v5618_v16 = vpop.f32.mrf.mxu0 }
 0xa9c   :  { %v5619_v27 = vpop.f32.mrf.mxu0 }
 0xa9d   :  { %v5620_v31 = vadd.f32 %v5619_v27, %v5618_v16  ;;  %v5595_v27 = vadd.f32 %v5594_v9, %v5593_v47 }
 0xa9e   :  { %v5621_v13 = vpop.f32.mrf.mxu0 }
 0xa9f   :  { %v3157_v6 = vadd.f32 %v5620_v31, %v3092_v5  ;;  %v5599_v31 = vpop.f32.mrf.mxu1  ;;  %v3111_v14 = vadd.f32 %v5595_v27, %v6643_v0 }
 0xaa0   :  { %v5622_v57 = vpop.f32.mrf.mxu0 }
 0xaa1   :  { %v5623_v25 = vadd.f32 %v5622_v57, %v5621_v13  ;;  %v3187_v59 = vmax.f32 %v3157_v6, 0.0 }
 0xaa2   :  { %v5624_v62 = vpop.f32.mrf.mxu0 }
 0xaa3   :  { %v3160_v15 = vadd.f32 %v5623_v25, %v3095_v54  ;;  %v3195_v32 = vsel %vm569_vm0, %v3187_v59, 0.0  ;;  %v5598_v54 = vadd.f32 %v5597_v23, %v5596_v4  ;;  %v5600_v59 = vpop.f32.mrf.mxu1  ;;  %v6235_v23 = vld [vmem:[%s8021_s0 + $0x6f8] sm:$0xff]  }
 0xaa4   :  { %v5625_v43 = vpop.f32.mrf.mxu0  ;;  %3196 = vadd.xlane.f32.xlu0 %v3195_v32  ;;  %5691 = vmatprep.subr.bf16.mxu1 %v6235_v23  ;;  %v7798_v23 = vld [vmem:[%s8021_s0 + $0x7b8] sm:$0xff]  }
 0xaa5   :  { %v5626_v44 = vadd.f32 %v5625_v43, %v5624_v62  ;;  %v3188_v34 = vmax.f32 %v3160_v15, 0.0  ;;  %v3116_v9 = vadd.f32 %v5598_v54, %v6647_v12  ;;  %v5601_v43 = vadd.f32 %v5600_v59, %v5599_v31  ;;  %v7689_v31 = vld [vmem:[%s8021_s0 + $0x7f8] sm:$0xff]   ;;  %v6240_v54 = vld [vmem:[%s8021_s0 + $0x6a8] sm:$0xff]  }
 0xaa6   :  { %v5627_v10 = vpop.f32.mrf.mxu0  ;;  %5780 = vmatprep.subr.bf16.mxu0 %v7689_v31  ;;  %v6244_v59 = vld [vmem:[%s8021_s0 + $0x698] sm:$0xff]  }
 0xaa7   :  { %v3165_v40 = vadd.f32 %v5626_v44, %v3100_v55  ;;  %v3198_v46 = vsel %vm569_vm0, %v3188_v34, 0.0  ;;  %v3119_v4 = vadd.f32 %v5601_v43, %v6652_v28  ;;  %v6250_v43 = vld [vmem:[%s8021_s0 + $0x680] sm:$0xff]  }
 0xaa8   :  { %v5628_v48 = vpop.f32.mrf.mxu0  ;;  %3199 = vadd.xlane.f32.xlu0 %v3198_v46 }
 0xaa9   :  { %v5629_v41 = vadd.f32 %v5628_v48, %v5627_v10  ;;  %v3189_v51 = vmax.f32 %v3165_v40, 0.0 }
 0xaaa   :  { %v5630_v52 = vpop.f32.mrf.mxu0 }
 0xaab   :  { %v3168_v61 = vadd.f32 %v5629_v41, %v3103_v49  ;;  %v3201_v16 = vsel %vm569_vm0, %v3189_v51, 0.0 }
 0xaac   :  { %v5631_v2 = vpop.f32.mrf.mxu0  ;;  %3202 = vadd.xlane.f32.xlu0 %v3201_v16 }
 0xaad   :  { %v5632_v5 = vadd.f32 %v5631_v2, %v5630_v52  ;;  %v3190_v58 = vmax.f32 %v3168_v61, 0.0 }
 0xaae   :  { %v5633_v13 = vpop.f32.mrf.mxu0 }
 0xaaf   :  { %v3173_v6 = vadd.f32 %v5632_v5, %v3108_v20  ;;  %v3204_v57 = vsel %vm569_vm0, %v3190_v58, 0.0 }
 0xab0   :  { %v5634_v60 = vpop.f32.mrf.mxu0  ;;  %3205 = vadd.xlane.f32.xlu0 %v3204_v57 }
 0xab1   :  { %v5635_v18 = vadd.f32 %v5634_v60, %v5633_v13  ;;  %v3191_v25 = vmax.f32 %v3173_v6, 0.0  ;;  %v6236_v13 = vld [vmem:[%s8021_s0 + $0x6b8] sm:$0xff]   ;;  %v6237_v6 = vld [vmem:[%s8021_s0 + $0x6f0] sm:$0xff]  }
 0xab2   :  { %v5636_v62 = vpop.f32.mrf.mxu0  ;;  %v6238_v60 = vld [vmem:[%s8021_s0 + $0x6b0] sm:$0xff]  }
 0xab3   :  { %v3176_v15 = vadd.f32 %v5635_v18, %v3111_v14  ;;  %v3207_v32 = vsel %vm569_vm0, %v3191_v25, 0.0  ;;  %v6239_v14 = vld [vmem:[%s8021_s0 + $0x6e8] sm:$0xff]   ;;  %v6241_v18 = vld [vmem:[%s8021_s0 + $0x6e0] sm:$0xff]   ;;  %v6243_v25 = vld [vmem:[%s8021_s0 + $0x6d8] sm:$0xff]  }
 0xab4   :  { %v5637_v47 = vpop.f32.mrf.mxu0  ;;  %3208 = vadd.xlane.f32.xlu0 %v3207_v32  ;;  %v6247_v32 = vld [vmem:[%s8021_s0 + $0x6c8] sm:$0xff]  }
 0xab5   :  { %v5638_v55 = vadd.f32 %v5637_v47, %v5636_v62  ;;  %v3192_v56 = vmax.f32 %v3176_v15, 0.0  ;;  %v6245_v62 = vld [vmem:[%s8021_s0 + $0x6d0] sm:$0xff]   ;;  %v6248_v47 = vld [vmem:[%s8021_s0 + $0x688] sm:$0xff]  }
 0xab6   :  { %v5639_v44 = vpop.f32.mrf.mxu0  ;;  %v6246_v15 = vld [vmem:[%s8021_s0 + $0x690] sm:$0xff]  }
 0xab7   :  { %v3181_v34 = vadd.f32 %v5638_v55, %v3116_v9  ;;  %v3210_v10 = vsel %vm569_vm0, %v3192_v56, 0.0  ;;  %v6249_v9 = vld [vmem:[%s8021_s0 + $0x6c0] sm:$0xff]   ;;  %v6251_v55 = vld [vmem:[%s8021_s0 + $0x778] sm:$0xff]  }
 0xab8   :  { %v5640_v40 = vpop.f32.mrf.mxu0  ;;  %3211 = vadd.xlane.f32.xlu0 %v3210_v10  ;;  %v6252_v56 = vld [vmem:[%s8021_s0 + $0x738] sm:$0xff]   ;;  %v6255_v10 = vld [vmem:[%s8021_s0 + $0x768] sm:$0xff]  }
 0xab9   :  { %v5641_v46 = vadd.f32 %v5640_v40, %v5639_v44  ;;  %v3193_v48 = vmax.f32 %v3181_v34, 0.0  ;;  %v6253_v44 = vld [vmem:[%s8021_s0 + $0x770] sm:$0xff]   ;;  %v6256_v40 = vld [vmem:[%s8021_s0 + $0x728] sm:$0xff]  }
 0xaba   :  { %v6254_v34 = vld [vmem:[%s8021_s0 + $0x730] sm:$0xff]  }
 0xabb   :  { %v3184_v49 = vadd.f32 %v5641_v46, %v3119_v4  ;;  %v3213_v50 = vsel %vm569_vm0, %v3193_v48, 0.0  ;;  %v6259_v4 = vld [vmem:[%s8021_s0 + $0x758] sm:$0xff]   ;;  %v6262_v48 = vld [vmem:[%s8021_s0 + $0x710] sm:$0xff]  }
 0xabc   :  { %3214 = vadd.xlane.f32.xlu0 %v3213_v50  ;;  %v6260_v46 = vld [vmem:[%s8021_s0 + $0x718] sm:$0xff]   ;;  %v6264_v50 = vld [vmem:[%s8021_s0 + $0x708] sm:$0xff]  }
 0xabd   :  { %v3194_v41 = vmax.f32 %v3184_v49, 0.0  ;;  %v6263_v49 = vld [vmem:[%s8021_s0 + $0x748] sm:$0xff]  }
 0xabf   :  { %v3216_v51 = vsel %vm569_vm0, %v3194_v41, 0.0  ;;  %v6265_v41 = vld [vmem:[%s8021_s0 + $0x740] sm:$0xff]  }
 0xac0   :  { %3217 = vadd.xlane.f32.xlu0 %v3216_v51  ;;  %v6266_v51 = vld [vmem:[%s8021_s0 + $0x700] sm:$0xff]  }
 0xb2d   :  { %v3197_v52 = vpop.xlane.xlu0 %3196 }
 0xb2e   :  { %3219 = vxpose.xlu0.b32.start [1/8] (short) (narrow) %v3197_v52, 8  ;;  %v7804_v52 = vld [vmem:[%s8021_s0 + $0x7f0] sm:$0xff]  }
 0xb31   :  { %v3200_v61 = vpop.xlane.xlu0 %3199 }
 0xb32   :  { %3220 = vxpose.xlu0.b32.cont [2/8] (short) (narrow) %v3200_v61, 8  ;;  %v7818_v61 = vld [vmem:[%s8021_s0 + $0x7e8] sm:$0xff]  }
 0xb35   :  { %v3203_v16 = vpop.xlane.xlu0 %3202 }
 0xb36   :  { %3221 = vxpose.xlu0.b32.cont [3/8] (short) (narrow) %v3203_v16, 8  ;;  %v7837_v16 = vld [vmem:[%s8021_s0 + $0x7a0] sm:$0xff]  }
 0xb39   :  { %v3206_v2 = vpop.xlane.xlu0 %3205 }
 0xb3a   :  { %3222 = vxpose.xlu0.b32.cont [4/8] (short) (narrow) %v3206_v2, 8  ;;  %v7844_v2 = vld [vmem:[%s8021_s0 + $0x7d8] sm:$0xff]  }
 0xb3d   :  { %v3209_v20 = vpop.xlane.xlu0 %3208 }
 0xb3e   :  { %3223 = vxpose.xlu0.b32.cont [5/8] (short) (narrow) %v3209_v20, 8  ;;  %v7863_v20 = vld [vmem:[%s8021_s0 + $0x790] sm:$0xff]  }
 0xb41   :  { %v3212_v27 = vpop.xlane.xlu0 %3211 }
 0xb42   :  { %3224 = vxpose.xlu0.b32.cont [6/8] (short) (narrow) %v3212_v27, 8  ;;  %v7870_v27 = vld [vmem:[%s8021_s0 + $0x7c8] sm:$0xff]  }
 0xb45   :  { %v3215_v5 = vpop.xlane.xlu0 %3214 }
 0xb46   :  { %3225 = vxpose.xlu0.b32.cont [7/8] (short) (narrow) %v3215_v5, 8  ;;  %v7889_v5 = vld [vmem:[%s8021_s0 + $0x780] sm:$0xff]  }
 0xb49   :  { %v3218_v58 = vpop.xlane.xlu0 %3217 }
 0xb4a   :  { %3226 = vxpose.xlu0.b32.end [8/8] (short) (narrow) %v3218_v58, 8  ;;  %v6328_v58 = vld [vmem:[%s8024_s3 + $0x18] sm:$0xff] }
 0xbaa   :  { %v3235_v57 = vpop.trf.xlu0 }
 0xbab   :  { %5941 = vmatmul.mubr.msk.f32.vlgmr.msra.gmra.mxu1 %vm569_vm0, %v3235_v57 }
 0xbac   :  { %5692 = vmatpush3.bf16.msra.mxu1 %v6236_v13  ;;  %3679 = vmatprep.mubr.bf16.mxu1 %v7318_v8  ;;  %v6242_v8 = vld [vmem:[%s8021_s0 + $0x6a0] sm:$0xff]  }
 0xbad   :  { %5693 = vmatprep.subr.bf16.mxu1 %v6237_v6  ;;  %v6331_v13 = vld [vmem:[%s8024_s3] sm:$0xff]  ;;  %v5667_v6 = vpop.f32.mrf.mxu0 }
 0xbaf   :  { %v5668_v57 = vpop.f32.mrf.mxu0 }
 0xbb0   :  { %5694 = vmatpush3.bf16.msra.mxu1 %v6238_v60 }
 0xbb1   :  { %5695 = vmatprep.subr.bf16.mxu1 %v6239_v14 }
 0xbb4   :  { %5696 = vmatpush3.bf16.msra.mxu1 %v6240_v54 }
 0xbb5   :  { %5697 = vmatprep.subr.bf16.mxu1 %v6241_v18  ;;  %v5670_v18 = vpop.f32.mrf.mxu0 }
 0xbb8   :  { %5698 = vmatpush3.bf16.msra.mxu1 %v6242_v8  ;;  %v5671_v8 = vpop.f32.mrf.mxu0 }
 0xbb9   :  { %5699 = vmatprep.subr.bf16.mxu1 %v6243_v25 }
 0xbba   :  { %v5673_v25 = vpop.f32.mrf.mxu0 }
 0xbbc   :  { %5700 = vmatpush3.bf16.msra.mxu1 %v6244_v59  ;;  %v5674_v59 = vpop.f32.mrf.mxu0 }
 0xbbd   :  { %5701 = vmatprep.subr.bf16.mxu1 %v6245_v62 }
 0xbbe   :  { %v5676_v62 = vpop.f32.mrf.mxu0 }
 0xbc0   :  { %5702 = vmatpush3.bf16.msra.mxu1 %v6246_v15  ;;  %v5677_v15 = vpop.f32.mrf.mxu0 }
 0xbc1   :  { %5703 = vmatprep.subr.bf16.mxu1 %v6247_v32 }
 0xbc2   :  { %v5679_v32 = vpop.f32.mrf.mxu0 }
 0xbc4   :  { %5704 = vmatpush3.bf16.msra.mxu1 %v6248_v47  ;;  %v5680_v47 = vpop.f32.mrf.mxu0 }
 0xbc5   :  { %5705 = vmatprep.subr.bf16.mxu1 %v6249_v9 }
 0xbc8   :  { %5706 = vmatpush3.bf16.msra.mxu1 %v6250_v43 }
 0xbc9   :  { %5740 = vmatprep.subr.bf16.mxu1 %v6251_v55 }
 0xbcb   :  { %3680 = vmatmul.mubr.bf16.vlgmr.msra.gmra.mxu1 %v7369_v19  ;;  %v6257_v19 = vld [vmem:[%s8021_s0 + $0x760] sm:$0xff]  }
 0xbcc   :  { %5741 = vmatpush3.bf16.msra.mxu1 %v6252_v56  ;;  %3687 = vmatprep.mubr.bf16.mxu1 %v7378_v3  ;;  %v6258_v3 = vld [vmem:[%s8021_s0 + $0x720] sm:$0xff]   ;;  %v5672_v56 = vadd.f32 %v5671_v8, %v5670_v18 }
 0xbcd   :  { %5742 = vmatprep.subr.bf16.mxu1 %v6253_v44 }
 0xbd0   :  { %5743 = vmatpush3.bf16.msra.mxu1 %v6254_v34  ;;  %v5682_v34 = vpop.f32.mrf.mxu0 }
 0xbd1   :  { %5744 = vmatprep.subr.bf16.mxu1 %v6255_v10 }
 0xbd3   :  { %3688 = vmatmul.mubr.bf16.gmra.mxu1 %v7393_v29  ;;  %v6261_v29 = vld [vmem:[%s8021_s0 + $0x750] sm:$0xff]  }
 0xbd4   :  { %5745 = vmatpush3.bf16.msra.mxu1 %v6256_v40  ;;  %3695 = vmatprep.mubr.bf16.mxu1 %v7402_v35 }
 0xbd5   :  { %5746 = vmatprep.subr.bf16.mxu1 %v6257_v19  ;;  %v3620_v19 = vadd.f32 %v5672_v56, %v6628_v21 }
 0xbd8   :  { %5747 = vmatpush3.bf16.msra.mxu1 %v6258_v3  ;;  %v5675_v3 = vadd.f32 %v5674_v59, %v5673_v25 }
 0xbd9   :  { %5748 = vmatprep.subr.bf16.mxu1 %v6259_v4 }
 0xbdb   :  { %3696 = vmatmul.mubr.bf16.gmra.mxu1 %v7417_v33 }
 0xbdc   :  { %5749 = vmatpush3.bf16.msra.mxu1 %v6260_v46  ;;  %3703 = vmatprep.mubr.bf16.mxu1 %v7426_v7 }
 0xbdd   :  { %5750 = vmatprep.subr.bf16.mxu1 %v6261_v29  ;;  %v5683_v29 = vpop.f32.mrf.mxu0 }
 0xbe0   :  { %5751 = vmatpush3.bf16.msra.mxu1 %v6262_v48 }
 0xbe1   :  { %5752 = vmatprep.subr.bf16.mxu1 %v6263_v49 }
 0xbe3   :  { %3704 = vmatmul.mubr.bf16.gmra.mxu1 %v7441_v1 }
 0xbe4   :  { %5753 = vmatpush3.bf16.msra.mxu1 %v6264_v50  ;;  %4139 = vmatprep.mubr.bf16.mxu1 %v7450_v17  ;;  %v7811_v17 = vld [vmem:[%s8021_s0 + $0x7b0] sm:$0xff]  }
 0xbe5   :  { %5754 = vmatprep.subr.bf16.mxu1 %v6265_v41 }
 0xbe8   :  { %5755 = vmatpush3.bf16.msra.mxu1 %v6266_v51  ;;  %v3625_v51 = vadd.f32 %v5675_v3, %v6630_v26 }
 0xbe9   :  { %5981 = vmatprep.subr.bf16.mxu1 %v7689_v31  ;;  %v6329_v31 = vld [vmem:[%s8024_s3 + $0x10] sm:$0xff] }
 0xbeb   :  { %4140 = vmatmul.mubr.bf16.vlgmr.msra.gmra.mxu1 %v7457_v36  ;;  %v7824_v36 = vld [vmem:[%s8021_s0 + $0x7a8] sm:$0xff]  }
 0xbec   :  { %5989 = vmatpush3.bf16.msra.mxu1 %v7798_v23  ;;  %4147 = vmatprep.mubr.bf16.mxu1 %v7463_v63  ;;  %v7830_v63 = vld [vmem:[%s8021_s0 + $0x7e0] sm:$0xff]  }
 0xbed   :  { %5982 = vmatprep.subr.bf16.mxu1 %v7804_v52 }
 0xbf0   :  { %5990 = vmatpush3.bf16.msra.mxu1 %v7811_v17 }
 0xbf1   :  { %5983 = vmatprep.subr.bf16.mxu1 %v7818_v61 }
 0xbf3   :  { %4148 = vmatmul.mubr.bf16.gmra.mxu1 %v7476_v22  ;;  %v7850_v22 = vld [vmem:[%s8021_s0 + $0x798] sm:$0xff]  }
 0xbf4   :  { %5991 = vmatpush3.bf16.msra.mxu1 %v7824_v36  ;;  %4155 = vmatprep.mubr.bf16.mxu1 %v7483_v24  ;;  %v7856_v24 = vld [vmem:[%s8021_s0 + $0x7d0] sm:$0xff]  }
 0xbf5   :  { %5984 = vmatprep.subr.bf16.mxu1 %v7830_v63 }
 0xbf8   :  { %5992 = vmatpush3.bf16.msra.mxu1 %v7837_v16 }
 0xbf9   :  { %5985 = vmatprep.subr.bf16.mxu1 %v7844_v2 }
 0xbfb   :  { %4156 = vmatmul.mubr.bf16.gmra.mxu1 %v7496_v38  ;;  %v7876_v38 = vld [vmem:[%s8021_s0 + $0x788] sm:$0xff]  }
 0xbfc   :  { %5993 = vmatpush3.bf16.msra.mxu1 %v7850_v22  ;;  %4163 = vmatprep.mubr.bf16.mxu1 %v7502_v39  ;;  %v7882_v39 = vld [vmem:[%s8021_s0 + $0x7c0] sm:$0xff]  }
 0xbfd   :  { %5986 = vmatprep.subr.bf16.mxu1 %v7856_v24 }
 0xc00   :  { %5994 = vmatpush3.bf16.msra.mxu1 %v7863_v20 }
 0xc01   :  { %5987 = vmatprep.subr.bf16.mxu1 %v7870_v27 }
 0xc03   :  { %4164 = vmatmul.mubr.bf16.gmra.mxu1 %v7508_v30  ;;  %v6324_v30 = vld [vmem:[%s8024_s3 + $0x38] sm:$0xff] }
 0xc04   :  { %5995 = vmatpush3.bf16.msra.mxu1 %v7876_v38  ;;  %4220 = vmatprep.mubr.bf16.mxu1 %v7402_v35  ;;  %v6325_v35 = vld [vmem:[%s8024_s3 + $0x30] sm:$0xff] }
 0xc05   :  { %5988 = vmatprep.subr.bf16.mxu1 %v7882_v39 }
 0xc08   :  { %5996 = vmatpush3.bf16.msra.mxu1 %v7889_v5 }
 0xc09   :  { %5962 = vmatprep.subr.mxu1 %v6360_v37 }
 0xc0b   :  { %4221 = vmatmul.mubr.bf16.vlgmr.msra.gmra.mxu1 %v7417_v33  ;;  %v6326_v33 = vld [vmem:[%s8024_s3 + $0x28] sm:$0xff] }
 0xc0c   :  { %4228 = vmatprep.mubr.bf16.mxu1 %v7426_v7  ;;  %5963 = vmatpush3.msra.mxu1 %v6324_v30  ;;  %v6327_v7 = vld [vmem:[%s8024_s3 + $0x20] sm:$0xff]  ;;  %v5678_v30 = vadd.f32 %v5677_v15, %v5676_v62  ;;  %v5684_v15 = vadd.f32 %v5683_v29, %v5682_v34 }
 0xc0d   :  { %5964 = vmatprep.subr.mxu1 %v6360_v37 }
 0xc0e   :  { %5965 = vmatpush3.msra.mxu1 %v6325_v35 }
 0xc0f   :  { %5966 = vmatprep.subr.mxu1 %v6360_v37 }
 0xc10   :  { %5967 = vmatpush3.msra.mxu1 %v6326_v33 }
 0xc11   :  { %5968 = vmatprep.subr.mxu1 %v6360_v37 }
 0xc12   :  { %5969 = vmatpush3.msra.mxu1 %v6327_v7  ;;  %v5685_v7 = vpop.f32.mrf.mxu0 }
 0xc13   :  { %4229 = vmatmul.mubr.bf16.gmra.mxu1 %v7441_v1  ;;  %5970 = vmatprep.subr.mxu1 %v6360_v37  ;;  %v6330_v1 = vld [vmem:[%s8024_s3 + $0x8] sm:$0xff] }
 0xc14   :  { %5971 = vmatpush3.msra.mxu1 %v6328_v58  ;;  %5978 = vmatprep.mubr.msk.f32.mxu1 %vm6361_vm1, %v6360_v37 }
 0xc15   :  { %5972 = vmatprep.subr.mxu1 %v6360_v37 }
 0xc16   :  { %5973 = vmatpush3.msra.mxu1 %v6329_v31 }
 0xc17   :  { %5974 = vmatprep.subr.mxu1 %v6360_v37 }
 0xc18   :  { %5975 = vmatpush3.msra.mxu1 %v6330_v1 }
 0xc19   :  { %5976 = vmatprep.subr.mxu1 %v6360_v37  ;;  %v5669_v37 = vadd.f32 %v5668_v57, %v5667_v6  ;;  %v3628_v6 = vadd.f32 %v5678_v30, %v6635_v42  ;;  %v5681_v57 = vadd.f32 %v5680_v47, %v5679_v32  ;;  %v3636_v47 = vadd.f32 %v5684_v15, %v6643_v0 }
 0xc1a   :  { %5977 = vmatpush3.msra.mxu1 %v6331_v13 }
 0xc1b   :  { %v3617_v55 = vadd.f32 %v5669_v37, %v6625_v11  ;;  %v3633_v62 = vadd.f32 %v5681_v57, %v6639_v53 }
 0xc6b   :  { %v3320_v60 = vpop.f32.mrf.mxu1 }
 0xc6c   :  { %v3321_v14 = vadd.f32 %v7516_v45, %v3320_v60 }
 0xc6d   :  { %v5942_v54 = vpop.f32.mrf.mxu1 }
 0xc6e   :  { %3324 = vst [vmem:[#allocation2 + $0x5] sm:$0x1] %v3321_v14  ;;  %v5686_v54 = vpop.f32.mrf.mxu0 }
 0xc8b   :  { %v5707_v9 = vpop.f32.mrf.mxu1 }
 0xc8d   :  { %v5708_v43 = vpop.f32.mrf.mxu1 }
 0xc8e   :  { %v5709_v44 = vadd.f32 %v5708_v43, %v5707_v9  ;;  %v5688_v43 = vpop.f32.mrf.mxu0 }
 0xc8f   :  { %v5710_v10 = vpop.f32.mrf.mxu1 }
 0xc90   :  { %v3682_v45 = vadd.f32 %v5709_v44, %v3617_v55 }
 0xc91   :  { %v5711_v40 = vpop.f32.mrf.mxu1 }
 0xc92   :  { %v5712_v4 = vadd.f32 %v5711_v40, %v5710_v10  ;;  %v3712_v46 = vmax.f32 %v3682_v45, 0.0  ;;  %v5687_v10 = vadd.f32 %v5686_v54, %v5685_v7 }
 0xc93   :  { %v5713_v48 = vpop.f32.mrf.mxu1 }
 0xc94   :  { %v3685_v49 = vadd.f32 %v5712_v4, %v3620_v19  ;;  %v3720_v50 = vsel %vm569_vm0, %v3712_v46, 0.0  ;;  %v5689_v19 = vpop.f32.mrf.mxu0  ;;  %v3641_v29 = vadd.f32 %v5687_v10, %v6647_v12 }
 0xc95   :  { %v5714_v41 = vpop.f32.mrf.mxu1  ;;  %3721 = vadd.xlane.f32.xlu1 %v3720_v50 }
 0xc96   :  { %v5715_v35 = vadd.f32 %v5714_v41, %v5713_v48  ;;  %v3713_v33 = vmax.f32 %v3685_v49, 0.0  ;;  %v5690_v48 = vadd.f32 %v5689_v19, %v5688_v43 }
 0xc97   :  { %v5716_v58 = vpop.f32.mrf.mxu1 }
 0xc98   :  { %v3690_v31 = vadd.f32 %v5715_v35, %v3625_v51  ;;  %v3723_v1 = vsel %vm569_vm0, %v3713_v33, 0.0  ;;  %v3644_v33 = vadd.f32 %v5690_v48, %v6652_v28 }
 0xc99   :  { %v5717_v13 = vpop.f32.mrf.mxu1  ;;  %3724 = vadd.xlane.f32.xlu1 %v3723_v1 }
 0xc9a   :  { %v5718_v60 = vadd.f32 %v5717_v13, %v5716_v58  ;;  %v3714_v14 = vmax.f32 %v3690_v31, 0.0 }
 0xc9b   :  { %v5719_v18 = vpop.f32.mrf.mxu1 }
 0xc9c   :  { %v3693_v8 = vadd.f32 %v5718_v60, %v3628_v6  ;;  %v3726_v25 = vsel %vm569_vm0, %v3714_v14, 0.0 }
 0xc9d   :  { %v5720_v59 = vpop.f32.mrf.mxu1  ;;  %3727 = vadd.xlane.f32.xlu1 %v3726_v25 }
 0xc9e   :  { %v5721_v37 = vadd.f32 %v5720_v59, %v5719_v18  ;;  %v3715_v9 = vmax.f32 %v3693_v8, 0.0 }
 0xc9f   :  { %v5722_v55 = vpop.f32.mrf.mxu1 }
 0xca0   :  { %v3698_v56 = vadd.f32 %v5721_v37, %v3633_v62  ;;  %v3729_v44 = vsel %vm569_vm0, %v3715_v9, 0.0 }
 0xca1   :  { %v5723_v32 = vpop.f32.mrf.mxu1  ;;  %3730 = vadd.xlane.f32.xlu0 %v3729_v44 }
 0xca2   :  { %v5724_v45 = vadd.f32 %v5723_v32, %v5722_v55  ;;  %v3716_v40 = vmax.f32 %v3698_v56, 0.0 }
 0xca3   :  { %v5725_v3 = vpop.f32.mrf.mxu1 }
 0xca4   :  { %v3701_v4 = vadd.f32 %v5724_v45, %v3636_v47  ;;  %v3732_v46 = vsel %vm569_vm0, %v3716_v40, 0.0 }
 0xca5   :  { %v5726_v34 = vpop.f32.mrf.mxu1  ;;  %3733 = vadd.xlane.f32.xlu1 %v3732_v46 }
 0xca6   :  { %v5727_v49 = vadd.f32 %v5726_v34, %v5725_v3  ;;  %v3717_v50 = vmax.f32 %v3701_v4, 0.0 }
 0xca7   :  { %v5728_v41 = vpop.f32.mrf.mxu1 }
 0xca8   :  { %v3706_v51 = vadd.f32 %v5727_v49, %v3641_v29  ;;  %v3735_v30 = vsel %vm569_vm0, %v3717_v50, 0.0 }
 0xca9   :  { %v5729_v35 = vpop.f32.mrf.mxu1  ;;  %3736 = vadd.xlane.f32.xlu1 %v3735_v30 }
 0xcaa   :  { %v5730_v7 = vadd.f32 %v5729_v35, %v5728_v41  ;;  %v3718_v58 = vmax.f32 %v3706_v51, 0.0 }
 0xcab   :  { %v5756_v31 = vpop.f32.mrf.mxu1 }
 0xcac   :  { %v3709_v1 = vadd.f32 %v5730_v7, %v3644_v33  ;;  %v3738_v13 = vsel %vm569_vm0, %v3718_v58, 0.0 }
 0xcad   :  { %v5757_v6 = vpop.f32.mrf.mxu1  ;;  %3739 = vadd.xlane.f32.xlu1 %v3738_v13 }
 0xcae   :  { %v7947_v57 = vadd.f32 %v5757_v6, %v5756_v31  ;;  %v3719_v60 = vmax.f32 %v3709_v1, 0.0 }
 0xcaf   :  { %v5759_v14 = vpop.f32.mrf.mxu1 }
 0xcb0   :  { %v3741_v54 = vsel %vm569_vm0, %v3719_v60, 0.0 }
 0xcb1   :  { %v5760_v18 = vpop.f32.mrf.mxu1  ;;  %3742 = vadd.xlane.f32.xlu1 %v3741_v54 }
 0xcb2   :  { %v7950_v8 = vadd.f32 %v5760_v18, %v5759_v14 }
 0xcb3   :  { %v5762_v25 = vpop.f32.mrf.mxu1 }
 0xcb5   :  { %v5763_v59 = vpop.f32.mrf.mxu1 }
 0xcb6   :  { %v7952_v62 = vadd.f32 %v5763_v59, %v5762_v25  ;;  %v6332_v25 = vld [vmem:[%s8022_s1 + $0xc] ss:$16 sps:$4 sm:$0xff]  }
 0xcb7   :  { %v5765_v15 = vpop.f32.mrf.mxu1 }
 0xcb9   :  { %v5766_v37 = vpop.f32.mrf.mxu1 }
 0xcba   :  { %v7954_v9 = vadd.f32 %v5766_v37, %v5765_v15  ;;  %v4145_v15 = vadd.f32 %v7950_v8, %v6628_v21 }
 0xcbb   :  { %v5768_v43 = vpop.f32.mrf.mxu1 }
 0xcbd   :  { %v5769_v55 = vpop.f32.mrf.mxu1 }
 0xcbe   :  { %v5770_v19 = vadd.f32 %v5769_v55, %v5768_v43 }
 0xcbf   :  { %v5771_v56 = vpop.f32.mrf.mxu1 }
 0xcc0   :  { %v4158_v34 = vadd.f32 %v5770_v19, %v6639_v53 }
 0xcc1   :  { %v5772_v44 = vpop.f32.mrf.mxu1 }
 0xcc2   :  { %v5773_v29 = vadd.f32 %v5772_v44, %v5771_v56 }
 0xcc3   :  { %v5774_v32 = vpop.f32.mrf.mxu1 }
 0xcc4   :  { %v4161_v51 = vadd.f32 %v5773_v29, %v6643_v0 }
 0xcc5   :  { %v5775_v47 = vpop.f32.mrf.mxu1 }
 0xcc6   :  { %v7956_v10 = vadd.f32 %v5775_v47, %v5774_v32 }
 0xcc7   :  { %v5777_v45 = vpop.f32.mrf.mxu1 }
 0xcc8   :  { %v4166_v29 = vadd.f32 %v7956_v10, %v6647_v12 }
 0xcc9   :  { %v5778_v40 = vpop.f32.mrf.mxu1 }
 0xcca   :  { %v7958_v3 = vadd.f32 %v5778_v40, %v5777_v45 }
 0xccb   :  { %v5808_v4 = vpop.f32.mrf.mxu1 }
 0xccd   :  { %v5809_v46 = vpop.f32.mrf.mxu1 }
 0xcce   :  { %v5810_v48 = vadd.f32 %v5809_v46, %v5808_v4 }
 0xccf   :  { %v5811_v49 = vpop.f32.mrf.mxu1 }
 0xcd0   :  { %v4223_v50 = vadd.f32 %v5810_v48, %v4158_v34  ;;  %v4153_v34 = vadd.f32 %v7954_v9, %v6635_v42 }
 0xcd1   :  { %v5812_v41 = vpop.f32.mrf.mxu1 }
 0xcd2   :  { %v5813_v30 = vadd.f32 %v5812_v41, %v5811_v49  ;;  %v4241_v35 = vmax.f32 %v4223_v50, 0.0 }
 0xcd4   :  { %v4226_v33 = vadd.f32 %v5813_v30, %v4161_v51  ;;  %v4257_v7 = vsel %vm569_vm0, %v4241_v35, 0.0  ;;  %v4169_v51 = vadd.f32 %v7958_v3, %v6652_v28 }
 0xcd5   :  { %4258 = vadd.xlane.f32.xlu0 %v4257_v7 }
 0xcd6   :  { %v4242_v58 = vmax.f32 %v4226_v33, 0.0 }
 0xcd8   :  { %v4260_v31 = vsel %vm569_vm0, %v4242_v58, 0.0 }
 0xcd9   :  { %4261 = vadd.xlane.f32.xlu0 %v4260_v31 }
 0xd1e   :  { %v3722_v1 = vpop.xlane.xlu1 %3721 }
 0xd1f   :  { %3744 = vxpose.xlu1.b32.start [1/8] (short) (narrow) %v3722_v1, 8 }
 0xd22   :  { %v3725_v53 = vpop.xlane.xlu1 %3724 }
 0xd23   :  { %3745 = vxpose.xlu1.b32.cont [2/8] (short) (narrow) %v3725_v53, 8 }
 0xd26   :  { %v3728_v13 = vpop.xlane.xlu1 %3727 }
 0xd27   :  { %3746 = vxpose.xlu1.b32.cont [3/8] (short) (narrow) %v3728_v13, 8 }
 0xd2a   :  { %v3731_v6 = vpop.xlane.xlu0 %3730 }
 0xd2b   :  { %3747 = vxpose.xlu1.b32.cont [4/8] (short) (narrow) %v3731_v6, 8 }
 0xd2e   :  { %v3734_v60 = vpop.xlane.xlu1 %3733 }
 0xd2f   :  { %3748 = vxpose.xlu1.b32.cont [5/8] (short) (narrow) %v3734_v60, 8 }
 0xd32   :  { %v3737_v0 = vpop.xlane.xlu1 %3736 }
 0xd33   :  { %3749 = vxpose.xlu1.b32.cont [6/8] (short) (narrow) %v3737_v0, 8 }
 0xd36   :  { %v3740_v14 = vpop.xlane.xlu1 %3739 }
 0xd37   :  { %3750 = vxpose.xlu1.b32.cont [7/8] (short) (narrow) %v3740_v14, 8 }
 0xd3a   :  { %v3743_v54 = vpop.xlane.xlu1 %3742 }
 0xd3b   :  { %3751 = vxpose.xlu1.b32.end [8/8] (short) (narrow) %v3743_v54, 8 }
 0xd5e   :  { %v4259_v10 = vpop.xlane.xlu0 %4258 }
 0xd62   :  { %v4262_v58 = vpop.xlane.xlu0 %4261 }
 0xd9b   :  { %v3760_v18 = vpop.trf.xlu1 }
 0xd9c   :  { %5960 = vmatmul.mubr.msk.f32.vlgmr.msra.gmra.mxu0 %vm569_vm0, %v3760_v18 }
 0xd9d   :  { %5781 = vmatpush3.bf16.msra.mxu0 %v7798_v23  ;;  %4204 = vmatprep.mubr.bf16.mxu0 %v6332_v25  ;;  %v6333_v23 = vld [vmem:[%s8022_s1 + $0x8] ss:$16 sps:$4 sm:$0xff]  }
 0xd9e   :  { %5782 = vmatprep.subr.bf16.mxu0 %v7804_v52  ;;  %v6334_v52 = vld [vmem:[%s8022_s1 + $0x2c] ss:$16 sps:$4 sm:$0xff]  }
 0xda1   :  { %5783 = vmatpush3.bf16.msra.mxu0 %v7811_v17  ;;  %v6335_v17 = vld [vmem:[%s8022_s1 + $0x28] ss:$16 sps:$4 sm:$0xff]   ;;  %s6362_s1 = smov [#allocation2]  }
 0xda2   :  { %5784 = vmatprep.subr.bf16.mxu0 %v7818_v61 }
 0xda5   :  { %5785 = vmatpush3.bf16.msra.mxu0 %v7824_v36  ;;  %v7995_v36 = vld [vmem:[%s8025_s4] sm:$0x1]  ;;  %s4381_s4 = sshll.u32 %s6362_s1, 4  ;;  %s4382_s4 = int_to_ptr.vmem [resolvable:$true] %s4381_s4 }
 0xda6   :  { %5786 = vmatprep.subr.bf16.mxu0 %v7830_v63  ;;  %s6337_s6 = scalar_lea.vmem %s4382_s4, 128  ;;  %p6342_p1 = scmp.lt.s32.totalorder %s4382_s4, %s4382_s4 }
 0xda7   :  { %p6338_p0 = scmp.ne.s32.totalorder %s4382_s4, %s6337_s6  ;;  %p6343_p2 = scmp.lt.s32.totalorder %s6337_s6, %s6337_s6 }
 0xda9   :  { %5787 = vmatpush3.bf16.msra.mxu0 %v7837_v16  ;;  %p6344_p3 = por %p6343_p2, %p6342_p1 }
 0xdaa   :  { %5788 = vmatprep.subr.bf16.mxu0 %v7844_v2 }
 0xdab   :  { %p6345_p4 = pnand %p6344_p3, %p6338_p0 }
 0xdad   :  { %5789 = vmatpush3.bf16.msra.mxu0 %v7850_v22  ;;  %v5814_v22 = vpop.f32.mrf.mxu1 }
 0xdae   :  { %5790 = vmatprep.subr.bf16.mxu0 %v7856_v24 }
 0xdb1   :  { %5791 = vmatpush3.bf16.msra.mxu0 %v7863_v20  ;;  %v4142_v20 = vadd.f32 %v7947_v57, %v6625_v11  ;;  %v4150_v11 = vadd.f32 %v7952_v62, %v6630_v26 }
 0xdb2   :  { %5792 = vmatprep.subr.bf16.mxu0 %v7870_v27 }
 0xdb5   :  { %5793 = vmatpush3.bf16.msra.mxu0 %v7876_v38 }
 0xdb6   :  { %5794 = vmatprep.subr.bf16.mxu0 %v7882_v39 }
 0xdb9   :  { %5795 = vmatpush3.bf16.msra.mxu0 %v7889_v5  ;;  %v5815_v5 = vpop.f32.mrf.mxu1 }
 0xdba   :  { %v5816_v19 = vadd.f32 %v5815_v5, %v5814_v22 }
 0xdbb   :  { %v5817_v32 = vpop.f32.mrf.mxu1 }
 0xdbc   :  { %4205 = vmatmul.mubr.bf16.vlgmr.msra.gmra.mxu0 %v6333_v23  ;;  %v4231_v50 = vadd.f32 %v5816_v19, %v4166_v29 }
 0xdbd   :  { %4212 = vmatprep.mubr.bf16.mxu0 %v6334_v52  ;;  %v5818_v21 = vpop.f32.mrf.mxu1 }
 0xdbe   :  { %v5819_v26 = vadd.f32 %v5818_v21, %v5817_v32  ;;  %v4243_v7 = vmax.f32 %v4231_v50, 0.0 }
 0xdc0   :  { %v4234_v35 = vadd.f32 %v5819_v26, %v4169_v51  ;;  %v4263_v42 = vsel %vm569_vm0, %v4243_v7, 0.0 }
 0xdc2   :  { %v4244_v12 = vmax.f32 %v4234_v35, 0.0 }
 0xdc4   :  { %4213 = vmatmul.mubr.bf16.gmra.mxu0 %v6335_v17  ;;  %v4266_v9 = vsel %vm569_vm0, %v4244_v12, 0.0 }
 0xe5c   :  { %v3845_v61 = vpop.f32.mrf.mxu0 }
 0xe5d   :  { %v3846_v63 = vadd.f32 %v7995_v36, %v3845_v61 }
 0xe5e   :  { %v5961_v16 = vpop.f32.mrf.mxu0 }
 0xe5f   :  { %3849 = vst [vmem:[#allocation2 + $0x6] sm:$0x1] %v3846_v63 }
 0xe7c   :  { %v5796_v2 = vpop.f32.mrf.mxu0 }
 0xe7e   :  { %v5797_v24 = vpop.f32.mrf.mxu0 }
 0xe7f   :  { %v5798_v27 = vadd.f32 %v5797_v24, %v5796_v2 }
 0xe80   :  { %v5799_v38 = vpop.f32.mrf.mxu0 }
 0xe81   :  { %v4207_v39 = vadd.f32 %v5798_v27, %v4142_v20 }
 0xe82   :  { %v5800_v59 = vpop.f32.mrf.mxu0 }
 0xe83   :  { %v5801_v37 = vadd.f32 %v5800_v59, %v5799_v38  ;;  %v4237_v43 = vmax.f32 %v4207_v39, 0.0 }
 0xe84   :  { %v5802_v55 = vpop.f32.mrf.mxu0 }
 0xe85   :  { %v4210_v56 = vadd.f32 %v5801_v37, %v4145_v15  ;;  %v4245_v44 = vsel %vm569_vm0, %v4237_v43, 0.0 }
 0xe86   :  { %v5803_v47 = vpop.f32.mrf.mxu0  ;;  %4246 = vadd.xlane.f32.xlu0 %v4245_v44 }
 0xe87   :  { %v5804_v57 = vadd.f32 %v5803_v47, %v5802_v55  ;;  %v4238_v45 = vmax.f32 %v4210_v56, 0.0 }
 0xe88   :  { %v5805_v40 = vpop.f32.mrf.mxu0 }
 0xe89   :  { %v4215_v4 = vadd.f32 %v5804_v57, %v4150_v11  ;;  %v4248_v46 = vsel %vm569_vm0, %v4238_v45, 0.0 }
 0xe8a   :  { %v5806_v8 = vpop.f32.mrf.mxu0  ;;  %4249 = vadd.xlane.f32.xlu0 %v4248_v46 }
 0xe8b   :  { %v5807_v48 = vadd.f32 %v5806_v8, %v5805_v40  ;;  %v4239_v49 = vmax.f32 %v4215_v4, 0.0 }
 0xe8d   :  { %v4218_v62 = vadd.f32 %v5807_v48, %v4153_v34  ;;  %v4251_v41 = vsel %vm569_vm0, %v4239_v49, 0.0 }
 0xe8e   :  { %4252 = vadd.xlane.f32.xlu0 %v4251_v41 }
 0xe8f   :  { %v4240_v30 = vmax.f32 %v4218_v62, 0.0 }
 0xe91   :  { %v4254_v33 = vsel %vm569_vm0, %v4240_v30, 0.0 }
 0xe92   :  { %4255 = vadd.xlane.f32.xlu0 %v4254_v33 }
 0xe96   :  { %4264 = vadd.xlane.f32.xlu0 %v4263_v42 }
 0xe9a   :  { %4267 = vadd.xlane.f32.xlu0 %v4266_v9 }
 0xf0f   :  { %v4247_v31 = vpop.xlane.xlu0 %4246 }
 0xf10   :  { %4269 = vxpose.xlu0.b32.start [1/8] (short) (narrow) %v4247_v31, 8 }
 0xf13   :  { %v4250_v1 = vpop.xlane.xlu0 %4249 }
 0xf14   :  { %4270 = vxpose.xlu0.b32.cont [2/8] (short) (narrow) %v4250_v1, 8 }
 0xf17   :  { %v4253_v28 = vpop.xlane.xlu0 %4252 }
 0xf18   :  { %4271 = vxpose.xlu0.b32.cont [3/8] (short) (narrow) %v4253_v28, 8 }
 0xf1b   :  { %v4256_v3 = vpop.xlane.xlu0 %4255 }
 0xf1c   :  { %4272 = vxpose.xlu0.b32.cont [4/8] (short) (narrow) %v4256_v3, 8 }
 0xf1f   :  { %v4265_v53 = vpop.xlane.xlu0 %4264 }
 0xf20   :  { %4273 = vxpose.xlu0.b32.cont [5/8] (short) (narrow) %v4259_v10, 8 }
 0xf23   :  { %v4268_v13 = vpop.xlane.xlu0 %4267 }
 0xf24   :  { %4274 = vxpose.xlu0.b32.cont [6/8] (short) (narrow) %v4262_v58, 8 }
 0xf28   :  { %4275 = vxpose.xlu0.b32.cont [7/8] (short) (narrow) %v4265_v53, 8 }
 0xf2c   :  { %4276 = vxpose.xlu0.b32.end [8/8] (short) (narrow) %v4268_v13, 8 }
 0xf8c   :  { %v4285_v6 = vpop.trf.xlu0 }
 0xf8d   :  { %5979 = vmatmul.mubr.msk.f32.vlgmr.msra.gmra.mxu1 %vm569_vm0, %v4285_v6 }
0x104d   :  { %v4370_v60 = vpop.f32.mrf.mxu1 }
0x104e   :  { %v4371_v0 = vadd.f32 %v7995_v36, %v4370_v60 }
0x104f   :  { %v5980_v14 = vpop.f32.mrf.mxu1 }
0x1050   :  { %4374 = vst [vmem:[#allocation2 + $0x7] sm:$0x1] %v4371_v0 }
0x1051   :  { %6348 = shalt.err (!%p6345_p4)
}
0x1052   :  { %4384 = dma.vmem_to_hbm [thread:$0]  %s4382_s4, 128, %s8026_s5, [#allocation3]  }
0x1053   :  { %6357 = dma.done.wait [#allocation3], 128  }
0x1054   :  { %6358 = vsyncadd [#allocation3], 4294967168 }
0x1055   :  { %4388 = vsyncpa [#allocation3], 1 }

</bundles_post_ra>
